<compile_context>
chip_gen: v6e
topology: v6e:2x2x1
jax: 0.10.0
libtpu: 0.0.40
codegen_flags: <defaults>
</compile_context>

<pallas_src>
import functools

import jax
import jax.numpy as jnp
from jax.experimental import pallas as pl
from jax.experimental.pallas import tpu as pltpu

# SELU constants (same as torch.nn.functional.selu)
_SELU_ALPHA = 1.6732632423543772848170429916717
_SELU_SCALE = 1.0507009873554804934193349852946

D_IN = 32 * 32 * 3            # 3072 (already a multiple of 128)
H1, H2, H3, NOUT = 750, 200, 50, 10
H1P, H2P, H3P, NOUTP = 768, 256, 128, 128   # lane-padded widths


def _round_up(x, m):
    return ((x + m - 1) // m) * m


def _selu(z):
    # Negative branch on a clamped argument -> no inf intermediate for large z.
    neg = _SELU_ALPHA * (jnp.exp(jnp.minimum(z, 0.0)) - 1.0)
    return _SELU_SCALE * jnp.where(z > 0.0, z, neg)


def _mlp_kernel(x_ref, w1_ref, b1_ref, w2_ref, b2_ref, w3_ref, b3_ref,
                w4_ref, b4_ref, o_ref):
    # fc1 + ReLU (full K in one MXU pass; W1 is VMEM-resident across the grid)
    h = jnp.dot(x_ref[...], w1_ref[...], preferred_element_type=jnp.float32)
    h = jnp.maximum(h + b1_ref[...], 0.0).astype(jnp.bfloat16)
    # fc2 + ReLU
    h = jnp.dot(h, w2_ref[...], preferred_element_type=jnp.float32)
    h = jnp.maximum(h + b2_ref[...], 0.0).astype(jnp.bfloat16)
    # fc3 + SELU
    h = jnp.dot(h, w3_ref[...], preferred_element_type=jnp.float32)
    h = _selu(h + b3_ref[...]).astype(jnp.bfloat16)
    # fc4 (logits)
    h = jnp.dot(h, w4_ref[...], preferred_element_type=jnp.float32)
    o_ref[...] = (h + b4_ref[...]).astype(o_ref.dtype)


def _choose_batch_tile(B, max_tile):
    """Pick (bt, Bp): minimize padding, keep >=2 tiles once B >= 256 (megacore),
    bt a multiple of 16 (bf16 sublane packing), capped at max_tile."""
    Bp8 = _round_up(max(B, 8), 8)
    if Bp8 < 256:
        # Tiny batch: a single full-dim tile (no padding beyond the 8-sublane round).
        return Bp8, Bp8
    n_tiles = max(2, -(-Bp8 // max_tile))        # >= 2 so the parallel axis can split
    bt = _round_up(-(-Bp8 // n_tiles), 16)
    bt = min(bt, max_tile)
    n_tiles = -(-Bp8 // bt)
    return bt, bt * n_tiles


@functools.partial(jax.jit, static_argnames=("batch_tile",))
def three_layer_model_forward(x, padded_params, *, batch_tile=512):
    """x: (B, 3, 32, 32) float32 NCHW. padded_params from prepare_params().
    Returns logits (B, 10) float32."""
    w1, b1, w2, b2, w3, b3, w4, b4 = padded_params
    B = x.shape[0]
    x_flat = x.reshape(B, -1)                       # torch.flatten(x, 1)
    assert x_flat.shape[1] == D_IN
    x_flat = x_flat.astype(jnp.bfloat16)

    bt, Bp = _choose_batch_tile(B, batch_tile)
    if Bp != B:
        x_flat = jnp.pad(x_flat, ((0, Bp - B), (0, 0)))

    grid = (Bp // bt,)

    def const_spec(shape):
        # Grid-invariant block: DMA'd into VMEM once, stays resident for all tiles.
        return pl.BlockSpec(shape, lambda i: (0, 0))

    out = pl.pallas_call(
        _mlp_kernel,
        out_shape=jax.ShapeDtypeStruct((Bp, NOUTP), jnp.float32),
        grid_spec=pltpu.PrefetchScalarGridSpec(
            num_scalar_prefetch=0,
            grid=grid,
            in_specs=[
                pl.BlockSpec((bt, D_IN), lambda i: (i, 0)),   # x tile (streamed)
                const_spec((D_IN, H1P)),                      # w1 (resident, 4.5 MiB bf16)
                const_spec((1, H1P)),                         # b1
                const_spec((H1P, H2P)),                       # w2
                const_spec((1, H2P)),                         # b2
                const_spec((H2P, H3P)),                       # w3
                const_spec((1, H3P)),                         # b3
                const_spec((H3P, NOUTP)),                     # w4
                const_spec((1, NOUTP)),                       # b4
            ],
            out_specs=pl.BlockSpec((bt, NOUTP), lambda i: (i, 0)),
        ),
        compiler_params=pltpu.CompilerParams(
            dimension_semantics=("parallel",),   # batch tiles shard across TCs (v7x)
            vmem_limit_bytes=48 << 20,           # worst case ~17 MiB; fits v7x 64 MiB
        ),
    )(x_flat, w1, b1, w2, b2, w3, b3, w4, b4)

    return out[:B, :NOUT]


def init_params(key):
    """Deterministic init mimicking nn.Linear's U(-1/sqrt(fan_in), 1/sqrt(fan_in)).
    Weights stored as (in_features, out_features); biases as (out_features,)."""
    dims = [(D_IN, H1), (H1, H2), (H2, H3), (H3, NOUT)]
    params = []
    for fan_in, fan_out in dims:
        key, kw, kb = jax.random.split(key, 3)
        bound = 1.0 / jnp.sqrt(fan_in)
        w = jax.random.uniform(kw, (fan_in, fan_out), jnp.float32, -bound, bound)
        b = jax.random.uniform(kb, (fan_out,), jnp.float32, -bound, bound)
        params += [w, b]
    return tuple(params)


def prepare_params(params):
    """Pad to lane-multiple widths and cast weights to bf16 (biases stay f32).
    Zero-padded columns/rows are inert through ReLU and SELU (SELU(0)=0)."""
    w1, b1, w2, b2, w3, b3, w4, b4 = params

    def pad_w(w, rows, cols):
        return jnp.pad(w, ((0, rows - w.shape[0]),
                           (0, cols - w.shape[1]))).astype(jnp.bfloat16)

    def pad_b(b, cols):
        return jnp.pad(b.reshape(1, -1),
                       ((0, 0), (0, cols - b.shape[-1]))).astype(jnp.float32)

    return (
        pad_w(w1, D_IN, H1P), pad_b(b1, H1P),
        pad_w(w2, H1P, H2P), pad_b(b2, H2P),
        pad_w(w3, H2P, H3P), pad_b(b3, H3P),
        pad_w(w4, H3P, NOUTP), pad_b(b4, NOUTP),
    )


def reference_forward_matched(x, padded_params):
    """Plain-JAX reference using the same bf16-operand / f32-accumulate arithmetic."""
    w1, b1, w2, b2, w3, b3, w4, b4 = padded_params
    h = x.reshape(x.shape[0], -1).astype(jnp.bfloat16)
    h = jnp.maximum(jnp.dot(h, w1, preferred_element_type=jnp.float32) + b1, 0.0)
    h = h.astype(jnp.bfloat16)
    h = jnp.maximum(jnp.dot(h, w2, preferred_element_type=jnp.float32) + b2, 0.0)
    h = h.astype(jnp.bfloat16)
    h = _selu(jnp.dot(h, w3, preferred_element_type=jnp.float32) + b3)
    h = h.astype(jnp.bfloat16)
    out = jnp.dot(h, w4, preferred_element_type=jnp.float32) + b4
    return out[:, :NOUT]


def reference_forward_f32(x, params):
    """Full-precision reference matching the PyTorch module exactly."""
    w1, b1, w2, b2, w3, b3, w4, b4 = params
    h = x.reshape(x.shape[0], -1)
    h = jnp.maximum(h @ w1 + b1, 0.0)
    h = jnp.maximum(h @ w2 + b2, 0.0)
    h = jax.nn.selu(h @ w3 + b3)
    return h @ w4 + b4


if __name__ == "__main__":
    key = jax.random.PRNGKey(0)
    key, kx = jax.random.split(key)
    # Small CIFAR-like batch: (B, 3, 32, 32) NCHW, flattened to 3072 features.
    x = jax.random.normal(kx, (2, 3, 32, 32), jnp.float32)

    params = init_params(key)
    padded = prepare_params(params)

    out = three_layer_model_forward(x, padded)
    out = jax.block_until_ready(out)
    assert out.shape == (2, NOUT)

    # Tight check vs. a reference using identical bf16/f32 mixed arithmetic.
    ref_matched = reference_forward_matched(x, padded)
    assert jnp.allclose(out, ref_matched, atol=2e-3, rtol=2e-3), "mismatch vs matched reference"

    # Loose sanity check vs. the full-f32 PyTorch-equivalent forward
    # (difference is only bf16 operand rounding).
    ref_f32 = reference_forward_f32(x, params)
    assert jnp.max(jnp.abs(out - ref_f32)) < 0.25, "mismatch vs f32 reference"

    print("KERNEL_OK")
</pallas_src>

<mosaic_0001>
module attributes {stable_mosaic.version = 11 : i64} {
  func.func @_mlp_kernel(%arg0: i32, %arg1: memref<8x3072xbf16, #tpu.memory_space<vmem>>, %arg2: memref<3072x768xbf16, #tpu.memory_space<vmem>>, %arg3: memref<1x768xf32, #tpu.memory_space<vmem>>, %arg4: memref<768x256xbf16, #tpu.memory_space<vmem>>, %arg5: memref<1x256xf32, #tpu.memory_space<vmem>>, %arg6: memref<256x128xbf16, #tpu.memory_space<vmem>>, %arg7: memref<1x128xf32, #tpu.memory_space<vmem>>, %arg8: memref<128x128xbf16, #tpu.memory_space<vmem>>, %arg9: memref<1x128xf32, #tpu.memory_space<vmem>>, %arg10: memref<8x128xf32, #tpu.memory_space<vmem>>) attributes {dimension_semantics = [#tpu.dimension_semantics<parallel>], iteration_bounds = array<i64: 1>, scalar_prefetch = 0 : i64, scratch_operands = 0 : i64, tpu.core_type = #tpu.core_type<tc>, window_params = [{transform_indices = @transform_0, window_bounds = array<i64: 8, 3072>}, {pipeline_mode = #tpu.pipeline_mode<synchronous>, transform_indices = @transform_1, window_bounds = array<i64: 3072, 768>}, {pipeline_mode = #tpu.pipeline_mode<synchronous>, transform_indices = @transform_2, window_bounds = array<i64: 1, 768>}, {pipeline_mode = #tpu.pipeline_mode<synchronous>, transform_indices = @transform_3, window_bounds = array<i64: 768, 256>}, {pipeline_mode = #tpu.pipeline_mode<synchronous>, transform_indices = @transform_4, window_bounds = array<i64: 1, 256>}, {pipeline_mode = #tpu.pipeline_mode<synchronous>, transform_indices = @transform_5, window_bounds = array<i64: 256, 128>}, {pipeline_mode = #tpu.pipeline_mode<synchronous>, transform_indices = @transform_6, window_bounds = array<i64: 1, 128>}, {pipeline_mode = #tpu.pipeline_mode<synchronous>, transform_indices = @transform_7, window_bounds = array<i64: 128, 128>}, {pipeline_mode = #tpu.pipeline_mode<synchronous>, transform_indices = @transform_8, window_bounds = array<i64: 1, 128>}, {transform_indices = @transform_9, window_bounds = array<i64: 8, 128>}]} {
    %c0 = arith.constant 0 : index
    %c0_0 = arith.constant 0 : index
    %0 = vector.load %arg1[%c0, %c0_0] : memref<8x3072xbf16, #tpu.memory_space<vmem>>, vector<8x3072xbf16>
    %c0_1 = arith.constant 0 : index
    %c0_2 = arith.constant 0 : index
    %1 = vector.load %arg2[%c0_1, %c0_2] : memref<3072x768xbf16, #tpu.memory_space<vmem>>, vector<3072x768xbf16>
    %cst = arith.constant dense<0.000000e+00> : vector<8x768xf32>
    %2 = tpu.matmul %0, %1, %cst {dimension_numbers = #tpu.dot_dimension_numbers<[1], [0], [0], [1], [0, 0, 1, 1], [], []>} : vector<8x3072xbf16>, vector<3072x768xbf16>, vector<8x768xf32> -> vector<8x768xf32>
    %c0_3 = arith.constant 0 : index
    %c0_4 = arith.constant 0 : index
    %3 = vector.load %arg3[%c0_3, %c0_4] : memref<1x768xf32, #tpu.memory_space<vmem>>, vector<1x768xf32>
    %4 = vector.broadcast %3 : vector<1x768xf32> to vector<8x768xf32>
    %5 = arith.addf %2, %4 : vector<8x768xf32>
    %cst_5 = arith.constant 0.000000e+00 : f32
    %6 = vector.broadcast %cst_5 : f32 to vector<8x768xf32>
    %7 = arith.maximumf %5, %6 : vector<8x768xf32>
    %8 = arith.truncf %7 : vector<8x768xf32> to vector<8x768xbf16>
    %c0_6 = arith.constant 0 : index
    %c0_7 = arith.constant 0 : index
    %9 = vector.load %arg4[%c0_6, %c0_7] : memref<768x256xbf16, #tpu.memory_space<vmem>>, vector<768x256xbf16>
    %cst_8 = arith.constant dense<0.000000e+00> : vector<8x256xf32>
    %10 = tpu.matmul %8, %9, %cst_8 {dimension_numbers = #tpu.dot_dimension_numbers<[1], [0], [0], [1], [0, 0, 1, 1], [], []>} : vector<8x768xbf16>, vector<768x256xbf16>, vector<8x256xf32> -> vector<8x256xf32>
    %c0_9 = arith.constant 0 : index
    %c0_10 = arith.constant 0 : index
    %11 = vector.load %arg5[%c0_9, %c0_10] : memref<1x256xf32, #tpu.memory_space<vmem>>, vector<1x256xf32>
    %12 = vector.broadcast %11 : vector<1x256xf32> to vector<8x256xf32>
    %13 = arith.addf %10, %12 : vector<8x256xf32>
    %cst_11 = arith.constant 0.000000e+00 : f32
    %14 = vector.broadcast %cst_11 : f32 to vector<8x256xf32>
    %15 = arith.maximumf %13, %14 : vector<8x256xf32>
    %16 = arith.truncf %15 : vector<8x256xf32> to vector<8x256xbf16>
    %c0_12 = arith.constant 0 : index
    %c0_13 = arith.constant 0 : index
    %17 = vector.load %arg6[%c0_12, %c0_13] : memref<256x128xbf16, #tpu.memory_space<vmem>>, vector<256x128xbf16>
    %cst_14 = arith.constant dense<0.000000e+00> : vector<8x128xf32>
    %18 = tpu.matmul %16, %17, %cst_14 {dimension_numbers = #tpu.dot_dimension_numbers<[1], [0], [0], [1], [0, 0, 1, 1], [], []>} : vector<8x256xbf16>, vector<256x128xbf16>, vector<8x128xf32> -> vector<8x128xf32>
    %c0_15 = arith.constant 0 : index
    %c0_16 = arith.constant 0 : index
    %19 = vector.load %arg7[%c0_15, %c0_16] : memref<1x128xf32, #tpu.memory_space<vmem>>, vector<1x128xf32>
    %20 = vector.broadcast %19 : vector<1x128xf32> to vector<8x128xf32>
    %21 = arith.addf %18, %20 : vector<8x128xf32>
    %cst_17 = arith.constant 0.000000e+00 : f32
    %22 = vector.broadcast %cst_17 : f32 to vector<8x128xf32>
    %23 = arith.minimumf %21, %22 : vector<8x128xf32>
    %24 = math.exp %23 : vector<8x128xf32>
    %cst_18 = arith.constant 1.000000e+00 : f32
    %25 = vector.broadcast %cst_18 : f32 to vector<8x128xf32>
    %26 = arith.subf %24, %25 : vector<8x128xf32>
    %cst_19 = arith.constant 1.67326319 : f32
    %27 = vector.broadcast %cst_19 : f32 to vector<8x128xf32>
    %28 = arith.mulf %27, %26 : vector<8x128xf32>
    %cst_20 = arith.constant 0.000000e+00 : f32
    %29 = vector.broadcast %cst_20 : f32 to vector<8x128xf32>
    %30 = arith.cmpf ogt, %21, %29 : vector<8x128xf32>
    %31 = arith.select %30, %21, %28 : vector<8x128xi1>, vector<8x128xf32>
    %cst_21 = arith.constant 1.05070102 : f32
    %32 = vector.broadcast %cst_21 : f32 to vector<8x128xf32>
    %33 = arith.mulf %32, %31 : vector<8x128xf32>
    %34 = arith.truncf %33 : vector<8x128xf32> to vector<8x128xbf16>
    %c0_22 = arith.constant 0 : index
    %c0_23 = arith.constant 0 : index
    %35 = vector.load %arg8[%c0_22, %c0_23] : memref<128x128xbf16, #tpu.memory_space<vmem>>, vector<128x128xbf16>
    %cst_24 = arith.constant dense<0.000000e+00> : vector<8x128xf32>
    %36 = tpu.matmul %34, %35, %cst_24 {dimension_numbers = #tpu.dot_dimension_numbers<[1], [0], [0], [1], [0, 0, 1, 1], [], []>} : vector<8x128xbf16>, vector<128x128xbf16>, vector<8x128xf32> -> vector<8x128xf32>
    %c0_25 = arith.constant 0 : index
    %c0_26 = arith.constant 0 : index
    %37 = vector.load %arg9[%c0_25, %c0_26] : memref<1x128xf32, #tpu.memory_space<vmem>>, vector<1x128xf32>
    %38 = vector.broadcast %37 : vector<1x128xf32> to vector<8x128xf32>
    %39 = arith.addf %36, %38 : vector<8x128xf32>
    %c0_27 = arith.constant 0 : index
    %c0_28 = arith.constant 0 : index
    %40 = vector.load %arg10[%c0_27, %c0_28] : memref<8x128xf32, #tpu.memory_space<vmem>>, vector<8x128xf32>
    tpu.vector_store %arg10[%c0_27, %c0_28], %39 {strides = array<i32>} : memref<8x128xf32, #tpu.memory_space<vmem>>, vector<8x128xf32>,
    return
  }
  func.func @transform_0(%arg0: i32) -> (i32, i32) {
    %c0_i32 = arith.constant 0 : i32
    %c0_i32_0 = arith.constant 0 : i32
    return %arg0, %c0_i32 : i32, i32
  }
  func.func @transform_1(%arg0: i32) -> (i32, i32) {
    %c0_i32 = arith.constant 0 : i32
    %c0_i32_0 = arith.constant 0 : i32
    %c0_i32_1 = arith.constant 0 : i32
    return %c0_i32, %c0_i32_0 : i32, i32
  }
  func.func @transform_2(%arg0: i32) -> (i32, i32) {
    %c0_i32 = arith.constant 0 : i32
    %c0_i32_0 = arith.constant 0 : i32
    %c0_i32_1 = arith.constant 0 : i32
    return %c0_i32, %c0_i32_0 : i32, i32
  }
  func.func @transform_3(%arg0: i32) -> (i32, i32) {
    %c0_i32 = arith.constant 0 : i32
    %c0_i32_0 = arith.constant 0 : i32
    %c0_i32_1 = arith.constant 0 : i32
    return %c0_i32, %c0_i32_0 : i32, i32
  }
  func.func @transform_4(%arg0: i32) -> (i32, i32) {
    %c0_i32 = arith.constant 0 : i32
    %c0_i32_0 = arith.constant 0 : i32
    %c0_i32_1 = arith.constant 0 : i32
    return %c0_i32, %c0_i32_0 : i32, i32
  }
  func.func @transform_5(%arg0: i32) -> (i32, i32) {
    %c0_i32 = arith.constant 0 : i32
    %c0_i32_0 = arith.constant 0 : i32
    %c0_i32_1 = arith.constant 0 : i32
    return %c0_i32, %c0_i32_0 : i32, i32
  }
  func.func @transform_6(%arg0: i32) -> (i32, i32) {
    %c0_i32 = arith.constant 0 : i32
    %c0_i32_0 = arith.constant 0 : i32
    %c0_i32_1 = arith.constant 0 : i32
    return %c0_i32, %c0_i32_0 : i32, i32
  }
  func.func @transform_7(%arg0: i32) -> (i32, i32) {
    %c0_i32 = arith.constant 0 : i32
    %c0_i32_0 = arith.constant 0 : i32
    %c0_i32_1 = arith.constant 0 : i32
    return %c0_i32, %c0_i32_0 : i32, i32
  }
  func.func @transform_8(%arg0: i32) -> (i32, i32) {
    %c0_i32 = arith.constant 0 : i32
    %c0_i32_0 = arith.constant 0 : i32
    %c0_i32_1 = arith.constant 0 : i32
    return %c0_i32, %c0_i32_0 : i32, i32
  }
  func.func @transform_9(%arg0: i32) -> (i32, i32) {
    %c0_i32 = arith.constant 0 : i32
    %c0_i32_0 = arith.constant 0 : i32
    return %arg0, %c0_i32 : i32, i32
  }
}

</mosaic_0001>

<bundles_post_ra>
// kernel: three_layer_model_forward.1
= control target key start
LH: loop header
LB: loop body
LE: loop exit
PB: predicated region body
PF: predicated region fallthrough
CT: control target
= control target key end

     0   :  { %14 = vsyncpa [#allocation3], 0  ;;  %s13563_s0 = inlined_call_operand.vmem [shape: bf16[8,3072], index: 0, kind: input, shape index: {}]   ;;  %s13564_s1 = inlined_call_operand.hbm [shape: bf16[3072,768], index: 1, kind: input, shape index: {}]   ;;  %s13565_s2 = inlined_call_operand.hbm [shape: f32[1,768], index: 2, kind: input, shape index: {}]   ;;  %s13566_s3 = inlined_call_operand.hbm [shape: bf16[768,256], index: 3, kind: input, shape index: {}]   ;;  %s13567_s4 = inlined_call_operand.hbm [shape: f32[1,256], index: 4, kind: input, shape index: {}]   ;;  %s13568_s5 = inlined_call_operand.hbm [shape: bf16[256,128], index: 5, kind: input, shape index: {}]   ;;  %s13569_s6 = inlined_call_operand.hbm [shape: f32[1,128], index: 6, kind: input, shape index: {}]   ;;  %s13570_s7 = inlined_call_operand.hbm [shape: bf16[128,128], index: 7, kind: input, shape index: {}]   ;;  %s13571_s8 = inlined_call_operand.hbm [shape: f32[1,128], index: 8, kind: input, shape index: {}]   ;;  %s13572_s9 = inlined_call_operand.vmem [shape: f32[8,128], index: 9, kind: output, shape index: {}]  }
   0x1   :  { %15 = vsyncpa [#allocation5], 0 }
   0x2   :  { %16 = vsyncpa [#allocation8], 0 }
   0x3   :  { %17 = vsyncpa [#allocation11], 0 }
   0x4   :  { %18 = vsyncpa [#allocation14], 0  ;;  %s13142_s30 = smov [#allocation4]   ;;  %s13143_s11 = smov [#allocation7]  }
   0x5   :  { %s39_s10 = sshll.u32 %s13142_s30, 4  ;;  %s61_s12 = sshll.u32 %s13143_s11, 4  ;;  %s40_s10 = int_to_ptr.vmem [resolvable:$true] %s39_s10  ;;  %s62_s12 = int_to_ptr.vmem [resolvable:$true] %s61_s12 }
   0x6   :  { %s12980_s13 = scalar_lea.vmem %s40_s10, 96  ;;  %p12985_p1 = scmp.lt.s32.totalorder %s40_s10, %s40_s10 }
   0x7   :  { %p12981_p0 = scmp.ne.s32.totalorder %s40_s10, %s12980_s13  ;;  %p12986_p2 = scmp.lt.s32.totalorder %s12980_s13, %s12980_s13 }
   0x9   :  { %p12987_p3 = por %p12986_p2, %p12985_p1 }
   0xb   :  { %p12988_p4 = pnand %p12987_p3, %p12981_p0 }
   0xd   :  { %12991 = shalt.err (!%p12988_p4)
}
   0xe   :  { %42 = dma.hbm_to_vmem [thread:$0]  %s13565_s2, 96, %s40_s10, [#allocation5]  }
   0xf   :  { %s13000_s16 = scalar_lea.vmem %s62_s12, 32  ;;  %p13005_p6 = scmp.lt.s32.totalorder %s62_s12, %s62_s12 }
  0x10   :  { %p13001_p5 = scmp.ne.s32.totalorder %s62_s12, %s13000_s16  ;;  %p13006_p7 = scmp.lt.s32.totalorder %s13000_s16, %s13000_s16 }
  0x12   :  { %p13007_p8 = por %p13006_p7, %p13005_p6 }
  0x14   :  { %p13008_p9 = pnand %p13007_p8, %p13001_p5 }
  0x16   :  { %13011 = shalt.err (!%p13008_p9)
}
  0x17   :  { %64 = dma.hbm_to_vmem [thread:$0]  %s13567_s4, 32, %s62_s12, [#allocation8]  }
  0x18   :  { %s13144_s19 = smov [#allocation10]   ;;  %s13145_s21 = smov [#allocation2]  }
  0x19   :  { %s83_s20 = sshll.u32 %s13144_s19, 4  ;;  %s26_s22 = sshll.u32 %s13145_s21, 4  ;;  %s84_s20 = int_to_ptr.vmem [resolvable:$true] %s83_s20  ;;  %s27_s22 = int_to_ptr.vmem [resolvable:$true] %s26_s22 }
  0x1a   :  { %s13020_s23 = scalar_lea.vmem %s84_s20, 16  ;;  %s13024_s2 = scalar_lea.vmem %s84_s20, 32 }
  0x1b   :  { %p13021_p10 = scmp.ne.s32.totalorder %s84_s20, %s13020_s23  ;;  %p13025_p11 = scmp.lt.s32.totalorder %s84_s20, %s84_s20 }
  0x1c   :  { %p13026_p12 = scmp.lt.s32.totalorder %s13024_s2, %s13020_s23 }
  0x1e   :  { %p13027_p13 = por %p13026_p12, %p13025_p11 }
  0x20   :  { %p13028_p0 = pnand %p13027_p13, %p13021_p10 }
  0x22   :  { %13031 = shalt.err (!%p13028_p0)
}
  0x23   :  { %86 = dma.hbm_to_vmem [thread:$0]  %s13569_s6, 16, %s84_s20, [#allocation11]  }
  0x24   :  { %s13040_s26 = scalar_lea.vmem %s27_s22, 147456  ;;  %p13045_p2 = scmp.lt.s32.totalorder %s27_s22, %s27_s22 }
  0x25   :  { %p13041_p1 = scmp.ne.s32.totalorder %s27_s22, %s13040_s26  ;;  %p13046_p3 = scmp.lt.s32.totalorder %s13040_s26, %s13040_s26 }
  0x27   :  { %p13047_p4 = por %p13046_p3, %p13045_p2 }
  0x29   :  { %p13048_p5 = pnand %p13047_p4, %p13041_p1 }
  0x2b   :  { %13051 = shalt.err (!%p13048_p5)
}
  0x2c   :  { %s13146_s4 = smov 384   ;;  %s13147_s27 = smov 24  }
  0x2d   :  { %32 = dma.hbm_to_vmem [thread:$0]  %s13564_s1, 147456, %s27_s22, [#allocation3], %s13146_s4, %s13146_s4, %s13147_s27  }
  0x2e   :  { %s13148_s30 = smov [#allocation6]  }
  0x2f   :  { %s48_s10 = sshll.u32 %s13148_s30, 4  ;;  %s49_s10 = int_to_ptr.vmem [resolvable:$true] %s48_s10 }
  0x30   :  { %s13060_s11 = scalar_lea.vmem %s49_s10, 12288  ;;  %p13065_p7 = scmp.lt.s32.totalorder %s49_s10, %s49_s10 }
  0x31   :  { %p13061_p6 = scmp.ne.s32.totalorder %s49_s10, %s13060_s11  ;;  %p13066_p8 = scmp.lt.s32.totalorder %s13060_s11, %s13060_s11 }
  0x33   :  { %p13067_p9 = por %p13066_p8, %p13065_p7 }
  0x35   :  { %p13068_p10 = pnand %p13067_p9, %p13061_p6 }
  0x37   :  { %13071 = shalt.err (!%p13068_p10)
}
  0x38   :  { %s13149_s6 = smov 128   ;;  %s13150_s12 = smov 8  }
  0x39   :  { %54 = dma.hbm_to_vmem [thread:$0]  %s13566_s3, 12288, %s49_s10, [#allocation5], %s13149_s6, %s13149_s6, %s13150_s12  }
  0x3a   :  { %s13151_s15 = smov [#allocation9]  }
  0x3b   :  { %s70_s16 = sshll.u32 %s13151_s15, 4  ;;  %s71_s16 = int_to_ptr.vmem [resolvable:$true] %s70_s16 }
  0x3c   :  { %s13080_s1 = scalar_lea.vmem %s71_s16, 2048  ;;  %p13085_p12 = scmp.lt.s32.totalorder %s71_s16, %s71_s16 }
  0x3d   :  { %p13081_p11 = scmp.ne.s32.totalorder %s71_s16, %s13080_s1  ;;  %p13086_p13 = scmp.lt.s32.totalorder %s13080_s1, %s13080_s1 }
  0x3f   :  { %p13087_p0 = por %p13086_p13, %p13085_p12 }
  0x41   :  { %p13088_p1 = pnand %p13087_p0, %p13081_p11 }
  0x43   :  { %13091 = shalt.err (!%p13088_p1)
}
  0x44   :  { %s13152_s17 = smov 64   ;;  %s13153_s18 = smov 4  }
  0x45   :  { %76 = dma.hbm_to_vmem [thread:$0]  %s13568_s5, 2048, %s71_s16, [#allocation8], %s13152_s17, %s13152_s17, %s13153_s18  }
  0x46   :  { %s13154_s21 = smov [#allocation12]   ;;  %s13155_s23 = smov [#allocation13]  }
  0x47   :  { %s92_s22 = sshll.u32 %s13154_s21, 4  ;;  %s105_s3 = sshll.u32 %s13155_s23, 4  ;;  %s93_s22 = int_to_ptr.vmem [resolvable:$true] %s92_s22  ;;  %s106_s3 = int_to_ptr.vmem [resolvable:$true] %s105_s3 }
  0x48   :  { %s13100_s2 = scalar_lea.vmem %s93_s22, 1024  ;;  %p13105_p3 = scmp.lt.s32.totalorder %s93_s22, %s93_s22 }
  0x49   :  { %p13101_p2 = scmp.ne.s32.totalorder %s93_s22, %s13100_s2  ;;  %p13106_p4 = scmp.lt.s32.totalorder %s13100_s2, %s13100_s2 }
  0x4b   :  { %p13107_p5 = por %p13106_p4, %p13105_p3 }
  0x4d   :  { %p13108_p6 = pnand %p13107_p5, %p13101_p2 }
  0x4f   :  { %13111 = shalt.err (!%p13108_p6)
}
  0x50   :  { %98 = dma.hbm_to_vmem [thread:$0]  %s13570_s7, 1024, %s93_s22, [#allocation11], %s13152_s17, %s13152_s17, %s13153_s18  }
  0x51   :  { %s13120_s26 = scalar_lea.vmem %s106_s3, 16  ;;  %s13124_s5 = scalar_lea.vmem %s106_s3, 32 }
  0x52   :  { %p13121_p7 = scmp.ne.s32.totalorder %s106_s3, %s13120_s26  ;;  %p13125_p8 = scmp.lt.s32.totalorder %s106_s3, %s106_s3 }
  0x53   :  { %p13126_p9 = scmp.lt.s32.totalorder %s13124_s5, %s13120_s26 }
  0x55   :  { %p13127_p10 = por %p13126_p9, %p13125_p8 }
  0x57   :  { %p13128_p11 = pnand %p13127_p10, %p13121_p7 }
  0x59   :  { %13131 = shalt.err (!%p13128_p11)
}
  0x5a   :  { %108 = dma.hbm_to_vmem [thread:$0]  %s13571_s8, 16, %s106_s3, [#allocation14]  }
  0x5b   :  { %13132 = dma.done.wait [#allocation3], 147456  }
  0x5c   :  { %13133 = vsyncadd [#allocation3], 4294819840 }
  0x5d   :  { %13134 = dma.done.wait [#allocation5], 12384  }
  0x5e   :  { %13135 = vsyncadd [#allocation5], 4294954912 }
  0x5f   :  { %13136 = dma.done.wait [#allocation8], 2080  }
  0x60   :  { %13137 = vsyncadd [#allocation8], 4294965216 }
  0x61   :  { %13138 = dma.done.wait [#allocation11], 1040  }
  0x62   :  { %13139 = vsyncadd [#allocation11], 4294966256 }
  0x63   :  { %13140 = dma.done.wait [#allocation14], 16  }
  0x64   :  { %13141 = vsyncadd [#allocation14], 4294967280  ;;  %v11048_v0 = vld [vmem:[#allocation2 + $0x154] ss:$24 sps:$4 sm:$0xff]   ;;  %v11052_v2 = vld [vmem:[#allocation2 + $0x150] ss:$24 sps:$4 sm:$0xff]  }
  0x65   :  { %v11050_v1 = vld [vmem:[#allocation2 + $0x454] ss:$24 sps:$4 sm:$0xff]   ;;  %7174 = vmatprep.subr.bf16.mxu0 %v11048_v0  ;;  %v11053_v3 = vld [vmem:[#allocation2 + $0x450] ss:$24 sps:$4 sm:$0xff]   ;;  %v11054_v4 = vld [vmem:[#allocation2 + $0x124] ss:$24 sps:$4 sm:$0xff]  }
  0x66   :  { %7215 = vmatprep.subr.bf16.mxu1 %v11050_v1  ;;  %7175 = vmatpush1.bf16.msra.mxu0 %v11052_v2  ;;  %v11056_v5 = vld [vmem:[#allocation2 + $0x424] ss:$24 sps:$4 sm:$0xff]   ;;  %v11058_v6 = vld [vmem:[#allocation2 + $0x120] ss:$24 sps:$4 sm:$0xff]   ;;  %v11060_v8 = vld [vmem:[#allocation2 + $0xf4] ss:$24 sps:$4 sm:$0xff]  }
  0x67   :  { %7216 = vmatpush1.bf16.msra.mxu1 %v11053_v3  ;;  %7176 = vmatprep.subr.bf16.mxu0 %v11054_v4  ;;  %v11059_v7 = vld [vmem:[#allocation2 + $0x420] ss:$24 sps:$4 sm:$0xff]   ;;  %v11062_v9 = vld [vmem:[#allocation2 + $0x3f4] ss:$24 sps:$4 sm:$0xff]   ;;  %v11064_v10 = vld [vmem:[#allocation2 + $0xf0] ss:$24 sps:$4 sm:$0xff]  }
  0x68   :  { %7217 = vmatprep.subr.bf16.mxu1 %v11056_v5  ;;  %v11065_v11 = vld [vmem:[#allocation2 + $0x3f0] ss:$24 sps:$4 sm:$0xff]   ;;  %v11066_v12 = vld [vmem:[#allocation2 + $0xc4] ss:$24 sps:$4 sm:$0xff]   ;;  %v11070_v14 = vld [vmem:[#allocation2 + $0xc0] ss:$24 sps:$4 sm:$0xff]  }
  0x69   :  { %v11068_v13 = vld [vmem:[#allocation2 + $0x3c4] ss:$24 sps:$4 sm:$0xff]   ;;  %v11071_v15 = vld [vmem:[#allocation2 + $0x3c0] ss:$24 sps:$4 sm:$0xff]   ;;  %v11072_v16 = vld [vmem:[#allocation2 + $0x94] ss:$24 sps:$4 sm:$0xff]  }
  0x6a   :  { %7177 = vmatpush1.bf16.msra.mxu0 %v11058_v6  ;;  %v11074_v17 = vld [vmem:[#allocation2 + $0x394] ss:$24 sps:$4 sm:$0xff]   ;;  %v11076_v18 = vld [vmem:[#allocation2 + $0x90] ss:$24 sps:$4 sm:$0xff]   ;;  %v11078_v20 = vld [vmem:[#allocation2 + $0x64] ss:$24 sps:$4 sm:$0xff]  }
  0x6b   :  { %7218 = vmatpush1.bf16.msra.mxu1 %v11059_v7  ;;  %7178 = vmatprep.subr.bf16.mxu0 %v11060_v8  ;;  %v11077_v19 = vld [vmem:[#allocation2 + $0x390] ss:$24 sps:$4 sm:$0xff]   ;;  %v11080_v21 = vld [vmem:[#allocation2 + $0x364] ss:$24 sps:$4 sm:$0xff]   ;;  %v11082_v22 = vld [vmem:[#allocation2 + $0x60] ss:$24 sps:$4 sm:$0xff]  }
  0x6c   :  { %7219 = vmatprep.subr.bf16.mxu1 %v11062_v9  ;;  %v11083_v23 = vld [vmem:[#allocation2 + $0x360] ss:$24 sps:$4 sm:$0xff]   ;;  %v11084_v24 = vld [vmem:[#allocation2 + $0x34] ss:$24 sps:$4 sm:$0xff]   ;;  %v11088_v26 = vld [vmem:[#allocation2 + $0x30] ss:$24 sps:$4 sm:$0xff]  }
  0x6d   :  { %v11086_v25 = vld [vmem:[#allocation2 + $0x334] ss:$24 sps:$4 sm:$0xff]   ;;  %v11089_v27 = vld [vmem:[#allocation2 + $0x330] ss:$24 sps:$4 sm:$0xff]   ;;  %v11090_v28 = vld [vmem:[#allocation2 + $0x4] ss:$24 sps:$4 sm:$0xff]  }
  0x6e   :  { %7179 = vmatpush1.bf16.msra.mxu0 %v11064_v10  ;;  %v11092_v29 = vld [vmem:[#allocation2 + $0x304] ss:$24 sps:$4 sm:$0xff]   ;;  %v11094_v30 = vld [vmem:[#allocation2] ss:$24 sps:$4 sm:$0xff]   ;;  %v11096_v32 = vld [vmem:[#allocation2 + $0x2d4] ss:$24 sps:$4 sm:$0xff]  }
  0x6f   :  { %7220 = vmatpush1.bf16.msra.mxu1 %v11065_v11  ;;  %7180 = vmatprep.subr.bf16.mxu0 %v11066_v12  ;;  %v11095_v31 = vld [vmem:[#allocation2 + $0x300] ss:$24 sps:$4 sm:$0xff]   ;;  %v11098_v33 = vld [vmem:[#allocation2 + $0x5d4] ss:$24 sps:$4 sm:$0xff]   ;;  %v11100_v34 = vld [vmem:[#allocation2 + $0x2d0] ss:$24 sps:$4 sm:$0xff]  }
  0x70   :  { %7221 = vmatprep.subr.bf16.mxu1 %v11068_v13  ;;  %v11101_v35 = vld [vmem:[#allocation2 + $0x5d0] ss:$24 sps:$4 sm:$0xff]   ;;  %v11102_v36 = vld [vmem:[#allocation2 + $0x2a4] ss:$24 sps:$4 sm:$0xff]   ;;  %v11106_v38 = vld [vmem:[#allocation2 + $0x2a0] ss:$24 sps:$4 sm:$0xff]  }
  0x71   :  { %v11104_v37 = vld [vmem:[#allocation2 + $0x5a4] ss:$24 sps:$4 sm:$0xff]   ;;  %v11107_v39 = vld [vmem:[#allocation2 + $0x5a0] ss:$24 sps:$4 sm:$0xff]   ;;  %v11108_v40 = vld [vmem:[#allocation2 + $0x274] ss:$24 sps:$4 sm:$0xff]  }
  0x72   :  { %7181 = vmatpush1.bf16.msra.mxu0 %v11070_v14  ;;  %v11110_v41 = vld [vmem:[#allocation2 + $0x574] ss:$24 sps:$4 sm:$0xff]   ;;  %v11112_v42 = vld [vmem:[#allocation2 + $0x270] ss:$24 sps:$4 sm:$0xff]   ;;  %v11114_v44 = vld [vmem:[#allocation2 + $0x244] ss:$24 sps:$4 sm:$0xff]  }
  0x73   :  { %7222 = vmatpush1.bf16.msra.mxu1 %v11071_v15  ;;  %7182 = vmatprep.subr.bf16.mxu0 %v11072_v16  ;;  %v11113_v43 = vld [vmem:[#allocation2 + $0x570] ss:$24 sps:$4 sm:$0xff]   ;;  %v11116_v45 = vld [vmem:[#allocation2 + $0x544] ss:$24 sps:$4 sm:$0xff]   ;;  %v11118_v49 = vld [vmem:[#allocation2 + $0x240] ss:$24 sps:$4 sm:$0xff]  }
  0x74   :  { %7223 = vmatprep.subr.bf16.mxu1 %v11074_v17  ;;  %v134_v46 = vld [vmem:[%s13563_s0] sm:$0xff]  ;;  %v135_v48 = vld [vmem:[%s13563_s0 + $0x8] sm:$0xff]  ;;  %vm13157_vm0 = vmmov 0  }
  0x75   :  { %v13235_v47 = vcombine.high %v134_v46, %v134_v46  ;;  %v11119_v50 = vld [vmem:[#allocation2 + $0x540] ss:$24 sps:$4 sm:$0xff]   ;;  %v13240_v51 = vcombine.high %v135_v48, %v135_v48  ;;  %v11120_v52 = vld [vmem:[#allocation2 + $0x214] ss:$24 sps:$4 sm:$0xff]   ;;  %v11124_v54 = vld [vmem:[#allocation2 + $0x210] ss:$24 sps:$4 sm:$0xff]   ;;  %v13244_v6 = vcombine.low %v134_v46, %v134_v46  ;;  %v13246_v7 = vcombine.low %v135_v48, %v135_v48 }
  0x76   :  { %7183 = vmatpush1.bf16.msra.mxu0 %v11076_v18  ;;  %v11122_v53 = vld [vmem:[#allocation2 + $0x514] ss:$24 sps:$4 sm:$0xff]   ;;  %v11125_v55 = vld [vmem:[#allocation2 + $0x510] ss:$24 sps:$4 sm:$0xff]   ;;  %v11126_v56 = vld [vmem:[#allocation2 + $0x1e4] ss:$24 sps:$4 sm:$0xff]  }
  0x77   :  { %7224 = vmatpush1.bf16.msra.mxu1 %v11077_v19  ;;  %7184 = vmatprep.subr.bf16.mxu0 %v11078_v20  ;;  %v11128_v57 = vld [vmem:[#allocation2 + $0x4e4] ss:$24 sps:$4 sm:$0xff]   ;;  %v11130_v58 = vld [vmem:[#allocation2 + $0x1e0] ss:$24 sps:$4 sm:$0xff]   ;;  %v11132_v60 = vld [vmem:[#allocation2 + $0x1b4] ss:$24 sps:$4 sm:$0xff]  }
  0x78   :  { %7225 = vmatprep.subr.bf16.mxu1 %v11080_v21  ;;  %7206 = vmatprep.mubr.bf16.mxu0 %v13235_v47  ;;  %v11131_v59 = vld [vmem:[#allocation2 + $0x4e0] ss:$24 sps:$4 sm:$0xff]   ;;  %v11134_v61 = vld [vmem:[#allocation2 + $0x4b4] ss:$24 sps:$4 sm:$0xff]   ;;  %v11136_v62 = vld [vmem:[#allocation2 + $0x1b0] ss:$24 sps:$4 sm:$0xff]  }
  0x79   :  { %7247 = vmatprep.mubr.bf16.mxu1 %v13240_v51  ;;  %v11137_v63 = vld [vmem:[#allocation2 + $0x4b0] ss:$24 sps:$4 sm:$0xff]   ;;  %v11138_v0 = vld [vmem:[#allocation2 + $0x184] ss:$24 sps:$4 sm:$0xff]   ;;  %v11142_v2 = vld [vmem:[#allocation2 + $0x180] ss:$24 sps:$4 sm:$0xff]  }
  0x7a   :  { %7185 = vmatpush1.bf16.msra.mxu0 %v11082_v22  ;;  %v11140_v1 = vld [vmem:[#allocation2 + $0x484] ss:$24 sps:$4 sm:$0xff]   ;;  %v11143_v3 = vld [vmem:[#allocation2 + $0x480] ss:$24 sps:$4 sm:$0xff]   ;;  %v11150_v4 = vld [vmem:[#allocation2 + $0x754] ss:$24 sps:$4 sm:$0xff]  }
  0x7b   :  { %7226 = vmatpush1.bf16.msra.mxu1 %v11083_v23  ;;  %7186 = vmatprep.subr.bf16.mxu0 %v11084_v24  ;;  %v11153_v5 = vld [vmem:[#allocation2 + $0xa54] ss:$24 sps:$4 sm:$0xff]   ;;  %v11148_v8 = vld [vmem:[#allocation2 + $0x750] ss:$24 sps:$4 sm:$0xff]   ;;  %v11156_v10 = vld [vmem:[#allocation2 + $0x724] ss:$24 sps:$4 sm:$0xff]  }
  0x7c   :  { %7227 = vmatprep.subr.bf16.mxu1 %v11086_v25  ;;  %v11151_v9 = vld [vmem:[#allocation2 + $0xa50] ss:$24 sps:$4 sm:$0xff]   ;;  %v11159_v11 = vld [vmem:[#allocation2 + $0xa24] ss:$24 sps:$4 sm:$0xff]   ;;  %v11154_v12 = vld [vmem:[#allocation2 + $0x720] ss:$24 sps:$4 sm:$0xff]  }
  0x7d   :  { %v11157_v13 = vld [vmem:[#allocation2 + $0xa20] ss:$24 sps:$4 sm:$0xff]   ;;  %v11162_v14 = vld [vmem:[#allocation2 + $0x6f4] ss:$24 sps:$4 sm:$0xff]   ;;  %v11160_v16 = vld [vmem:[#allocation2 + $0x6f0] ss:$24 sps:$4 sm:$0xff]  }
  0x7e   :  { %7187 = vmatpush1.bf16.msra.mxu0 %v11088_v26  ;;  %v11165_v15 = vld [vmem:[#allocation2 + $0x9f4] ss:$24 sps:$4 sm:$0xff]   ;;  %v11163_v17 = vld [vmem:[#allocation2 + $0x9f0] ss:$24 sps:$4 sm:$0xff]   ;;  %v11168_v18 = vld [vmem:[#allocation2 + $0x6c4] ss:$24 sps:$4 sm:$0xff]  }
  0x7f   :  { %7228 = vmatpush1.bf16.msra.mxu1 %v11089_v27  ;;  %7188 = vmatprep.subr.bf16.mxu0 %v11090_v28  ;;  %v11171_v19 = vld [vmem:[#allocation2 + $0x9c4] ss:$24 sps:$4 sm:$0xff]   ;;  %v11166_v20 = vld [vmem:[#allocation2 + $0x6c0] ss:$24 sps:$4 sm:$0xff]   ;;  %v11174_v22 = vld [vmem:[#allocation2 + $0x694] ss:$24 sps:$4 sm:$0xff]  }
  0x80   :  { %7229 = vmatprep.subr.bf16.mxu1 %v11092_v29  ;;  %v11169_v21 = vld [vmem:[#allocation2 + $0x9c0] ss:$24 sps:$4 sm:$0xff]   ;;  %v11177_v23 = vld [vmem:[#allocation2 + $0x994] ss:$24 sps:$4 sm:$0xff]   ;;  %v11172_v24 = vld [vmem:[#allocation2 + $0x690] ss:$24 sps:$4 sm:$0xff]  }
  0x81   :  { %v11175_v25 = vld [vmem:[#allocation2 + $0x990] ss:$24 sps:$4 sm:$0xff]   ;;  %v11180_v26 = vld [vmem:[#allocation2 + $0x664] ss:$24 sps:$4 sm:$0xff]   ;;  %v11178_v28 = vld [vmem:[#allocation2 + $0x660] ss:$24 sps:$4 sm:$0xff]  }
  0x82   :  { %7189 = vmatpush1.bf16.msra.mxu0 %v11094_v30  ;;  %v11183_v27 = vld [vmem:[#allocation2 + $0x964] ss:$24 sps:$4 sm:$0xff]   ;;  %v11181_v29 = vld [vmem:[#allocation2 + $0x960] ss:$24 sps:$4 sm:$0xff]   ;;  %v11186_v30 = vld [vmem:[#allocation2 + $0x634] ss:$24 sps:$4 sm:$0xff]  }
  0x83   :  { %7230 = vmatpush1.bf16.msra.mxu1 %v11095_v31  ;;  %7190 = vmatprep.subr.bf16.mxu0 %v11096_v32  ;;  %v11189_v31 = vld [vmem:[#allocation2 + $0x934] ss:$24 sps:$4 sm:$0xff]   ;;  %v11204_v46 = vld [vmem:[#allocation2 + $0x8a4] ss:$24 sps:$4 sm:$0xff]  }
  0x84   :  { %7231 = vmatprep.subr.bf16.mxu1 %v11098_v33  ;;  %v13253_v32 = vld [vmem:[%s13563_s0 + $0x10] sm:$0xff]  ;;  %v13258_v33 = vld [vmem:[%s13563_s0 + $0x18] sm:$0xff] }
  0x85   :  { %v11207_v48 = vld [vmem:[#allocation2 + $0xba4] ss:$24 sps:$4 sm:$0xff]  }
  0x86   :  { %7191 = vmatpush2.bf16.msra.mxu0 %v11100_v34  ;;  %v11184_v34 = vld [vmem:[#allocation2 + $0x630] ss:$24 sps:$4 sm:$0xff]  }
  0x87   :  { %7232 = vmatpush2.bf16.msra.mxu1 %v11101_v35  ;;  %7192 = vmatprep.subr.bf16.mxu0 %v11102_v36  ;;  %v11187_v35 = vld [vmem:[#allocation2 + $0x930] ss:$24 sps:$4 sm:$0xff]   ;;  %v13262_v36 = vcombine.high %v13253_v32, %v13253_v32 }
  0x88   :  { %7233 = vmatprep.subr.bf16.mxu1 %v11104_v37  ;;  %v13266_v37 = vcombine.high %v13258_v33, %v13258_v33 }
  0x8a   :  { %7193 = vmatpush2.bf16.msra.mxu0 %v11106_v38  ;;  %v11192_v38 = vld [vmem:[#allocation2 + $0x604] ss:$24 sps:$4 sm:$0xff]  }
  0x8b   :  { %7234 = vmatpush2.bf16.msra.mxu1 %v11107_v39  ;;  %7194 = vmatprep.subr.bf16.mxu0 %v11108_v40  ;;  %v11195_v39 = vld [vmem:[#allocation2 + $0x904] ss:$24 sps:$4 sm:$0xff]   ;;  %v11190_v40 = vld [vmem:[#allocation2 + $0x600] ss:$24 sps:$4 sm:$0xff]  }
  0x8c   :  { %7235 = vmatprep.subr.bf16.mxu1 %v11110_v41  ;;  %v11193_v41 = vld [vmem:[#allocation2 + $0x900] ss:$24 sps:$4 sm:$0xff]  }
  0x8e   :  { %7195 = vmatpush2.bf16.msra.mxu0 %v11112_v42  ;;  %v11198_v42 = vld [vmem:[#allocation2 + $0x8d4] ss:$24 sps:$4 sm:$0xff]  }
  0x8f   :  { %7236 = vmatpush2.bf16.msra.mxu1 %v11113_v43  ;;  %7196 = vmatprep.subr.bf16.mxu0 %v11114_v44  ;;  %v11201_v43 = vld [vmem:[#allocation2 + $0xbd4] ss:$24 sps:$4 sm:$0xff]   ;;  %v11196_v44 = vld [vmem:[#allocation2 + $0x8d0] ss:$24 sps:$4 sm:$0xff]  }
  0x90   :  { %7237 = vmatprep.subr.bf16.mxu1 %v11116_v45  ;;  %v11199_v45 = vld [vmem:[#allocation2 + $0xbd0] ss:$24 sps:$4 sm:$0xff]  }
  0x92   :  { %7197 = vmatpush2.bf16.msra.mxu0 %v11118_v49  ;;  %v11202_v49 = vld [vmem:[#allocation2 + $0x8a0] ss:$24 sps:$4 sm:$0xff]  }
  0x93   :  { %7238 = vmatpush2.bf16.msra.mxu1 %v11119_v50  ;;  %7198 = vmatprep.subr.bf16.mxu0 %v11120_v52  ;;  %v11205_v50 = vld [vmem:[#allocation2 + $0xba0] ss:$24 sps:$4 sm:$0xff]   ;;  %v11210_v52 = vld [vmem:[#allocation2 + $0x874] ss:$24 sps:$4 sm:$0xff]  }
  0x94   :  { %7239 = vmatprep.subr.bf16.mxu1 %v11122_v53  ;;  %v11213_v53 = vld [vmem:[#allocation2 + $0xb74] ss:$24 sps:$4 sm:$0xff]  }
  0x96   :  { %7199 = vmatpush2.bf16.msra.mxu0 %v11124_v54  ;;  %v11208_v54 = vld [vmem:[#allocation2 + $0x870] ss:$24 sps:$4 sm:$0xff]  }
  0x97   :  { %7240 = vmatpush2.bf16.msra.mxu1 %v11125_v55  ;;  %7200 = vmatprep.subr.bf16.mxu0 %v11126_v56  ;;  %v11211_v55 = vld [vmem:[#allocation2 + $0xb70] ss:$24 sps:$4 sm:$0xff]   ;;  %v11216_v56 = vld [vmem:[#allocation2 + $0x844] ss:$24 sps:$4 sm:$0xff]  }
  0x98   :  { %7241 = vmatprep.subr.bf16.mxu1 %v11128_v57  ;;  %v11219_v57 = vld [vmem:[#allocation2 + $0xb44] ss:$24 sps:$4 sm:$0xff]  }
  0x9a   :  { %7201 = vmatpush2.bf16.msra.mxu0 %v11130_v58  ;;  %v11214_v58 = vld [vmem:[#allocation2 + $0x840] ss:$24 sps:$4 sm:$0xff]  }
  0x9b   :  { %7242 = vmatpush2.bf16.msra.mxu1 %v11131_v59  ;;  %7202 = vmatprep.subr.bf16.mxu0 %v11132_v60  ;;  %v11217_v59 = vld [vmem:[#allocation2 + $0xb40] ss:$24 sps:$4 sm:$0xff]   ;;  %v11222_v60 = vld [vmem:[#allocation2 + $0x814] ss:$24 sps:$4 sm:$0xff]  }
  0x9c   :  { %7243 = vmatprep.subr.bf16.mxu1 %v11134_v61  ;;  %v11225_v61 = vld [vmem:[#allocation2 + $0xb14] ss:$24 sps:$4 sm:$0xff]  }
  0x9e   :  { %7203 = vmatpush2.bf16.msra.mxu0 %v11136_v62  ;;  %v11220_v62 = vld [vmem:[#allocation2 + $0x810] ss:$24 sps:$4 sm:$0xff]  }
  0x9f   :  { %7244 = vmatpush2.bf16.msra.mxu1 %v11137_v63  ;;  %7204 = vmatprep.subr.bf16.mxu0 %v11138_v0  ;;  %v11223_v63 = vld [vmem:[#allocation2 + $0xb10] ss:$24 sps:$4 sm:$0xff]   ;;  %v11228_v0 = vld [vmem:[#allocation2 + $0x7e4] ss:$24 sps:$4 sm:$0xff]  }
  0xa0   :  { %7245 = vmatprep.subr.bf16.mxu1 %v11140_v1  ;;  %v11231_v1 = vld [vmem:[#allocation2 + $0xae4] ss:$24 sps:$4 sm:$0xff]  }
  0xa2   :  { %7205 = vmatpush2.bf16.msra.mxu0 %v11142_v2  ;;  %v11226_v2 = vld [vmem:[#allocation2 + $0x7e0] ss:$24 sps:$4 sm:$0xff]  }
  0xa3   :  { %7246 = vmatpush2.bf16.msra.mxu1 %v11143_v3  ;;  %7256 = vmatprep.subr.bf16.mxu0 %v11150_v4  ;;  %v11229_v3 = vld [vmem:[#allocation2 + $0xae0] ss:$24 sps:$4 sm:$0xff]   ;;  %v11234_v4 = vld [vmem:[#allocation2 + $0x7b4] ss:$24 sps:$4 sm:$0xff]  }
  0xa4   :  { %7297 = vmatprep.subr.bf16.mxu1 %v11153_v5  ;;  %v11237_v5 = vld [vmem:[#allocation2 + $0xab4] ss:$24 sps:$4 sm:$0xff]  }
  0xa5   :  { %7207 = vmatmul.mubr.bf16.vlgmr.msra.gmra.mxu0 %v13244_v6 }
  0xa6   :  { %7248 = vmatmul.mubr.bf16.vlgmr.msra.gmra.mxu1 %v13246_v7  ;;  %7257 = vmatpush1.bf16.msra.mxu0 %v11148_v8  ;;  %v11232_v8 = vld [vmem:[#allocation2 + $0x7b0] ss:$24 sps:$4 sm:$0xff]  }
  0xa7   :  { %7298 = vmatpush1.bf16.msra.mxu1 %v11151_v9  ;;  %7258 = vmatprep.subr.bf16.mxu0 %v11156_v10  ;;  %v11235_v9 = vld [vmem:[#allocation2 + $0xab0] ss:$24 sps:$4 sm:$0xff]   ;;  %v11240_v10 = vld [vmem:[#allocation2 + $0x784] ss:$24 sps:$4 sm:$0xff]  }
  0xa8   :  { %7299 = vmatprep.subr.bf16.mxu1 %v11159_v11  ;;  %7288 = vmatprep.mubr.bf16.mxu0 %v13262_v36  ;;  %v11243_v11 = vld [vmem:[#allocation2 + $0xa84] ss:$24 sps:$4 sm:$0xff]  }
  0xa9   :  { %7329 = vmatprep.mubr.bf16.mxu1 %v13266_v37 }
  0xaa   :  { %7259 = vmatpush1.bf16.msra.mxu0 %v11154_v12  ;;  %v11238_v12 = vld [vmem:[#allocation2 + $0x780] ss:$24 sps:$4 sm:$0xff]  }
  0xab   :  { %7300 = vmatpush1.bf16.msra.mxu1 %v11157_v13  ;;  %7260 = vmatprep.subr.bf16.mxu0 %v11162_v14  ;;  %v11241_v13 = vld [vmem:[#allocation2 + $0xa80] ss:$24 sps:$4 sm:$0xff]   ;;  %v11250_v14 = vld [vmem:[#allocation2 + $0xd54] ss:$24 sps:$4 sm:$0xff]  }
  0xac   :  { %7301 = vmatprep.subr.bf16.mxu1 %v11165_v15  ;;  %v11253_v15 = vld [vmem:[#allocation2 + $0x1054] ss:$24 sps:$4 sm:$0xff]  }
  0xae   :  { %7261 = vmatpush1.bf16.msra.mxu0 %v11160_v16  ;;  %v13272_v16 = vcombine.low %v13253_v32, %v13253_v32  ;;  %v11268_v32 = vld [vmem:[#allocation2 + $0xcc4] ss:$24 sps:$4 sm:$0xff]  }
  0xaf   :  { %7302 = vmatpush1.bf16.msra.mxu1 %v11163_v17  ;;  %7262 = vmatprep.subr.bf16.mxu0 %v11168_v18  ;;  %v13276_v17 = vcombine.low %v13258_v33, %v13258_v33  ;;  %v11248_v18 = vld [vmem:[#allocation2 + $0xd50] ss:$24 sps:$4 sm:$0xff]   ;;  %v11271_v33 = vld [vmem:[#allocation2 + $0xfc4] ss:$24 sps:$4 sm:$0xff]  }
  0xb0   :  { %7303 = vmatprep.subr.bf16.mxu1 %v11171_v19  ;;  %v11251_v19 = vld [vmem:[#allocation2 + $0x1050] ss:$24 sps:$4 sm:$0xff]  }
  0xb2   :  { %7263 = vmatpush1.bf16.msra.mxu0 %v11166_v20  ;;  %v11256_v20 = vld [vmem:[#allocation2 + $0xd24] ss:$24 sps:$4 sm:$0xff]  }
  0xb3   :  { %7304 = vmatpush1.bf16.msra.mxu1 %v11169_v21  ;;  %7264 = vmatprep.subr.bf16.mxu0 %v11174_v22  ;;  %v11259_v21 = vld [vmem:[#allocation2 + $0x1024] ss:$24 sps:$4 sm:$0xff]  }
  0xb4   :  { %7305 = vmatprep.subr.bf16.mxu1 %v11177_v23  ;;  %v13281_v22 = vld [vmem:[%s13563_s0 + $0x20] sm:$0xff]  ;;  %v13286_v23 = vld [vmem:[%s13563_s0 + $0x28] sm:$0xff] }
  0xb6   :  { %7265 = vmatpush1.bf16.msra.mxu0 %v11172_v24  ;;  %v13290_v24 = vcombine.high %v13281_v22, %v13281_v22 }
  0xb7   :  { %7306 = vmatpush1.bf16.msra.mxu1 %v11175_v25  ;;  %7266 = vmatprep.subr.bf16.mxu0 %v11180_v26  ;;  %v13294_v25 = vcombine.high %v13286_v23, %v13286_v23  ;;  %v11254_v26 = vld [vmem:[#allocation2 + $0xd20] ss:$24 sps:$4 sm:$0xff]  }
  0xb8   :  { %7307 = vmatprep.subr.bf16.mxu1 %v11183_v27  ;;  %v11257_v27 = vld [vmem:[#allocation2 + $0x1020] ss:$24 sps:$4 sm:$0xff]  }
  0xba   :  { %7267 = vmatpush1.bf16.msra.mxu0 %v11178_v28  ;;  %v11262_v28 = vld [vmem:[#allocation2 + $0xcf4] ss:$24 sps:$4 sm:$0xff]  }
  0xbb   :  { %7308 = vmatpush1.bf16.msra.mxu1 %v11181_v29  ;;  %7268 = vmatprep.subr.bf16.mxu0 %v11186_v30  ;;  %v11265_v29 = vld [vmem:[#allocation2 + $0xff4] ss:$24 sps:$4 sm:$0xff]   ;;  %v11260_v30 = vld [vmem:[#allocation2 + $0xcf0] ss:$24 sps:$4 sm:$0xff]  }
  0xbc   :  { %7309 = vmatprep.subr.bf16.mxu1 %v11189_v31  ;;  %v11263_v31 = vld [vmem:[#allocation2 + $0xff0] ss:$24 sps:$4 sm:$0xff]  }
  0xbe   :  { %7269 = vmatpush1.bf16.msra.mxu0 %v11184_v34  ;;  %v11266_v34 = vld [vmem:[#allocation2 + $0xcc0] ss:$24 sps:$4 sm:$0xff]  }
  0xbf   :  { %7310 = vmatpush1.bf16.msra.mxu1 %v11187_v35  ;;  %7270 = vmatprep.subr.bf16.mxu0 %v11192_v38  ;;  %v11269_v35 = vld [vmem:[#allocation2 + $0xfc0] ss:$24 sps:$4 sm:$0xff]   ;;  %v11274_v38 = vld [vmem:[#allocation2 + $0xc94] ss:$24 sps:$4 sm:$0xff]  }
  0xc0   :  { %7311 = vmatprep.subr.bf16.mxu1 %v11195_v39  ;;  %v11277_v39 = vld [vmem:[#allocation2 + $0xf94] ss:$24 sps:$4 sm:$0xff]  }
  0xc2   :  { %7271 = vmatpush1.bf16.msra.mxu0 %v11190_v40  ;;  %v11272_v40 = vld [vmem:[#allocation2 + $0xc90] ss:$24 sps:$4 sm:$0xff]  }
  0xc3   :  { %7312 = vmatpush1.bf16.msra.mxu1 %v11193_v41  ;;  %7272 = vmatprep.subr.bf16.mxu0 %v11198_v42  ;;  %v11275_v41 = vld [vmem:[#allocation2 + $0xf90] ss:$24 sps:$4 sm:$0xff]   ;;  %v11280_v42 = vld [vmem:[#allocation2 + $0xc64] ss:$24 sps:$4 sm:$0xff]  }
  0xc4   :  { %7313 = vmatprep.subr.bf16.mxu1 %v11201_v43  ;;  %v11283_v43 = vld [vmem:[#allocation2 + $0xf64] ss:$24 sps:$4 sm:$0xff]  }
  0xc6   :  { %7273 = vmatpush2.bf16.msra.mxu0 %v11196_v44  ;;  %v11278_v44 = vld [vmem:[#allocation2 + $0xc60] ss:$24 sps:$4 sm:$0xff]  }
  0xc7   :  { %7314 = vmatpush2.bf16.msra.mxu1 %v11199_v45  ;;  %7274 = vmatprep.subr.bf16.mxu0 %v11204_v46  ;;  %v11281_v45 = vld [vmem:[#allocation2 + $0xf60] ss:$24 sps:$4 sm:$0xff]   ;;  %v11286_v46 = vld [vmem:[#allocation2 + $0xc34] ss:$24 sps:$4 sm:$0xff]  }
  0xc8   :  { %7315 = vmatprep.subr.bf16.mxu1 %v11207_v48  ;;  %v11289_v48 = vld [vmem:[#allocation2 + $0xf34] ss:$24 sps:$4 sm:$0xff]  }
  0xca   :  { %7275 = vmatpush2.bf16.msra.mxu0 %v11202_v49  ;;  %v11284_v49 = vld [vmem:[#allocation2 + $0xc30] ss:$24 sps:$4 sm:$0xff]  }
  0xcb   :  { %7316 = vmatpush2.bf16.msra.mxu1 %v11205_v50  ;;  %7276 = vmatprep.subr.bf16.mxu0 %v11210_v52  ;;  %v11287_v50 = vld [vmem:[#allocation2 + $0xf30] ss:$24 sps:$4 sm:$0xff]   ;;  %v11292_v52 = vld [vmem:[#allocation2 + $0xc04] ss:$24 sps:$4 sm:$0xff]  }
  0xcc   :  { %7317 = vmatprep.subr.bf16.mxu1 %v11213_v53  ;;  %v11295_v53 = vld [vmem:[#allocation2 + $0xf04] ss:$24 sps:$4 sm:$0xff]  }
  0xce   :  { %7277 = vmatpush2.bf16.msra.mxu0 %v11208_v54  ;;  %v11290_v54 = vld [vmem:[#allocation2 + $0xc00] ss:$24 sps:$4 sm:$0xff]  }
  0xcf   :  { %7318 = vmatpush2.bf16.msra.mxu1 %v11211_v55  ;;  %7278 = vmatprep.subr.bf16.mxu0 %v11216_v56  ;;  %v11293_v55 = vld [vmem:[#allocation2 + $0xf00] ss:$24 sps:$4 sm:$0xff]   ;;  %v11298_v56 = vld [vmem:[#allocation2 + $0xed4] ss:$24 sps:$4 sm:$0xff]  }
  0xd0   :  { %7319 = vmatprep.subr.bf16.mxu1 %v11219_v57  ;;  %v11301_v57 = vld [vmem:[#allocation2 + $0x11d4] ss:$24 sps:$4 sm:$0xff]  }
  0xd2   :  { %7279 = vmatpush2.bf16.msra.mxu0 %v11214_v58  ;;  %v11296_v58 = vld [vmem:[#allocation2 + $0xed0] ss:$24 sps:$4 sm:$0xff]  }
  0xd3   :  { %7320 = vmatpush2.bf16.msra.mxu1 %v11217_v59  ;;  %7280 = vmatprep.subr.bf16.mxu0 %v11222_v60  ;;  %v11299_v59 = vld [vmem:[#allocation2 + $0x11d0] ss:$24 sps:$4 sm:$0xff]   ;;  %v11304_v60 = vld [vmem:[#allocation2 + $0xea4] ss:$24 sps:$4 sm:$0xff]  }
  0xd4   :  { %7321 = vmatprep.subr.bf16.mxu1 %v11225_v61  ;;  %v11307_v61 = vld [vmem:[#allocation2 + $0x11a4] ss:$24 sps:$4 sm:$0xff]  }
  0xd6   :  { %7281 = vmatpush2.bf16.msra.mxu0 %v11220_v62  ;;  %v11302_v62 = vld [vmem:[#allocation2 + $0xea0] ss:$24 sps:$4 sm:$0xff]  }
  0xd7   :  { %7322 = vmatpush2.bf16.msra.mxu1 %v11223_v63  ;;  %7282 = vmatprep.subr.bf16.mxu0 %v11228_v0  ;;  %v11305_v63 = vld [vmem:[#allocation2 + $0x11a0] ss:$24 sps:$4 sm:$0xff]   ;;  %v11310_v0 = vld [vmem:[#allocation2 + $0xe74] ss:$24 sps:$4 sm:$0xff]  }
  0xd8   :  { %7323 = vmatprep.subr.bf16.mxu1 %v11231_v1  ;;  %v11313_v1 = vld [vmem:[#allocation2 + $0x1174] ss:$24 sps:$4 sm:$0xff]  }
  0xda   :  { %7283 = vmatpush2.bf16.msra.mxu0 %v11226_v2  ;;  %v11308_v2 = vld [vmem:[#allocation2 + $0xe70] ss:$24 sps:$4 sm:$0xff]  }
  0xdb   :  { %7324 = vmatpush2.bf16.msra.mxu1 %v11229_v3  ;;  %7284 = vmatprep.subr.bf16.mxu0 %v11234_v4  ;;  %v11311_v3 = vld [vmem:[#allocation2 + $0x1170] ss:$24 sps:$4 sm:$0xff]   ;;  %v11316_v4 = vld [vmem:[#allocation2 + $0xe44] ss:$24 sps:$4 sm:$0xff]  }
  0xdc   :  { %7325 = vmatprep.subr.bf16.mxu1 %v11237_v5  ;;  %v11319_v5 = vld [vmem:[#allocation2 + $0x1144] ss:$24 sps:$4 sm:$0xff]  }
  0xde   :  { %7285 = vmatpush2.bf16.msra.mxu0 %v11232_v8  ;;  %v11314_v8 = vld [vmem:[#allocation2 + $0xe40] ss:$24 sps:$4 sm:$0xff]  }
  0xdf   :  { %7326 = vmatpush2.bf16.msra.mxu1 %v11235_v9  ;;  %7286 = vmatprep.subr.bf16.mxu0 %v11240_v10  ;;  %v11317_v9 = vld [vmem:[#allocation2 + $0x1140] ss:$24 sps:$4 sm:$0xff]   ;;  %v11322_v10 = vld [vmem:[#allocation2 + $0xe14] ss:$24 sps:$4 sm:$0xff]  }
  0xe0   :  { %7327 = vmatprep.subr.bf16.mxu1 %v11243_v11  ;;  %v11325_v11 = vld [vmem:[#allocation2 + $0x1114] ss:$24 sps:$4 sm:$0xff]  }
  0xe2   :  { %7287 = vmatpush2.bf16.msra.mxu0 %v11238_v12  ;;  %v11320_v12 = vld [vmem:[#allocation2 + $0xe10] ss:$24 sps:$4 sm:$0xff]  }
  0xe3   :  { %7328 = vmatpush2.bf16.msra.mxu1 %v11241_v13  ;;  %7338 = vmatprep.subr.bf16.mxu0 %v11250_v14  ;;  %v11323_v13 = vld [vmem:[#allocation2 + $0x1110] ss:$24 sps:$4 sm:$0xff]   ;;  %v11328_v14 = vld [vmem:[#allocation2 + $0xde4] ss:$24 sps:$4 sm:$0xff]  }
  0xe4   :  { %7379 = vmatprep.subr.bf16.mxu1 %v11253_v15  ;;  %v11331_v15 = vld [vmem:[#allocation2 + $0x10e4] ss:$24 sps:$4 sm:$0xff]  }
  0xe5   :  { %7289 = vmatmul.mubr.bf16.vlgmr.msra.gmra.mxu0 %v13272_v16 }
  0xe6   :  { %7330 = vmatmul.mubr.bf16.vlgmr.msra.gmra.mxu1 %v13276_v17  ;;  %7339 = vmatpush1.bf16.msra.mxu0 %v11248_v18  ;;  %v11326_v18 = vld [vmem:[#allocation2 + $0xde0] ss:$24 sps:$4 sm:$0xff]  }
  0xe7   :  { %7380 = vmatpush1.bf16.msra.mxu1 %v11251_v19  ;;  %7340 = vmatprep.subr.bf16.mxu0 %v11256_v20  ;;  %v11329_v19 = vld [vmem:[#allocation2 + $0x10e0] ss:$24 sps:$4 sm:$0xff]   ;;  %v11334_v20 = vld [vmem:[#allocation2 + $0xdb4] ss:$24 sps:$4 sm:$0xff]  }
  0xe8   :  { %7381 = vmatprep.subr.bf16.mxu1 %v11259_v21  ;;  %7370 = vmatprep.mubr.bf16.mxu0 %v13290_v24  ;;  %v11337_v21 = vld [vmem:[#allocation2 + $0x10b4] ss:$24 sps:$4 sm:$0xff]  }
  0xe9   :  { %7411 = vmatprep.mubr.bf16.mxu1 %v13294_v25 }
  0xea   :  { %7341 = vmatpush1.bf16.msra.mxu0 %v11254_v26  ;;  %v11332_v26 = vld [vmem:[#allocation2 + $0xdb0] ss:$24 sps:$4 sm:$0xff]  }
  0xeb   :  { %7382 = vmatpush1.bf16.msra.mxu1 %v11257_v27  ;;  %7342 = vmatprep.subr.bf16.mxu0 %v11262_v28  ;;  %v11335_v27 = vld [vmem:[#allocation2 + $0x10b0] ss:$24 sps:$4 sm:$0xff]   ;;  %v11340_v28 = vld [vmem:[#allocation2 + $0xd84] ss:$24 sps:$4 sm:$0xff]  }
  0xec   :  { %7383 = vmatprep.subr.bf16.mxu1 %v11265_v29  ;;  %v11343_v29 = vld [vmem:[#allocation2 + $0x1084] ss:$24 sps:$4 sm:$0xff]  }
  0xee   :  { %7343 = vmatpush1.bf16.msra.mxu0 %v11260_v30  ;;  %v11338_v30 = vld [vmem:[#allocation2 + $0xd80] ss:$24 sps:$4 sm:$0xff]  }
  0xef   :  { %7384 = vmatpush1.bf16.msra.mxu1 %v11263_v31  ;;  %7344 = vmatprep.subr.bf16.mxu0 %v11268_v32  ;;  %v11341_v31 = vld [vmem:[#allocation2 + $0x1080] ss:$24 sps:$4 sm:$0xff]   ;;  %v11350_v32 = vld [vmem:[#allocation2 + $0x1354] ss:$24 sps:$4 sm:$0xff]  }
  0xf0   :  { %7385 = vmatprep.subr.bf16.mxu1 %v11271_v33  ;;  %v11353_v33 = vld [vmem:[#allocation2 + $0x1654] ss:$24 sps:$4 sm:$0xff]  }
  0xf2   :  { %7345 = vmatpush1.bf16.msra.mxu0 %v11266_v34  ;;  %v11348_v34 = vld [vmem:[#allocation2 + $0x1350] ss:$24 sps:$4 sm:$0xff]  }
  0xf3   :  { %7386 = vmatpush1.bf16.msra.mxu1 %v11269_v35  ;;  %7346 = vmatprep.subr.bf16.mxu0 %v11274_v38  ;;  %v13303_v35 = vld [vmem:[%s13563_s0 + $0x30] sm:$0xff]  ;;  %v13307_v38 = vcombine.low %v13281_v22, %v13281_v22 }
  0xf4   :  { %7387 = vmatprep.subr.bf16.mxu1 %v11277_v39  ;;  %v13311_v39 = vcombine.low %v13286_v23, %v13286_v23  ;;  %v13320_v22 = vcombine.high %v13303_v35, %v13303_v35 }
  0xf6   :  { %7347 = vmatpush1.bf16.msra.mxu0 %v11272_v40  ;;  %v13316_v40 = vld [vmem:[%s13563_s0 + $0x38] sm:$0xff] }
  0xf7   :  { %7388 = vmatpush1.bf16.msra.mxu1 %v11275_v41  ;;  %7348 = vmatprep.subr.bf16.mxu0 %v11280_v42  ;;  %v11351_v41 = vld [vmem:[#allocation2 + $0x1650] ss:$24 sps:$4 sm:$0xff]   ;;  %v11356_v42 = vld [vmem:[#allocation2 + $0x1324] ss:$24 sps:$4 sm:$0xff]   ;;  %v13324_v23 = vcombine.high %v13316_v40, %v13316_v40 }
  0xf8   :  { %7389 = vmatprep.subr.bf16.mxu1 %v11283_v43  ;;  %v11359_v43 = vld [vmem:[#allocation2 + $0x1624] ss:$24 sps:$4 sm:$0xff]  }
  0xfa   :  { %7349 = vmatpush1.bf16.msra.mxu0 %v11278_v44  ;;  %v11354_v44 = vld [vmem:[#allocation2 + $0x1320] ss:$24 sps:$4 sm:$0xff]  }
  0xfb   :  { %7390 = vmatpush1.bf16.msra.mxu1 %v11281_v45  ;;  %7350 = vmatprep.subr.bf16.mxu0 %v11286_v46  ;;  %v11357_v45 = vld [vmem:[#allocation2 + $0x1620] ss:$24 sps:$4 sm:$0xff]   ;;  %v11362_v46 = vld [vmem:[#allocation2 + $0x12f4] ss:$24 sps:$4 sm:$0xff]  }
  0xfc   :  { %7391 = vmatprep.subr.bf16.mxu1 %v11289_v48  ;;  %v11365_v48 = vld [vmem:[#allocation2 + $0x15f4] ss:$24 sps:$4 sm:$0xff]  }
  0xfe   :  { %7351 = vmatpush1.bf16.msra.mxu0 %v11284_v49  ;;  %v11360_v49 = vld [vmem:[#allocation2 + $0x12f0] ss:$24 sps:$4 sm:$0xff]  }
  0xff   :  { %7392 = vmatpush1.bf16.msra.mxu1 %v11287_v50  ;;  %7352 = vmatprep.subr.bf16.mxu0 %v11292_v52  ;;  %v11363_v50 = vld [vmem:[#allocation2 + $0x15f0] ss:$24 sps:$4 sm:$0xff]   ;;  %v11368_v52 = vld [vmem:[#allocation2 + $0x12c4] ss:$24 sps:$4 sm:$0xff]  }
 0x100   :  { %7393 = vmatprep.subr.bf16.mxu1 %v11295_v53  ;;  %v11371_v53 = vld [vmem:[#allocation2 + $0x15c4] ss:$24 sps:$4 sm:$0xff]  }
 0x102   :  { %7353 = vmatpush1.bf16.msra.mxu0 %v11290_v54  ;;  %v11366_v54 = vld [vmem:[#allocation2 + $0x12c0] ss:$24 sps:$4 sm:$0xff]  }
 0x103   :  { %7394 = vmatpush1.bf16.msra.mxu1 %v11293_v55  ;;  %7354 = vmatprep.subr.bf16.mxu0 %v11298_v56  ;;  %v11369_v55 = vld [vmem:[#allocation2 + $0x15c0] ss:$24 sps:$4 sm:$0xff]   ;;  %v11374_v56 = vld [vmem:[#allocation2 + $0x1294] ss:$24 sps:$4 sm:$0xff]  }
 0x104   :  { %7395 = vmatprep.subr.bf16.mxu1 %v11301_v57  ;;  %v11377_v57 = vld [vmem:[#allocation2 + $0x1594] ss:$24 sps:$4 sm:$0xff]  }
 0x106   :  { %7355 = vmatpush2.bf16.msra.mxu0 %v11296_v58  ;;  %v11372_v58 = vld [vmem:[#allocation2 + $0x1290] ss:$24 sps:$4 sm:$0xff]  }
 0x107   :  { %7396 = vmatpush2.bf16.msra.mxu1 %v11299_v59  ;;  %7356 = vmatprep.subr.bf16.mxu0 %v11304_v60  ;;  %v11375_v59 = vld [vmem:[#allocation2 + $0x1590] ss:$24 sps:$4 sm:$0xff]   ;;  %v11380_v60 = vld [vmem:[#allocation2 + $0x1264] ss:$24 sps:$4 sm:$0xff]  }
 0x108   :  { %7397 = vmatprep.subr.bf16.mxu1 %v11307_v61  ;;  %v11383_v61 = vld [vmem:[#allocation2 + $0x1564] ss:$24 sps:$4 sm:$0xff]  }
 0x10a   :  { %7357 = vmatpush2.bf16.msra.mxu0 %v11302_v62  ;;  %v11378_v62 = vld [vmem:[#allocation2 + $0x1260] ss:$24 sps:$4 sm:$0xff]  }
 0x10b   :  { %7398 = vmatpush2.bf16.msra.mxu1 %v11305_v63  ;;  %7358 = vmatprep.subr.bf16.mxu0 %v11310_v0  ;;  %v11381_v63 = vld [vmem:[#allocation2 + $0x1560] ss:$24 sps:$4 sm:$0xff]   ;;  %v11386_v0 = vld [vmem:[#allocation2 + $0x1234] ss:$24 sps:$4 sm:$0xff]  }
 0x10c   :  { %7399 = vmatprep.subr.bf16.mxu1 %v11313_v1  ;;  %v11389_v1 = vld [vmem:[#allocation2 + $0x1534] ss:$24 sps:$4 sm:$0xff]  }
 0x10e   :  { %7359 = vmatpush2.bf16.msra.mxu0 %v11308_v2  ;;  %v11384_v2 = vld [vmem:[#allocation2 + $0x1230] ss:$24 sps:$4 sm:$0xff]  }
 0x10f   :  { %7400 = vmatpush2.bf16.msra.mxu1 %v11311_v3  ;;  %7360 = vmatprep.subr.bf16.mxu0 %v11316_v4  ;;  %v11387_v3 = vld [vmem:[#allocation2 + $0x1530] ss:$24 sps:$4 sm:$0xff]   ;;  %v11392_v4 = vld [vmem:[#allocation2 + $0x1204] ss:$24 sps:$4 sm:$0xff]  }
 0x110   :  { %7401 = vmatprep.subr.bf16.mxu1 %v11319_v5  ;;  %v11395_v5 = vld [vmem:[#allocation2 + $0x1504] ss:$24 sps:$4 sm:$0xff]  }
 0x112   :  { %7361 = vmatpush2.bf16.msra.mxu0 %v11314_v8  ;;  %v11390_v8 = vld [vmem:[#allocation2 + $0x1200] ss:$24 sps:$4 sm:$0xff]  }
 0x113   :  { %7402 = vmatpush2.bf16.msra.mxu1 %v11317_v9  ;;  %7362 = vmatprep.subr.bf16.mxu0 %v11322_v10  ;;  %v11393_v9 = vld [vmem:[#allocation2 + $0x1500] ss:$24 sps:$4 sm:$0xff]   ;;  %v11398_v10 = vld [vmem:[#allocation2 + $0x14d4] ss:$24 sps:$4 sm:$0xff]  }
 0x114   :  { %7403 = vmatprep.subr.bf16.mxu1 %v11325_v11  ;;  %v11401_v11 = vld [vmem:[#allocation2 + $0x17d4] ss:$24 sps:$4 sm:$0xff]  }
 0x116   :  { %7363 = vmatpush2.bf16.msra.mxu0 %v11320_v12  ;;  %v11396_v12 = vld [vmem:[#allocation2 + $0x14d0] ss:$24 sps:$4 sm:$0xff]  }
 0x117   :  { %7404 = vmatpush2.bf16.msra.mxu1 %v11323_v13  ;;  %7364 = vmatprep.subr.bf16.mxu0 %v11328_v14  ;;  %v11399_v13 = vld [vmem:[#allocation2 + $0x17d0] ss:$24 sps:$4 sm:$0xff]   ;;  %v11404_v14 = vld [vmem:[#allocation2 + $0x14a4] ss:$24 sps:$4 sm:$0xff]  }
 0x118   :  { %7405 = vmatprep.subr.bf16.mxu1 %v11331_v15  ;;  %v11407_v15 = vld [vmem:[#allocation2 + $0x17a4] ss:$24 sps:$4 sm:$0xff]  }
 0x11a   :  { %7365 = vmatpush2.bf16.msra.mxu0 %v11326_v18  ;;  %v11402_v18 = vld [vmem:[#allocation2 + $0x14a0] ss:$24 sps:$4 sm:$0xff]  }
 0x11b   :  { %7406 = vmatpush2.bf16.msra.mxu1 %v11329_v19  ;;  %7366 = vmatprep.subr.bf16.mxu0 %v11334_v20  ;;  %v11405_v19 = vld [vmem:[#allocation2 + $0x17a0] ss:$24 sps:$4 sm:$0xff]   ;;  %v11410_v20 = vld [vmem:[#allocation2 + $0x1474] ss:$24 sps:$4 sm:$0xff]  }
 0x11c   :  { %7407 = vmatprep.subr.bf16.mxu1 %v11337_v21  ;;  %v11413_v21 = vld [vmem:[#allocation2 + $0x1774] ss:$24 sps:$4 sm:$0xff]  }
 0x11e   :  { %7367 = vmatpush2.bf16.msra.mxu0 %v11332_v26  ;;  %v11408_v26 = vld [vmem:[#allocation2 + $0x1470] ss:$24 sps:$4 sm:$0xff]  }
 0x11f   :  { %7408 = vmatpush2.bf16.msra.mxu1 %v11335_v27  ;;  %7368 = vmatprep.subr.bf16.mxu0 %v11340_v28  ;;  %v11411_v27 = vld [vmem:[#allocation2 + $0x1770] ss:$24 sps:$4 sm:$0xff]   ;;  %v11416_v28 = vld [vmem:[#allocation2 + $0x1444] ss:$24 sps:$4 sm:$0xff]  }
 0x120   :  { %7409 = vmatprep.subr.bf16.mxu1 %v11343_v29  ;;  %v11419_v29 = vld [vmem:[#allocation2 + $0x1744] ss:$24 sps:$4 sm:$0xff]  }
 0x122   :  { %7369 = vmatpush2.bf16.msra.mxu0 %v11338_v30  ;;  %v11414_v30 = vld [vmem:[#allocation2 + $0x1440] ss:$24 sps:$4 sm:$0xff]  }
 0x123   :  { %7410 = vmatpush2.bf16.msra.mxu1 %v11341_v31  ;;  %7420 = vmatprep.subr.bf16.mxu0 %v11350_v32  ;;  %v11417_v31 = vld [vmem:[#allocation2 + $0x1740] ss:$24 sps:$4 sm:$0xff]   ;;  %v11422_v32 = vld [vmem:[#allocation2 + $0x1414] ss:$24 sps:$4 sm:$0xff]  }
 0x124   :  { %7461 = vmatprep.subr.bf16.mxu1 %v11353_v33  ;;  %v11425_v33 = vld [vmem:[#allocation2 + $0x1714] ss:$24 sps:$4 sm:$0xff]  }
 0x125   :  { %7371 = vmatmul.mubr.bf16.vlgmr.msra.gmra.mxu0 %v13307_v38 }
 0x126   :  { %7412 = vmatmul.mubr.bf16.vlgmr.msra.gmra.mxu1 %v13311_v39  ;;  %7421 = vmatpush1.bf16.msra.mxu0 %v11348_v34  ;;  %v11420_v34 = vld [vmem:[#allocation2 + $0x1410] ss:$24 sps:$4 sm:$0xff]  }
 0x127   :  { %7462 = vmatpush1.bf16.msra.mxu1 %v11351_v41  ;;  %7422 = vmatprep.subr.bf16.mxu0 %v11356_v42  ;;  %v11423_v41 = vld [vmem:[#allocation2 + $0x1710] ss:$24 sps:$4 sm:$0xff]   ;;  %v11428_v42 = vld [vmem:[#allocation2 + $0x13e4] ss:$24 sps:$4 sm:$0xff]  }
 0x128   :  { %7463 = vmatprep.subr.bf16.mxu1 %v11359_v43  ;;  %7452 = vmatprep.mubr.bf16.mxu0 %v13320_v22  ;;  %v11431_v43 = vld [vmem:[#allocation2 + $0x16e4] ss:$24 sps:$4 sm:$0xff]  }
 0x129   :  { %7493 = vmatprep.mubr.bf16.mxu1 %v13324_v23 }
 0x12a   :  { %7423 = vmatpush1.bf16.msra.mxu0 %v11354_v44  ;;  %v11426_v44 = vld [vmem:[#allocation2 + $0x13e0] ss:$24 sps:$4 sm:$0xff]  }
 0x12b   :  { %7464 = vmatpush1.bf16.msra.mxu1 %v11357_v45  ;;  %7424 = vmatprep.subr.bf16.mxu0 %v11362_v46  ;;  %v11429_v45 = vld [vmem:[#allocation2 + $0x16e0] ss:$24 sps:$4 sm:$0xff]   ;;  %v11434_v46 = vld [vmem:[#allocation2 + $0x13b4] ss:$24 sps:$4 sm:$0xff]  }
 0x12c   :  { %7465 = vmatprep.subr.bf16.mxu1 %v11365_v48  ;;  %v1300_v48 = vlaneseq }
 0x12e   :  { %7425 = vmatpush1.bf16.msra.mxu0 %v11360_v49  ;;  %v11437_v49 = vld [vmem:[#allocation2 + $0x16b4] ss:$24 sps:$4 sm:$0xff]  }
 0x12f   :  { %7466 = vmatpush1.bf16.msra.mxu1 %v11363_v50  ;;  %7426 = vmatprep.subr.bf16.mxu0 %v11368_v52  ;;  %v11432_v50 = vld [vmem:[#allocation2 + $0x13b0] ss:$24 sps:$4 sm:$0xff]  }
 0x130   :  { %7467 = vmatprep.subr.bf16.mxu1 %v11371_v53  ;;  %v11435_v52 = vld [vmem:[#allocation2 + $0x16b0] ss:$24 sps:$4 sm:$0xff]   ;;  %v11440_v53 = vld [vmem:[#allocation2 + $0x1384] ss:$24 sps:$4 sm:$0xff]  }
 0x132   :  { %7427 = vmatpush1.bf16.msra.mxu0 %v11366_v54  ;;  %v13330_v54 = vshrl.u32 %v1300_v48, 7  ;;  %v11472_v48 = vld [vmem:[#allocation2 + $0x1890] ss:$24 sps:$4 sm:$0xff]  }
 0x133   :  { %7468 = vmatpush1.bf16.msra.mxu1 %v11369_v55  ;;  %7428 = vmatprep.subr.bf16.mxu0 %v11374_v56  ;;  %v11443_v55 = vld [vmem:[#allocation2 + $0x1684] ss:$24 sps:$4 sm:$0xff]   ;;  %v11438_v56 = vld [vmem:[#allocation2 + $0x1380] ss:$24 sps:$4 sm:$0xff]  }
 0x134   :  { %7469 = vmatprep.subr.bf16.mxu1 %v11377_v57  ;;  %v11441_v57 = vld [vmem:[#allocation2 + $0x1680] ss:$24 sps:$4 sm:$0xff]  }
 0x136   :  { %7429 = vmatpush1.bf16.msra.mxu0 %v11372_v58  ;;  %v1298_v58 = vld [vmem:[#allocation4] sm:$0x3f] }
 0x137   :  { %7470 = vmatpush1.bf16.msra.mxu1 %v11375_v59  ;;  %7430 = vmatprep.subr.bf16.mxu0 %v11380_v60  ;;  %v1302_v59 = vsub.s32 0, %v13330_v54  ;;  %v11450_v60 = vld [vmem:[#allocation2 + $0x1954] ss:$24 sps:$4 sm:$0xff]  }
 0x138   :  { %7471 = vmatprep.subr.bf16.mxu1 %v11383_v61  ;;  %v11453_v61 = vld [vmem:[#allocation2 + $0x1c54] ss:$24 sps:$4 sm:$0xff]  }
 0x13a   :  { %7431 = vmatpush1.bf16.msra.mxu0 %v11378_v62  ;;  %v11448_v62 = vld [vmem:[#allocation2 + $0x1950] ss:$24 sps:$4 sm:$0xff]  }
 0x13b   :  { %7472 = vmatpush1.bf16.msra.mxu1 %v11381_v63  ;;  %7432 = vmatprep.subr.bf16.mxu0 %v11386_v0  ;;  %v1306_v63 = vsub.s32 1, %v13330_v54  ;;  %v13336_v0 = vcombine.low %v13303_v35, %v13303_v35  ;;  %v1303_v35 = vrot.slane %v1298_v58, %v1302_v59 }
 0x13c   :  { %7473 = vmatprep.subr.bf16.mxu1 %v11389_v1  ;;  %v13340_v1 = vcombine.low %v13316_v40, %v13316_v40  ;;  %v11459_v40 = vld [vmem:[#allocation2 + $0x1c24] ss:$24 sps:$4 sm:$0xff]  }
 0x13e   :  { %7433 = vmatpush1.bf16.msra.mxu0 %v11384_v2  ;;  %v13345_v2 = vld [vmem:[%s13563_s0 + $0x40] sm:$0xff] }
 0x13f   :  { %7474 = vmatpush1.bf16.msra.mxu1 %v11387_v3  ;;  %7434 = vmatprep.subr.bf16.mxu0 %v11392_v4  ;;  %v13350_v3 = vld [vmem:[%s13563_s0 + $0x48] sm:$0xff] }
 0x140   :  { %7475 = vmatprep.subr.bf16.mxu1 %v11395_v5  ;;  %v11451_v4 = vld [vmem:[#allocation2 + $0x1c50] ss:$24 sps:$4 sm:$0xff]   ;;  %v11456_v5 = vld [vmem:[#allocation2 + $0x1924] ss:$24 sps:$4 sm:$0xff]  }
 0x142   :  { %7435 = vmatpush1.bf16.msra.mxu0 %v11390_v8  ;;  %v1307_v8 = vrot.slane %v1298_v58, %v1306_v63  ;;  %v11484_v58 = vld [vmem:[#allocation2 + $0x1830] ss:$24 sps:$4 sm:$0xff]  }
 0x143   :  { %7476 = vmatpush1.bf16.msra.mxu1 %v11393_v9  ;;  %7436 = vmatprep.subr.bf16.mxu0 %v11398_v10  ;;  %v13358_v9 = vcombine.high %v13345_v2, %v13345_v2  ;;  %v13362_v10 = vcombine.high %v13350_v3, %v13350_v3 }
 0x144   :  { %7477 = vmatprep.subr.bf16.mxu1 %v11401_v11 }
 0x146   :  { %7437 = vmatpush2.bf16.msra.mxu0 %v11396_v12 }
 0x147   :  { %7478 = vmatpush2.bf16.msra.mxu1 %v11399_v13  ;;  %7438 = vmatprep.subr.bf16.mxu0 %v11404_v14  ;;  %v11454_v13 = vld [vmem:[#allocation2 + $0x1920] ss:$24 sps:$4 sm:$0xff]  }
 0x148   :  { %7479 = vmatprep.subr.bf16.mxu1 %v11407_v15  ;;  %v11457_v15 = vld [vmem:[#allocation2 + $0x1c20] ss:$24 sps:$4 sm:$0xff]  }
 0x14a   :  { %7439 = vmatpush2.bf16.msra.mxu0 %v11402_v18 }
 0x14b   :  { %7480 = vmatpush2.bf16.msra.mxu1 %v11405_v19  ;;  %7440 = vmatprep.subr.bf16.mxu0 %v11410_v20  ;;  %v11462_v20 = vld [vmem:[#allocation2 + $0x18f4] ss:$24 sps:$4 sm:$0xff]  }
 0x14c   :  { %7481 = vmatprep.subr.bf16.mxu1 %v11413_v21  ;;  %v11465_v21 = vld [vmem:[#allocation2 + $0x1bf4] ss:$24 sps:$4 sm:$0xff]  }
 0x14e   :  { %7441 = vmatpush2.bf16.msra.mxu0 %v11408_v26 }
 0x14f   :  { %7482 = vmatpush2.bf16.msra.mxu1 %v11411_v27  ;;  %7442 = vmatprep.subr.bf16.mxu0 %v11416_v28 }
 0x150   :  { %7483 = vmatprep.subr.bf16.mxu1 %v11419_v29 }
 0x152   :  { %7443 = vmatpush2.bf16.msra.mxu0 %v11414_v30  ;;  %v11460_v30 = vld [vmem:[#allocation2 + $0x18f0] ss:$24 sps:$4 sm:$0xff]  }
 0x153   :  { %7484 = vmatpush2.bf16.msra.mxu1 %v11417_v31  ;;  %7444 = vmatprep.subr.bf16.mxu0 %v11422_v32  ;;  %v11463_v32 = vld [vmem:[#allocation2 + $0x1bf0] ss:$24 sps:$4 sm:$0xff]  }
 0x154   :  { %7485 = vmatprep.subr.bf16.mxu1 %v11425_v33 }
 0x156   :  { %7445 = vmatpush2.bf16.msra.mxu0 %v11420_v34 }
 0x157   :  { %7486 = vmatpush2.bf16.msra.mxu1 %v11423_v41  ;;  %7446 = vmatprep.subr.bf16.mxu0 %v11428_v42  ;;  %v11468_v41 = vld [vmem:[#allocation2 + $0x18c4] ss:$24 sps:$4 sm:$0xff]  }
 0x158   :  { %7487 = vmatprep.subr.bf16.mxu1 %v11431_v43  ;;  %v11471_v42 = vld [vmem:[#allocation2 + $0x1bc4] ss:$24 sps:$4 sm:$0xff]   ;;  %v11466_v43 = vld [vmem:[#allocation2 + $0x18c0] ss:$24 sps:$4 sm:$0xff]  }
 0x15a   :  { %7447 = vmatpush2.bf16.msra.mxu0 %v11426_v44  ;;  %v11469_v44 = vld [vmem:[#allocation2 + $0x1bc0] ss:$24 sps:$4 sm:$0xff]  }
 0x15b   :  { %7488 = vmatpush2.bf16.msra.mxu1 %v11429_v45  ;;  %7448 = vmatprep.subr.bf16.mxu0 %v11434_v46  ;;  %v11474_v45 = vld [vmem:[#allocation2 + $0x1894] ss:$24 sps:$4 sm:$0xff]  }
 0x15c   :  { %7489 = vmatprep.subr.bf16.mxu1 %v11437_v49  ;;  %v11477_v46 = vld [vmem:[#allocation2 + $0x1b94] ss:$24 sps:$4 sm:$0xff]   ;;  %v11475_v49 = vld [vmem:[#allocation2 + $0x1b90] ss:$24 sps:$4 sm:$0xff]  }
 0x15e   :  { %7449 = vmatpush2.bf16.msra.mxu0 %v11432_v50  ;;  %v11480_v50 = vld [vmem:[#allocation2 + $0x1864] ss:$24 sps:$4 sm:$0xff]  }
 0x15f   :  { %7490 = vmatpush2.bf16.msra.mxu1 %v11435_v52  ;;  %7450 = vmatprep.subr.bf16.mxu0 %v11440_v53  ;;  %v11483_v52 = vld [vmem:[#allocation2 + $0x1b64] ss:$24 sps:$4 sm:$0xff]   ;;  %v11478_v53 = vld [vmem:[#allocation2 + $0x1860] ss:$24 sps:$4 sm:$0xff]  }
 0x160   :  { %7491 = vmatprep.subr.bf16.mxu1 %v11443_v55  ;;  %v11481_v55 = vld [vmem:[#allocation2 + $0x1b60] ss:$24 sps:$4 sm:$0xff]  }
 0x162   :  { %7451 = vmatpush2.bf16.msra.mxu0 %v11438_v56  ;;  %v11486_v56 = vld [vmem:[#allocation2 + $0x1834] ss:$24 sps:$4 sm:$0xff]  }
 0x163   :  { %7492 = vmatpush2.bf16.msra.mxu1 %v11441_v57  ;;  %7502 = vmatprep.subr.bf16.mxu0 %v11450_v60  ;;  %v11489_v57 = vld [vmem:[#allocation2 + $0x1b34] ss:$24 sps:$4 sm:$0xff]   ;;  %v11487_v60 = vld [vmem:[#allocation2 + $0x1b30] ss:$24 sps:$4 sm:$0xff]  }
 0x164   :  { %7543 = vmatprep.subr.bf16.mxu1 %v11453_v61  ;;  %v11492_v61 = vld [vmem:[#allocation2 + $0x1804] ss:$24 sps:$4 sm:$0xff]  }
 0x165   :  { %v7208_v11 = vpop.f32.mrf.mxu0  ;;  %7453 = vmatmul.mubr.bf16.vlgmr.msra.gmra.mxu0 %v13336_v0 }
 0x166   :  { %v7249_v12 = vpop.f32.mrf.mxu1  ;;  %7494 = vmatmul.mubr.bf16.vlgmr.msra.gmra.mxu1 %v13340_v1  ;;  %v7209_v14 = vadd.f32 %v7208_v11, %v1303_v35  ;;  %7503 = vmatpush1.bf16.msra.mxu0 %v11448_v62  ;;  %v11495_v62 = vld [vmem:[#allocation2 + $0x1b04] ss:$24 sps:$4 sm:$0xff]   ;;  %v11490_v35 = vld [vmem:[#allocation2 + $0x1800] ss:$24 sps:$4 sm:$0xff]   ;;  %v11499_v11 = vld [vmem:[#allocation2 + $0x1dd0] ss:$24 sps:$4 sm:$0xff]  }
 0x167   :  { %7544 = vmatpush1.bf16.msra.mxu1 %v11451_v4  ;;  %v7210_v18 = vpop.f32.mrf.mxu0  ;;  %7504 = vmatprep.subr.bf16.mxu0 %v11456_v5  ;;  %v11493_v4 = vld [vmem:[#allocation2 + $0x1b00] ss:$24 sps:$4 sm:$0xff]   ;;  %v11498_v5 = vld [vmem:[#allocation2 + $0x1ad4] ss:$24 sps:$4 sm:$0xff]  }
 0x168   :  { %v7251_v19 = vpop.f32.mrf.mxu1  ;;  %7545 = vmatprep.subr.bf16.mxu1 %v11459_v40  ;;  %v13366_v26 = vadd.f32 %v7249_v12, %v7209_v14  ;;  %v7211_v27 = vadd.f32 %v7210_v18, %v1307_v8  ;;  %7534 = vmatprep.mubr.bf16.mxu0 %v13358_v9  ;;  %v11501_v40 = vld [vmem:[#allocation2 + $0x1dd4] ss:$24 sps:$4 sm:$0xff]   ;;  %v11496_v8 = vld [vmem:[#allocation2 + $0x1ad0] ss:$24 sps:$4 sm:$0xff]   ;;  %v11504_v12 = vld [vmem:[#allocation2 + $0x1aa4] ss:$24 sps:$4 sm:$0xff]  }
 0x169   :  { %7575 = vmatprep.mubr.bf16.mxu1 %v13362_v10  ;;  %v7212_v28 = vpop.f32.mrf.mxu0  ;;  %v11502_v14 = vld [vmem:[#allocation2 + $0x1aa0] ss:$24 sps:$4 sm:$0xff]   ;;  %v11510_v18 = vld [vmem:[#allocation2 + $0x1a74] ss:$24 sps:$4 sm:$0xff]  }
 0x16a   :  { %v7253_v29 = vpop.f32.mrf.mxu1  ;;  %v13370_v31 = vadd.f32 %v7251_v19, %v7211_v27  ;;  %7505 = vmatpush1.bf16.msra.mxu0 %v11454_v13  ;;  %v11507_v13 = vld [vmem:[#allocation2 + $0x1da4] ss:$24 sps:$4 sm:$0xff]   ;;  %v11513_v19 = vld [vmem:[#allocation2 + $0x1d74] ss:$24 sps:$4 sm:$0xff]  }
 0x16b   :  { %7546 = vmatpush1.bf16.msra.mxu1 %v11457_v15  ;;  %v7213_v33 = vpop.f32.mrf.mxu0  ;;  %7506 = vmatprep.subr.bf16.mxu0 %v11462_v20  ;;  %v11505_v15 = vld [vmem:[#allocation2 + $0x1da0] ss:$24 sps:$4 sm:$0xff]   ;;  %v11508_v20 = vld [vmem:[#allocation2 + $0x1a70] ss:$24 sps:$4 sm:$0xff]   ;;  %v11516_v27 = vld [vmem:[#allocation2 + $0x1a44] ss:$24 sps:$4 sm:$0xff]  }
 0x16c   :  { %v7254_v34 = vpop.f32.mrf.mxu1  ;;  %7547 = vmatprep.subr.bf16.mxu1 %v11465_v21  ;;  %v11511_v21 = vld [vmem:[#allocation2 + $0x1d70] ss:$24 sps:$4 sm:$0xff]   ;;  %v11519_v28 = vld [vmem:[#allocation2 + $0x1d44] ss:$24 sps:$4 sm:$0xff]   ;;  %v11514_v29 = vld [vmem:[#allocation2 + $0x1a40] ss:$24 sps:$4 sm:$0xff]  }
 0x16d   :  { %v11525_v33 = vld [vmem:[#allocation2 + $0x1d14] ss:$24 sps:$4 sm:$0xff]   ;;  %v11520_v34 = vld [vmem:[#allocation2 + $0x1a10] ss:$24 sps:$4 sm:$0xff]  }
 0x16e   :  { %7507 = vmatpush1.bf16.msra.mxu0 %v11460_v30  ;;  %v11517_v30 = vld [vmem:[#allocation2 + $0x1d40] ss:$24 sps:$4 sm:$0xff]  }
 0x16f   :  { %7548 = vmatpush1.bf16.msra.mxu1 %v11463_v32  ;;  %7508 = vmatprep.subr.bf16.mxu0 %v11468_v41  ;;  %v11522_v32 = vld [vmem:[#allocation2 + $0x1a14] ss:$24 sps:$4 sm:$0xff]   ;;  %v11523_v41 = vld [vmem:[#allocation2 + $0x1d10] ss:$24 sps:$4 sm:$0xff]  }
 0x170   :  { %7549 = vmatprep.subr.bf16.mxu1 %v11471_v42  ;;  %v11528_v42 = vld [vmem:[#allocation2 + $0x19e4] ss:$24 sps:$4 sm:$0xff]  }
 0x172   :  { %7509 = vmatpush1.bf16.msra.mxu0 %v11466_v43  ;;  %v11531_v43 = vld [vmem:[#allocation2 + $0x1ce4] ss:$24 sps:$4 sm:$0xff]  }
 0x173   :  { %7550 = vmatpush1.bf16.msra.mxu1 %v11469_v44  ;;  %7510 = vmatprep.subr.bf16.mxu0 %v11474_v45  ;;  %v11526_v44 = vld [vmem:[#allocation2 + $0x19e0] ss:$24 sps:$4 sm:$0xff]  }
 0x174   :  { %7551 = vmatprep.subr.bf16.mxu1 %v11477_v46  ;;  %v11529_v45 = vld [vmem:[#allocation2 + $0x1ce0] ss:$24 sps:$4 sm:$0xff]   ;;  %v11534_v46 = vld [vmem:[#allocation2 + $0x19b4] ss:$24 sps:$4 sm:$0xff]  }
 0x176   :  { %7511 = vmatpush1.bf16.msra.mxu0 %v11472_v48  ;;  %v11537_v48 = vld [vmem:[#allocation2 + $0x1cb4] ss:$24 sps:$4 sm:$0xff]  }
 0x177   :  { %7552 = vmatpush1.bf16.msra.mxu1 %v11475_v49  ;;  %7512 = vmatprep.subr.bf16.mxu0 %v11480_v50  ;;  %v11532_v49 = vld [vmem:[#allocation2 + $0x19b0] ss:$24 sps:$4 sm:$0xff]  }
 0x178   :  { %7553 = vmatprep.subr.bf16.mxu1 %v11483_v52  ;;  %v11535_v50 = vld [vmem:[#allocation2 + $0x1cb0] ss:$24 sps:$4 sm:$0xff]   ;;  %v11540_v52 = vld [vmem:[#allocation2 + $0x1984] ss:$24 sps:$4 sm:$0xff]  }
 0x17a   :  { %7513 = vmatpush1.bf16.msra.mxu0 %v11478_v53  ;;  %v11543_v53 = vld [vmem:[#allocation2 + $0x1c84] ss:$24 sps:$4 sm:$0xff]  }
 0x17b   :  { %7554 = vmatpush1.bf16.msra.mxu1 %v11481_v55  ;;  %7514 = vmatprep.subr.bf16.mxu0 %v11486_v56  ;;  %v11538_v55 = vld [vmem:[#allocation2 + $0x1980] ss:$24 sps:$4 sm:$0xff]  }
 0x17c   :  { %7555 = vmatprep.subr.bf16.mxu1 %v11489_v57  ;;  %v11541_v56 = vld [vmem:[#allocation2 + $0x1c80] ss:$24 sps:$4 sm:$0xff]   ;;  %v11550_v57 = vld [vmem:[#allocation2 + $0x1f54] ss:$24 sps:$4 sm:$0xff]  }
 0x17e   :  { %7515 = vmatpush1.bf16.msra.mxu0 %v11484_v58  ;;  %v11553_v58 = vld [vmem:[#allocation2 + $0x2254] ss:$24 sps:$4 sm:$0xff]  }
 0x17f   :  { %7556 = vmatpush1.bf16.msra.mxu1 %v11487_v60  ;;  %7516 = vmatprep.subr.bf16.mxu0 %v11492_v61  ;;  %v13375_v60 = vld [vmem:[%s13563_s0 + $0x50] sm:$0xff]  ;;  %v13380_v61 = vld [vmem:[%s13563_s0 + $0x58] sm:$0xff] }
 0x180   :  { %7557 = vmatprep.subr.bf16.mxu1 %v11495_v62  ;;  %v11548_v62 = vld [vmem:[#allocation2 + $0x1f50] ss:$24 sps:$4 sm:$0xff]  }
 0x182   :  { %7517 = vmatpush1.bf16.msra.mxu0 %v11490_v35  ;;  %v11551_v35 = vld [vmem:[#allocation2 + $0x2250] ss:$24 sps:$4 sm:$0xff]  }
 0x183   :  { %7558 = vmatpush1.bf16.msra.mxu1 %v11493_v4  ;;  %7518 = vmatprep.subr.bf16.mxu0 %v11498_v5  ;;  %v13384_v4 = vcombine.low %v13345_v2, %v13345_v2  ;;  %v13388_v5 = vcombine.low %v13350_v3, %v13350_v3  ;;  %v13396_v2 = vcombine.high %v13380_v61, %v13380_v61 }
 0x184   :  { %7559 = vmatprep.subr.bf16.mxu1 %v11501_v40  ;;  %v11556_v40 = vld [vmem:[#allocation2 + $0x1f24] ss:$24 sps:$4 sm:$0xff]  }
 0x186   :  { %7519 = vmatpush2.bf16.msra.mxu0 %v11496_v8  ;;  %v11559_v8 = vld [vmem:[#allocation2 + $0x2224] ss:$24 sps:$4 sm:$0xff]  }
 0x187   :  { %7560 = vmatpush2.bf16.msra.mxu1 %v11499_v11  ;;  %7520 = vmatprep.subr.bf16.mxu0 %v11504_v12  ;;  %v11554_v11 = vld [vmem:[#allocation2 + $0x1f20] ss:$24 sps:$4 sm:$0xff]  }
 0x188   :  { %7561 = vmatprep.subr.bf16.mxu1 %v11507_v13  ;;  %v11557_v12 = vld [vmem:[#allocation2 + $0x2220] ss:$24 sps:$4 sm:$0xff]   ;;  %v13392_v13 = vcombine.high %v13375_v60, %v13375_v60 }
 0x18a   :  { %7521 = vmatpush2.bf16.msra.mxu0 %v11502_v14 }
 0x18b   :  { %7562 = vmatpush2.bf16.msra.mxu1 %v11505_v15  ;;  %7522 = vmatprep.subr.bf16.mxu0 %v11510_v18 }
 0x18c   :  { %7563 = vmatprep.subr.bf16.mxu1 %v11513_v19 }
 0x18e   :  { %7523 = vmatpush2.bf16.msra.mxu0 %v11508_v20  ;;  %v11562_v20 = vld [vmem:[#allocation2 + $0x1ef4] ss:$24 sps:$4 sm:$0xff]  }
 0x18f   :  { %7564 = vmatpush2.bf16.msra.mxu1 %v11511_v21  ;;  %7524 = vmatprep.subr.bf16.mxu0 %v11516_v27  ;;  %v11565_v21 = vld [vmem:[#allocation2 + $0x21f4] ss:$24 sps:$4 sm:$0xff]  }
 0x190   :  { %7565 = vmatprep.subr.bf16.mxu1 %v11519_v28 }
 0x192   :  { %7525 = vmatpush2.bf16.msra.mxu0 %v11514_v29  ;;  %v11560_v29 = vld [vmem:[#allocation2 + $0x1ef0] ss:$24 sps:$4 sm:$0xff]  }
 0x193   :  { %7566 = vmatpush2.bf16.msra.mxu1 %v11517_v30  ;;  %7526 = vmatprep.subr.bf16.mxu0 %v11522_v32  ;;  %v11563_v30 = vld [vmem:[#allocation2 + $0x21f0] ss:$24 sps:$4 sm:$0xff]  }
 0x194   :  { %7567 = vmatprep.subr.bf16.mxu1 %v11525_v33 }
 0x196   :  { %7527 = vmatpush2.bf16.msra.mxu0 %v11520_v34 }
 0x197   :  { %7568 = vmatpush2.bf16.msra.mxu1 %v11523_v41  ;;  %7528 = vmatprep.subr.bf16.mxu0 %v11528_v42  ;;  %v11568_v42 = vld [vmem:[#allocation2 + $0x1ec4] ss:$24 sps:$4 sm:$0xff]  }
 0x198   :  { %7569 = vmatprep.subr.bf16.mxu1 %v11531_v43  ;;  %v11571_v43 = vld [vmem:[#allocation2 + $0x21c4] ss:$24 sps:$4 sm:$0xff]  }
 0x19a   :  { %7529 = vmatpush2.bf16.msra.mxu0 %v11526_v44  ;;  %v11569_v44 = vld [vmem:[#allocation2 + $0x21c0] ss:$24 sps:$4 sm:$0xff]  }
 0x19b   :  { %7570 = vmatpush2.bf16.msra.mxu1 %v11529_v45  ;;  %7530 = vmatprep.subr.bf16.mxu0 %v11534_v46  ;;  %v11574_v45 = vld [vmem:[#allocation2 + $0x1e94] ss:$24 sps:$4 sm:$0xff]  }
 0x19c   :  { %7571 = vmatprep.subr.bf16.mxu1 %v11537_v48  ;;  %v11577_v46 = vld [vmem:[#allocation2 + $0x2194] ss:$24 sps:$4 sm:$0xff]   ;;  %v11572_v48 = vld [vmem:[#allocation2 + $0x1e90] ss:$24 sps:$4 sm:$0xff]  }
 0x19e   :  { %7531 = vmatpush2.bf16.msra.mxu0 %v11532_v49  ;;  %v11575_v49 = vld [vmem:[#allocation2 + $0x2190] ss:$24 sps:$4 sm:$0xff]  }
 0x19f   :  { %7572 = vmatpush2.bf16.msra.mxu1 %v11535_v50  ;;  %7532 = vmatprep.subr.bf16.mxu0 %v11540_v52  ;;  %v11580_v50 = vld [vmem:[#allocation2 + $0x1e64] ss:$24 sps:$4 sm:$0xff]  }
 0x1a0   :  { %7573 = vmatprep.subr.bf16.mxu1 %v11543_v53  ;;  %v11583_v52 = vld [vmem:[#allocation2 + $0x2164] ss:$24 sps:$4 sm:$0xff]   ;;  %v11578_v53 = vld [vmem:[#allocation2 + $0x1e60] ss:$24 sps:$4 sm:$0xff]  }
 0x1a2   :  { %7533 = vmatpush2.bf16.msra.mxu0 %v11538_v55  ;;  %v11581_v55 = vld [vmem:[#allocation2 + $0x2160] ss:$24 sps:$4 sm:$0xff]  }
 0x1a3   :  { %7574 = vmatpush2.bf16.msra.mxu1 %v11541_v56  ;;  %7584 = vmatprep.subr.bf16.mxu0 %v11550_v57  ;;  %v11586_v56 = vld [vmem:[#allocation2 + $0x1e34] ss:$24 sps:$4 sm:$0xff]  }
 0x1a4   :  { %7625 = vmatprep.subr.bf16.mxu1 %v11553_v58  ;;  %v11589_v57 = vld [vmem:[#allocation2 + $0x2134] ss:$24 sps:$4 sm:$0xff]   ;;  %v11584_v58 = vld [vmem:[#allocation2 + $0x1e30] ss:$24 sps:$4 sm:$0xff]  }
 0x1a5   :  { %v7290_v14 = vpop.f32.mrf.mxu0  ;;  %7535 = vmatmul.mubr.bf16.vlgmr.msra.gmra.mxu0 %v13384_v4 }
 0x1a6   :  { %v7331_v15 = vpop.f32.mrf.mxu1  ;;  %7576 = vmatmul.mubr.bf16.vlgmr.msra.gmra.mxu1 %v13388_v5  ;;  %v7291_v3 = vadd.f32 %v7290_v14, %v13366_v26  ;;  %7585 = vmatpush1.bf16.msra.mxu0 %v11548_v62  ;;  %v11587_v62 = vld [vmem:[#allocation2 + $0x2130] ss:$24 sps:$4 sm:$0xff]   ;;  %v11601_v14 = vld [vmem:[#allocation2 + $0x23d4] ss:$24 sps:$4 sm:$0xff]  }
 0x1a7   :  { %7626 = vmatpush1.bf16.msra.mxu1 %v11551_v35  ;;  %v7292_v18 = vpop.f32.mrf.mxu0  ;;  %7586 = vmatprep.subr.bf16.mxu0 %v11556_v40  ;;  %v11592_v35 = vld [vmem:[#allocation2 + $0x1e04] ss:$24 sps:$4 sm:$0xff]  }
 0x1a8   :  { %v7333_v19 = vpop.f32.mrf.mxu1  ;;  %7627 = vmatprep.subr.bf16.mxu1 %v11559_v8  ;;  %v13401_v27 = vadd.f32 %v7331_v15, %v7291_v3  ;;  %v7293_v28 = vadd.f32 %v7292_v18, %v13370_v31  ;;  %7616 = vmatprep.mubr.bf16.mxu0 %v13392_v13  ;;  %v11566_v31 = vld [vmem:[#allocation2 + $0x1ec0] ss:$24 sps:$4 sm:$0xff]   ;;  %v11595_v40 = vld [vmem:[#allocation2 + $0x2104] ss:$24 sps:$4 sm:$0xff]   ;;  %v11596_v15 = vld [vmem:[#allocation2 + $0x20d0] ss:$24 sps:$4 sm:$0xff]  }
 0x1a9   :  { %7657 = vmatprep.mubr.bf16.mxu1 %v13396_v2  ;;  %v7294_v32 = vpop.f32.mrf.mxu0  ;;  %v11590_v8 = vld [vmem:[#allocation2 + $0x1e00] ss:$24 sps:$4 sm:$0xff]   ;;  %v11599_v3 = vld [vmem:[#allocation2 + $0x23d0] ss:$24 sps:$4 sm:$0xff]   ;;  %v11604_v18 = vld [vmem:[#allocation2 + $0x20a4] ss:$24 sps:$4 sm:$0xff]  }
 0x1aa   :  { %v7335_v26 = vpop.f32.mrf.mxu1  ;;  %v13406_v33 = vadd.f32 %v7333_v19, %v7293_v28  ;;  %7587 = vmatpush1.bf16.msra.mxu0 %v11554_v11  ;;  %v11593_v11 = vld [vmem:[#allocation2 + $0x2100] ss:$24 sps:$4 sm:$0xff]   ;;  %v11607_v19 = vld [vmem:[#allocation2 + $0x23a4] ss:$24 sps:$4 sm:$0xff]   ;;  %v11610_v28 = vld [vmem:[#allocation2 + $0x2074] ss:$24 sps:$4 sm:$0xff]  }
 0x1ab   :  { %7628 = vmatpush1.bf16.msra.mxu1 %v11557_v12  ;;  %v7295_v34 = vpop.f32.mrf.mxu0  ;;  %7588 = vmatprep.subr.bf16.mxu0 %v11562_v20  ;;  %v11598_v12 = vld [vmem:[#allocation2 + $0x20d4] ss:$24 sps:$4 sm:$0xff]   ;;  %v11602_v20 = vld [vmem:[#allocation2 + $0x20a0] ss:$24 sps:$4 sm:$0xff]   ;;  %v11611_v32 = vld [vmem:[#allocation2 + $0x2370] ss:$24 sps:$4 sm:$0xff]  }
 0x1ac   :  { %v7336_v41 = vpop.f32.mrf.mxu1  ;;  %7629 = vmatprep.subr.bf16.mxu1 %v11565_v21  ;;  %v11605_v21 = vld [vmem:[#allocation2 + $0x23a0] ss:$24 sps:$4 sm:$0xff]   ;;  %v11616_v26 = vld [vmem:[#allocation2 + $0x2044] ss:$24 sps:$4 sm:$0xff]  }
 0x1ad   :  { %v11619_v34 = vld [vmem:[#allocation2 + $0x2344] ss:$24 sps:$4 sm:$0xff]   ;;  %v11614_v41 = vld [vmem:[#allocation2 + $0x2040] ss:$24 sps:$4 sm:$0xff]  }
 0x1ae   :  { %7589 = vmatpush1.bf16.msra.mxu0 %v11560_v29  ;;  %v11613_v29 = vld [vmem:[#allocation2 + $0x2374] ss:$24 sps:$4 sm:$0xff]  }
 0x1af   :  { %7630 = vmatpush1.bf16.msra.mxu1 %v11563_v30  ;;  %7590 = vmatprep.subr.bf16.mxu0 %v11568_v42  ;;  %v11608_v30 = vld [vmem:[#allocation2 + $0x2070] ss:$24 sps:$4 sm:$0xff]   ;;  %v11617_v42 = vld [vmem:[#allocation2 + $0x2340] ss:$24 sps:$4 sm:$0xff]  }
 0x1b0   :  { %7631 = vmatprep.subr.bf16.mxu1 %v11571_v43  ;;  %v11622_v43 = vld [vmem:[#allocation2 + $0x2014] ss:$24 sps:$4 sm:$0xff]  }
 0x1b2   :  { %7591 = vmatpush1.bf16.msra.mxu0 %v11566_v31  ;;  %v11625_v31 = vld [vmem:[#allocation2 + $0x2314] ss:$24 sps:$4 sm:$0xff]  }
 0x1b3   :  { %7632 = vmatpush1.bf16.msra.mxu1 %v11569_v44  ;;  %7592 = vmatprep.subr.bf16.mxu0 %v11574_v45  ;;  %v11620_v44 = vld [vmem:[#allocation2 + $0x2010] ss:$24 sps:$4 sm:$0xff]  }
 0x1b4   :  { %7633 = vmatprep.subr.bf16.mxu1 %v11577_v46  ;;  %v11623_v45 = vld [vmem:[#allocation2 + $0x2310] ss:$24 sps:$4 sm:$0xff]   ;;  %v11628_v46 = vld [vmem:[#allocation2 + $0x1fe4] ss:$24 sps:$4 sm:$0xff]  }
 0x1b6   :  { %7593 = vmatpush1.bf16.msra.mxu0 %v11572_v48  ;;  %v11631_v48 = vld [vmem:[#allocation2 + $0x22e4] ss:$24 sps:$4 sm:$0xff]  }
 0x1b7   :  { %7634 = vmatpush1.bf16.msra.mxu1 %v11575_v49  ;;  %7594 = vmatprep.subr.bf16.mxu0 %v11580_v50  ;;  %v11626_v49 = vld [vmem:[#allocation2 + $0x1fe0] ss:$24 sps:$4 sm:$0xff]  }
 0x1b8   :  { %7635 = vmatprep.subr.bf16.mxu1 %v11583_v52  ;;  %v11629_v50 = vld [vmem:[#allocation2 + $0x22e0] ss:$24 sps:$4 sm:$0xff]   ;;  %v11634_v52 = vld [vmem:[#allocation2 + $0x1fb4] ss:$24 sps:$4 sm:$0xff]  }
 0x1ba   :  { %7595 = vmatpush1.bf16.msra.mxu0 %v11578_v53  ;;  %v11637_v53 = vld [vmem:[#allocation2 + $0x22b4] ss:$24 sps:$4 sm:$0xff]  }
 0x1bb   :  { %7636 = vmatpush1.bf16.msra.mxu1 %v11581_v55  ;;  %7596 = vmatprep.subr.bf16.mxu0 %v11586_v56  ;;  %v11632_v55 = vld [vmem:[#allocation2 + $0x1fb0] ss:$24 sps:$4 sm:$0xff]  }
 0x1bc   :  { %7637 = vmatprep.subr.bf16.mxu1 %v11589_v57  ;;  %v11635_v56 = vld [vmem:[#allocation2 + $0x22b0] ss:$24 sps:$4 sm:$0xff]   ;;  %v11640_v57 = vld [vmem:[#allocation2 + $0x1f84] ss:$24 sps:$4 sm:$0xff]  }
 0x1be   :  { %7597 = vmatpush1.bf16.msra.mxu0 %v11584_v58  ;;  %v11643_v58 = vld [vmem:[#allocation2 + $0x2284] ss:$24 sps:$4 sm:$0xff]  }
 0x1bf   :  { %7638 = vmatpush1.bf16.msra.mxu1 %v11587_v62  ;;  %7598 = vmatprep.subr.bf16.mxu0 %v11592_v35  ;;  %v11638_v62 = vld [vmem:[#allocation2 + $0x1f80] ss:$24 sps:$4 sm:$0xff]  }
 0x1c0   :  { %7639 = vmatprep.subr.bf16.mxu1 %v11595_v40  ;;  %v11641_v35 = vld [vmem:[#allocation2 + $0x2280] ss:$24 sps:$4 sm:$0xff]   ;;  %v11650_v40 = vld [vmem:[#allocation2 + $0x15c] ss:$24 sps:$4 sm:$0xff]  }
 0x1c2   :  { %7599 = vmatpush1.bf16.msra.mxu0 %v11590_v8  ;;  %v11653_v8 = vld [vmem:[#allocation2 + $0x45c] ss:$24 sps:$4 sm:$0xff]  }
 0x1c3   :  { %7640 = vmatpush1.bf16.msra.mxu1 %v11593_v11  ;;  %7600 = vmatprep.subr.bf16.mxu0 %v11598_v12  ;;  %v11648_v11 = vld [vmem:[#allocation2 + $0x158] ss:$24 sps:$4 sm:$0xff]  }
 0x1c4   :  { %7641 = vmatprep.subr.bf16.mxu1 %v11601_v14  ;;  %v11651_v12 = vld [vmem:[#allocation2 + $0x458] ss:$24 sps:$4 sm:$0xff]   ;;  %v13410_v14 = vcombine.low %v13375_v60, %v13375_v60 }
 0x1c6   :  { %7601 = vmatpush2.bf16.msra.mxu0 %v11596_v15  ;;  %v13414_v15 = vcombine.low %v13380_v61, %v13380_v61 }
 0x1c7   :  { %7642 = vmatpush2.bf16.msra.mxu1 %v11599_v3  ;;  %7602 = vmatprep.subr.bf16.mxu0 %v11604_v18  ;;  %v11656_v3 = vld [vmem:[#allocation2 + $0x12c] ss:$24 sps:$4 sm:$0xff]  }
 0x1c8   :  { %7643 = vmatprep.subr.bf16.mxu1 %v11607_v19  ;;  %v11659_v18 = vld [vmem:[#allocation2 + $0x42c] ss:$24 sps:$4 sm:$0xff]   ;;  %v11654_v19 = vld [vmem:[#allocation2 + $0x128] ss:$24 sps:$4 sm:$0xff]  }
 0x1ca   :  { %7603 = vmatpush2.bf16.msra.mxu0 %v11602_v20  ;;  %v11657_v20 = vld [vmem:[#allocation2 + $0x428] ss:$24 sps:$4 sm:$0xff]  }
 0x1cb   :  { %7644 = vmatpush2.bf16.msra.mxu1 %v11605_v21  ;;  %7604 = vmatprep.subr.bf16.mxu0 %v11610_v28 }
 0x1cc   :  { %7645 = vmatprep.subr.bf16.mxu1 %v11613_v29 }
 0x1ce   :  { %7605 = vmatpush2.bf16.msra.mxu0 %v11608_v30  ;;  %v11662_v30 = vld [vmem:[#allocation2 + $0xfc] ss:$24 sps:$4 sm:$0xff]  }
 0x1cf   :  { %7646 = vmatpush2.bf16.msra.mxu1 %v11611_v32  ;;  %7606 = vmatprep.subr.bf16.mxu0 %v11616_v26  ;;  %v11665_v32 = vld [vmem:[#allocation2 + $0x3fc] ss:$24 sps:$4 sm:$0xff]  }
 0x1d0   :  { %7647 = vmatprep.subr.bf16.mxu1 %v11619_v34 }
 0x1d2   :  { %7607 = vmatpush2.bf16.msra.mxu0 %v11614_v41  ;;  %v11660_v41 = vld [vmem:[#allocation2 + $0xf8] ss:$24 sps:$4 sm:$0xff]  }
 0x1d3   :  { %7648 = vmatpush2.bf16.msra.mxu1 %v11617_v42  ;;  %7608 = vmatprep.subr.bf16.mxu0 %v11622_v43  ;;  %v11663_v42 = vld [vmem:[#allocation2 + $0x3f8] ss:$24 sps:$4 sm:$0xff]  }
 0x1d4   :  { %7649 = vmatprep.subr.bf16.mxu1 %v11625_v31 }
 0x1d6   :  { %7609 = vmatpush2.bf16.msra.mxu0 %v11620_v44 }
 0x1d7   :  { %7650 = vmatpush2.bf16.msra.mxu1 %v11623_v45  ;;  %7610 = vmatprep.subr.bf16.mxu0 %v11628_v46  ;;  %v11668_v46 = vld [vmem:[#allocation2 + $0xcc] ss:$24 sps:$4 sm:$0xff]  }
 0x1d8   :  { %7651 = vmatprep.subr.bf16.mxu1 %v11631_v48  ;;  %v11671_v48 = vld [vmem:[#allocation2 + $0x3cc] ss:$24 sps:$4 sm:$0xff]  }
 0x1da   :  { %7611 = vmatpush2.bf16.msra.mxu0 %v11626_v49  ;;  %v11669_v49 = vld [vmem:[#allocation2 + $0x3c8] ss:$24 sps:$4 sm:$0xff]  }
 0x1db   :  { %7652 = vmatpush2.bf16.msra.mxu1 %v11629_v50  ;;  %7612 = vmatprep.subr.bf16.mxu0 %v11634_v52  ;;  %v11674_v50 = vld [vmem:[#allocation2 + $0x9c] ss:$24 sps:$4 sm:$0xff]  }
 0x1dc   :  { %7653 = vmatprep.subr.bf16.mxu1 %v11637_v53  ;;  %v11677_v52 = vld [vmem:[#allocation2 + $0x39c] ss:$24 sps:$4 sm:$0xff]   ;;  %v11672_v53 = vld [vmem:[#allocation2 + $0x98] ss:$24 sps:$4 sm:$0xff]  }
 0x1de   :  { %7613 = vmatpush2.bf16.msra.mxu0 %v11632_v55  ;;  %v11675_v55 = vld [vmem:[#allocation2 + $0x398] ss:$24 sps:$4 sm:$0xff]  }
 0x1df   :  { %7654 = vmatpush2.bf16.msra.mxu1 %v11635_v56  ;;  %7614 = vmatprep.subr.bf16.mxu0 %v11640_v57  ;;  %v11680_v56 = vld [vmem:[#allocation2 + $0x6c] ss:$24 sps:$4 sm:$0xff]  }
 0x1e0   :  { %7655 = vmatprep.subr.bf16.mxu1 %v11643_v58  ;;  %v11683_v57 = vld [vmem:[#allocation2 + $0x36c] ss:$24 sps:$4 sm:$0xff]   ;;  %v11678_v58 = vld [vmem:[#allocation2 + $0x68] ss:$24 sps:$4 sm:$0xff]  }
 0x1e2   :  { %7615 = vmatpush2.bf16.msra.mxu0 %v11638_v62  ;;  %v11681_v62 = vld [vmem:[#allocation2 + $0x368] ss:$24 sps:$4 sm:$0xff]  }
 0x1e3   :  { %7656 = vmatpush2.bf16.msra.mxu1 %v11641_v35  ;;  %7666 = vmatprep.subr.bf16.mxu0 %v11650_v40  ;;  %v11686_v35 = vld [vmem:[#allocation2 + $0x3c] ss:$24 sps:$4 sm:$0xff]  }
 0x1e4   :  { %7707 = vmatprep.subr.bf16.mxu1 %v11653_v8  ;;  %v11689_v40 = vld [vmem:[#allocation2 + $0x33c] ss:$24 sps:$4 sm:$0xff]   ;;  %v11684_v8 = vld [vmem:[#allocation2 + $0x38] ss:$24 sps:$4 sm:$0xff]  }
 0x1e5   :  { %v7372_v21 = vpop.f32.mrf.mxu0  ;;  %7617 = vmatmul.mubr.bf16.vlgmr.msra.gmra.mxu0 %v13410_v14 }
 0x1e6   :  { %v7413_v28 = vpop.f32.mrf.mxu1  ;;  %7658 = vmatmul.mubr.bf16.vlgmr.msra.gmra.mxu1 %v13414_v15  ;;  %v7373_v60 = vadd.f32 %v7372_v21, %v13401_v27  ;;  %7667 = vmatpush1.bf16.msra.mxu0 %v11648_v11  ;;  %v11687_v11 = vld [vmem:[#allocation2 + $0x338] ss:$24 sps:$4 sm:$0xff]   ;;  %v11701_v21 = vld [vmem:[#allocation2 + $0x5dc] ss:$24 sps:$4 sm:$0xff]  }
 0x1e7   :  { %7708 = vmatpush1.bf16.msra.mxu1 %v11651_v12  ;;  %v7374_v61 = vpop.f32.mrf.mxu0  ;;  %7668 = vmatprep.subr.bf16.mxu0 %v11656_v3  ;;  %v11692_v12 = vld [vmem:[#allocation2 + $0xc] ss:$24 sps:$4 sm:$0xff]  }
 0x1e8   :  { %v7415_v29 = vpop.f32.mrf.mxu1  ;;  %7709 = vmatprep.subr.bf16.mxu1 %v11659_v18  ;;  %v13419_v26 = vadd.f32 %v7413_v28, %v7373_v60  ;;  %v7375_v34 = vadd.f32 %v7374_v61, %v13406_v33  ;;  %7698 = vmatprep.mubr.bf16.mxu0 %v13235_v47  ;;  %v11666_v33 = vld [vmem:[#allocation2 + $0xc8] ss:$24 sps:$4 sm:$0xff]   ;;  %v11695_v3 = vld [vmem:[#allocation2 + $0x30c] ss:$24 sps:$4 sm:$0xff]   ;;  %v11696_v28 = vld [vmem:[#allocation2 + $0x2d8] ss:$24 sps:$4 sm:$0xff]  }
 0x1e9   :  { %7739 = vmatprep.mubr.bf16.mxu1 %v13240_v51  ;;  %v7376_v43 = vpop.f32.mrf.mxu0  ;;  %v11690_v18 = vld [vmem:[#allocation2 + $0x8] ss:$24 sps:$4 sm:$0xff]   ;;  %v11699_v60 = vld [vmem:[#allocation2 + $0x5d8] ss:$24 sps:$4 sm:$0xff]   ;;  %v11704_v61 = vld [vmem:[#allocation2 + $0x2ac] ss:$24 sps:$4 sm:$0xff]  }
 0x1ea   :  { %v7417_v27 = vpop.f32.mrf.mxu1  ;;  %v13424_v31 = vadd.f32 %v7415_v29, %v7375_v34  ;;  %7669 = vmatpush1.bf16.msra.mxu0 %v11654_v19  ;;  %v11693_v19 = vld [vmem:[#allocation2 + $0x308] ss:$24 sps:$4 sm:$0xff]   ;;  %v11707_v29 = vld [vmem:[#allocation2 + $0x5ac] ss:$24 sps:$4 sm:$0xff]   ;;  %v11710_v34 = vld [vmem:[#allocation2 + $0x27c] ss:$24 sps:$4 sm:$0xff]  }
 0x1eb   :  { %7710 = vmatpush1.bf16.msra.mxu1 %v11657_v20  ;;  %v7377_v44 = vpop.f32.mrf.mxu0  ;;  %7670 = vmatprep.subr.bf16.mxu0 %v11662_v30  ;;  %v11698_v20 = vld [vmem:[#allocation2 + $0x2dc] ss:$24 sps:$4 sm:$0xff]   ;;  %v11702_v30 = vld [vmem:[#allocation2 + $0x2a8] ss:$24 sps:$4 sm:$0xff]   ;;  %v11711_v43 = vld [vmem:[#allocation2 + $0x578] ss:$24 sps:$4 sm:$0xff]  }
 0x1ec   :  { %v7418_v45 = vpop.f32.mrf.mxu1  ;;  %7711 = vmatprep.subr.bf16.mxu1 %v11665_v32  ;;  %v11705_v32 = vld [vmem:[#allocation2 + $0x5a8] ss:$24 sps:$4 sm:$0xff]   ;;  %v11716_v27 = vld [vmem:[#allocation2 + $0x24c] ss:$24 sps:$4 sm:$0xff]  }
 0x1ed   :  { %v11719_v44 = vld [vmem:[#allocation2 + $0x54c] ss:$24 sps:$4 sm:$0xff]   ;;  %v11714_v45 = vld [vmem:[#allocation2 + $0x248] ss:$24 sps:$4 sm:$0xff]  }
 0x1ee   :  { %7671 = vmatpush1.bf16.msra.mxu0 %v11660_v41  ;;  %v11713_v41 = vld [vmem:[#allocation2 + $0x57c] ss:$24 sps:$4 sm:$0xff]  }
 0x1ef   :  { %7712 = vmatpush1.bf16.msra.mxu1 %v11663_v42  ;;  %7672 = vmatprep.subr.bf16.mxu0 %v11668_v46  ;;  %v11708_v42 = vld [vmem:[#allocation2 + $0x278] ss:$24 sps:$4 sm:$0xff]   ;;  %v11717_v46 = vld [vmem:[#allocation2 + $0x548] ss:$24 sps:$4 sm:$0xff]  }
 0x1f0   :  { %7713 = vmatprep.subr.bf16.mxu1 %v11671_v48  ;;  %v11722_v48 = vld [vmem:[#allocation2 + $0x21c] ss:$24 sps:$4 sm:$0xff]  }
 0x1f2   :  { %7673 = vmatpush1.bf16.msra.mxu0 %v11666_v33  ;;  %v11725_v33 = vld [vmem:[#allocation2 + $0x51c] ss:$24 sps:$4 sm:$0xff]  }
 0x1f3   :  { %7714 = vmatpush1.bf16.msra.mxu1 %v11669_v49  ;;  %7674 = vmatprep.subr.bf16.mxu0 %v11674_v50  ;;  %v11720_v49 = vld [vmem:[#allocation2 + $0x218] ss:$24 sps:$4 sm:$0xff]  }
 0x1f4   :  { %7715 = vmatprep.subr.bf16.mxu1 %v11677_v52  ;;  %v11723_v50 = vld [vmem:[#allocation2 + $0x518] ss:$24 sps:$4 sm:$0xff]   ;;  %v11728_v52 = vld [vmem:[#allocation2 + $0x1ec] ss:$24 sps:$4 sm:$0xff]  }
 0x1f6   :  { %7675 = vmatpush1.bf16.msra.mxu0 %v11672_v53  ;;  %v11731_v53 = vld [vmem:[#allocation2 + $0x4ec] ss:$24 sps:$4 sm:$0xff]  }
 0x1f7   :  { %7716 = vmatpush1.bf16.msra.mxu1 %v11675_v55  ;;  %7676 = vmatprep.subr.bf16.mxu0 %v11680_v56  ;;  %v11726_v55 = vld [vmem:[#allocation2 + $0x1e8] ss:$24 sps:$4 sm:$0xff]  }
 0x1f8   :  { %7717 = vmatprep.subr.bf16.mxu1 %v11683_v57  ;;  %v11729_v56 = vld [vmem:[#allocation2 + $0x4e8] ss:$24 sps:$4 sm:$0xff]   ;;  %v11734_v57 = vld [vmem:[#allocation2 + $0x1bc] ss:$24 sps:$4 sm:$0xff]  }
 0x1fa   :  { %7677 = vmatpush1.bf16.msra.mxu0 %v11678_v58  ;;  %v11737_v58 = vld [vmem:[#allocation2 + $0x4bc] ss:$24 sps:$4 sm:$0xff]  }
 0x1fb   :  { %7718 = vmatpush1.bf16.msra.mxu1 %v11681_v62  ;;  %7678 = vmatprep.subr.bf16.mxu0 %v11686_v35  ;;  %v11732_v62 = vld [vmem:[#allocation2 + $0x1b8] ss:$24 sps:$4 sm:$0xff]  }
 0x1fc   :  { %7719 = vmatprep.subr.bf16.mxu1 %v11689_v40  ;;  %v11735_v35 = vld [vmem:[#allocation2 + $0x4b8] ss:$24 sps:$4 sm:$0xff]   ;;  %v11740_v40 = vld [vmem:[#allocation2 + $0x18c] ss:$24 sps:$4 sm:$0xff]  }
 0x1fe   :  { %7679 = vmatpush1.bf16.msra.mxu0 %v11684_v8  ;;  %v11743_v8 = vld [vmem:[#allocation2 + $0x48c] ss:$24 sps:$4 sm:$0xff]  }
 0x1ff   :  { %7720 = vmatpush1.bf16.msra.mxu1 %v11687_v11  ;;  %7680 = vmatprep.subr.bf16.mxu0 %v11692_v12  ;;  %v11738_v11 = vld [vmem:[#allocation2 + $0x188] ss:$24 sps:$4 sm:$0xff]  }
 0x200   :  { %7721 = vmatprep.subr.bf16.mxu1 %v11695_v3  ;;  %v11741_v12 = vld [vmem:[#allocation2 + $0x488] ss:$24 sps:$4 sm:$0xff]   ;;  %v11746_v3 = vld [vmem:[#allocation2 + $0x75c] ss:$24 sps:$4 sm:$0xff]  }
 0x202   :  { %7681 = vmatpush1.bf16.msra.mxu0 %v11690_v18  ;;  %v11749_v18 = vld [vmem:[#allocation2 + $0xa5c] ss:$24 sps:$4 sm:$0xff]  }
 0x203   :  { %7722 = vmatpush1.bf16.msra.mxu1 %v11693_v19  ;;  %7682 = vmatprep.subr.bf16.mxu0 %v11698_v20  ;;  %v11744_v19 = vld [vmem:[#allocation2 + $0x758] ss:$24 sps:$4 sm:$0xff]  }
 0x204   :  { %7723 = vmatprep.subr.bf16.mxu1 %v11701_v21  ;;  %v11747_v20 = vld [vmem:[#allocation2 + $0xa58] ss:$24 sps:$4 sm:$0xff]   ;;  %v11752_v21 = vld [vmem:[#allocation2 + $0x72c] ss:$24 sps:$4 sm:$0xff]  }
 0x206   :  { %7683 = vmatpush2.bf16.msra.mxu0 %v11696_v28  ;;  %v11755_v28 = vld [vmem:[#allocation2 + $0xa2c] ss:$24 sps:$4 sm:$0xff]  }
 0x207   :  { %7724 = vmatpush2.bf16.msra.mxu1 %v11699_v60  ;;  %7684 = vmatprep.subr.bf16.mxu0 %v11704_v61  ;;  %v11750_v60 = vld [vmem:[#allocation2 + $0x728] ss:$24 sps:$4 sm:$0xff]  }
 0x208   :  { %7725 = vmatprep.subr.bf16.mxu1 %v11707_v29  ;;  %v11753_v61 = vld [vmem:[#allocation2 + $0xa28] ss:$24 sps:$4 sm:$0xff]  }
 0x20a   :  { %7685 = vmatpush2.bf16.msra.mxu0 %v11702_v30 }
 0x20b   :  { %7726 = vmatpush2.bf16.msra.mxu1 %v11705_v32  ;;  %7686 = vmatprep.subr.bf16.mxu0 %v11710_v34 }
 0x20c   :  { %7727 = vmatprep.subr.bf16.mxu1 %v11713_v41 }
 0x20e   :  { %7687 = vmatpush2.bf16.msra.mxu0 %v11708_v42  ;;  %v11758_v42 = vld [vmem:[#allocation2 + $0x6fc] ss:$24 sps:$4 sm:$0xff]  }
 0x20f   :  { %7728 = vmatpush2.bf16.msra.mxu1 %v11711_v43  ;;  %7688 = vmatprep.subr.bf16.mxu0 %v11716_v27  ;;  %v11761_v43 = vld [vmem:[#allocation2 + $0x9fc] ss:$24 sps:$4 sm:$0xff]  }
 0x210   :  { %7729 = vmatprep.subr.bf16.mxu1 %v11719_v44 }
 0x212   :  { %7689 = vmatpush2.bf16.msra.mxu0 %v11714_v45  ;;  %v11756_v45 = vld [vmem:[#allocation2 + $0x6f8] ss:$24 sps:$4 sm:$0xff]  }
 0x213   :  { %7730 = vmatpush2.bf16.msra.mxu1 %v11717_v46  ;;  %7690 = vmatprep.subr.bf16.mxu0 %v11722_v48  ;;  %v11759_v46 = vld [vmem:[#allocation2 + $0x9f8] ss:$24 sps:$4 sm:$0xff]  }
 0x214   :  { %7731 = vmatprep.subr.bf16.mxu1 %v11725_v33 }
 0x216   :  { %7691 = vmatpush2.bf16.msra.mxu0 %v11720_v49 }
 0x217   :  { %7732 = vmatpush2.bf16.msra.mxu1 %v11723_v50  ;;  %7692 = vmatprep.subr.bf16.mxu0 %v11728_v52  ;;  %v11764_v52 = vld [vmem:[#allocation2 + $0x6cc] ss:$24 sps:$4 sm:$0xff]  }
 0x218   :  { %7733 = vmatprep.subr.bf16.mxu1 %v11731_v53  ;;  %v11767_v53 = vld [vmem:[#allocation2 + $0x9cc] ss:$24 sps:$4 sm:$0xff]  }
 0x21a   :  { %7693 = vmatpush2.bf16.msra.mxu0 %v11726_v55  ;;  %v11765_v55 = vld [vmem:[#allocation2 + $0x9c8] ss:$24 sps:$4 sm:$0xff]  }
 0x21b   :  { %7734 = vmatpush2.bf16.msra.mxu1 %v11729_v56  ;;  %7694 = vmatprep.subr.bf16.mxu0 %v11734_v57  ;;  %v11770_v56 = vld [vmem:[#allocation2 + $0x69c] ss:$24 sps:$4 sm:$0xff]  }
 0x21c   :  { %7735 = vmatprep.subr.bf16.mxu1 %v11737_v58  ;;  %v11773_v57 = vld [vmem:[#allocation2 + $0x99c] ss:$24 sps:$4 sm:$0xff]   ;;  %v11768_v58 = vld [vmem:[#allocation2 + $0x698] ss:$24 sps:$4 sm:$0xff]  }
 0x21e   :  { %7695 = vmatpush2.bf16.msra.mxu0 %v11732_v62  ;;  %v11771_v62 = vld [vmem:[#allocation2 + $0x998] ss:$24 sps:$4 sm:$0xff]  }
 0x21f   :  { %7736 = vmatpush2.bf16.msra.mxu1 %v11735_v35  ;;  %7696 = vmatprep.subr.bf16.mxu0 %v11740_v40  ;;  %v11776_v35 = vld [vmem:[#allocation2 + $0x66c] ss:$24 sps:$4 sm:$0xff]  }
 0x220   :  { %7737 = vmatprep.subr.bf16.mxu1 %v11743_v8  ;;  %v11779_v40 = vld [vmem:[#allocation2 + $0x96c] ss:$24 sps:$4 sm:$0xff]   ;;  %v11774_v8 = vld [vmem:[#allocation2 + $0x668] ss:$24 sps:$4 sm:$0xff]  }
 0x222   :  { %7697 = vmatpush2.bf16.msra.mxu0 %v11738_v11  ;;  %v11777_v11 = vld [vmem:[#allocation2 + $0x968] ss:$24 sps:$4 sm:$0xff]  }
 0x223   :  { %7738 = vmatpush2.bf16.msra.mxu1 %v11741_v12  ;;  %7748 = vmatprep.subr.bf16.mxu0 %v11746_v3  ;;  %v11782_v12 = vld [vmem:[#allocation2 + $0x63c] ss:$24 sps:$4 sm:$0xff]  }
 0x224   :  { %7789 = vmatprep.subr.bf16.mxu1 %v11749_v18  ;;  %v11785_v3 = vld [vmem:[#allocation2 + $0x93c] ss:$24 sps:$4 sm:$0xff]   ;;  %v11780_v18 = vld [vmem:[#allocation2 + $0x638] ss:$24 sps:$4 sm:$0xff]  }
 0x225   :  { %v7454_v29 = vpop.f32.mrf.mxu0  ;;  %7699 = vmatmul.mubr.bf16.vlgmr.msra.gmra.mxu0 %v13244_v6 }
 0x226   :  { %v7495_v30 = vpop.f32.mrf.mxu1  ;;  %7740 = vmatmul.mubr.bf16.vlgmr.msra.gmra.mxu1 %v13246_v7  ;;  %v7455_v32 = vadd.f32 %v7454_v29, %v13419_v26  ;;  %7749 = vmatpush1.bf16.msra.mxu0 %v11744_v19  ;;  %v11783_v19 = vld [vmem:[#allocation2 + $0x938] ss:$24 sps:$4 sm:$0xff]   ;;  %v11797_v29 = vld [vmem:[#allocation2 + $0xbdc] ss:$24 sps:$4 sm:$0xff]  }
 0x227   :  { %7790 = vmatpush1.bf16.msra.mxu1 %v11747_v20  ;;  %v7456_v34 = vpop.f32.mrf.mxu0  ;;  %7750 = vmatprep.subr.bf16.mxu0 %v11752_v21  ;;  %v11788_v20 = vld [vmem:[#allocation2 + $0x60c] ss:$24 sps:$4 sm:$0xff]  }
 0x228   :  { %v7497_v41 = vpop.f32.mrf.mxu1  ;;  %7791 = vmatprep.subr.bf16.mxu1 %v11755_v28  ;;  %v13429_v27 = vadd.f32 %v7495_v30, %v7455_v32  ;;  %v7457_v44 = vadd.f32 %v7456_v34, %v13424_v31  ;;  %7780 = vmatprep.mubr.bf16.mxu0 %v13262_v36  ;;  %v11762_v31 = vld [vmem:[#allocation2 + $0x6c8] ss:$24 sps:$4 sm:$0xff]   ;;  %v11791_v21 = vld [vmem:[#allocation2 + $0x90c] ss:$24 sps:$4 sm:$0xff]   ;;  %v11792_v30 = vld [vmem:[#allocation2 + $0x8d8] ss:$24 sps:$4 sm:$0xff]  }
 0x229   :  { %7821 = vmatprep.mubr.bf16.mxu1 %v13266_v37  ;;  %v7458_v48 = vpop.f32.mrf.mxu0  ;;  %v11786_v28 = vld [vmem:[#allocation2 + $0x608] ss:$24 sps:$4 sm:$0xff]   ;;  %v11795_v32 = vld [vmem:[#allocation2 + $0xbd8] ss:$24 sps:$4 sm:$0xff]   ;;  %v11800_v34 = vld [vmem:[#allocation2 + $0x8ac] ss:$24 sps:$4 sm:$0xff]  }
 0x22a   :  { %v7499_v26 = vpop.f32.mrf.mxu1  ;;  %v13434_v33 = vadd.f32 %v7497_v41, %v7457_v44  ;;  %7751 = vmatpush1.bf16.msra.mxu0 %v11750_v60  ;;  %v11789_v60 = vld [vmem:[#allocation2 + $0x908] ss:$24 sps:$4 sm:$0xff]   ;;  %v11803_v41 = vld [vmem:[#allocation2 + $0xbac] ss:$24 sps:$4 sm:$0xff]   ;;  %v11806_v44 = vld [vmem:[#allocation2 + $0x87c] ss:$24 sps:$4 sm:$0xff]  }
 0x22b   :  { %7792 = vmatpush1.bf16.msra.mxu1 %v11753_v61  ;;  %v7459_v49 = vpop.f32.mrf.mxu0  ;;  %7752 = vmatprep.subr.bf16.mxu0 %v11758_v42  ;;  %v11794_v61 = vld [vmem:[#allocation2 + $0x8dc] ss:$24 sps:$4 sm:$0xff]   ;;  %v11798_v42 = vld [vmem:[#allocation2 + $0x8a8] ss:$24 sps:$4 sm:$0xff]   ;;  %v11807_v48 = vld [vmem:[#allocation2 + $0xb78] ss:$24 sps:$4 sm:$0xff]  }
 0x22c   :  { %v7500_v50 = vpop.f32.mrf.mxu1  ;;  %7793 = vmatprep.subr.bf16.mxu1 %v11761_v43  ;;  %v11801_v43 = vld [vmem:[#allocation2 + $0xba8] ss:$24 sps:$4 sm:$0xff]   ;;  %v11812_v26 = vld [vmem:[#allocation2 + $0x84c] ss:$24 sps:$4 sm:$0xff]  }
 0x22d   :  { %v11815_v49 = vld [vmem:[#allocation2 + $0xb4c] ss:$24 sps:$4 sm:$0xff]   ;;  %v11810_v50 = vld [vmem:[#allocation2 + $0x848] ss:$24 sps:$4 sm:$0xff]  }
 0x22e   :  { %7753 = vmatpush1.bf16.msra.mxu0 %v11756_v45  ;;  %v11809_v45 = vld [vmem:[#allocation2 + $0xb7c] ss:$24 sps:$4 sm:$0xff]  }
 0x22f   :  { %7794 = vmatpush1.bf16.msra.mxu1 %v11759_v46  ;;  %7754 = vmatprep.subr.bf16.mxu0 %v11764_v52  ;;  %v11804_v46 = vld [vmem:[#allocation2 + $0x878] ss:$24 sps:$4 sm:$0xff]   ;;  %v11813_v52 = vld [vmem:[#allocation2 + $0xb48] ss:$24 sps:$4 sm:$0xff]  }
 0x230   :  { %7795 = vmatprep.subr.bf16.mxu1 %v11767_v53  ;;  %v11818_v53 = vld [vmem:[#allocation2 + $0x81c] ss:$24 sps:$4 sm:$0xff]  }
 0x232   :  { %7755 = vmatpush1.bf16.msra.mxu0 %v11762_v31  ;;  %v11821_v31 = vld [vmem:[#allocation2 + $0xb1c] ss:$24 sps:$4 sm:$0xff]  }
 0x233   :  { %7796 = vmatpush1.bf16.msra.mxu1 %v11765_v55  ;;  %7756 = vmatprep.subr.bf16.mxu0 %v11770_v56  ;;  %v11816_v55 = vld [vmem:[#allocation2 + $0x818] ss:$24 sps:$4 sm:$0xff]  }
 0x234   :  { %7797 = vmatprep.subr.bf16.mxu1 %v11773_v57  ;;  %v11819_v56 = vld [vmem:[#allocation2 + $0xb18] ss:$24 sps:$4 sm:$0xff]   ;;  %v11824_v57 = vld [vmem:[#allocation2 + $0x7ec] ss:$24 sps:$4 sm:$0xff]  }
 0x236   :  { %7757 = vmatpush1.bf16.msra.mxu0 %v11768_v58  ;;  %v11827_v58 = vld [vmem:[#allocation2 + $0xaec] ss:$24 sps:$4 sm:$0xff]  }
 0x237   :  { %7798 = vmatpush1.bf16.msra.mxu1 %v11771_v62  ;;  %7758 = vmatprep.subr.bf16.mxu0 %v11776_v35  ;;  %v11822_v62 = vld [vmem:[#allocation2 + $0x7e8] ss:$24 sps:$4 sm:$0xff]  }
 0x238   :  { %7799 = vmatprep.subr.bf16.mxu1 %v11779_v40  ;;  %v11825_v35 = vld [vmem:[#allocation2 + $0xae8] ss:$24 sps:$4 sm:$0xff]   ;;  %v11830_v40 = vld [vmem:[#allocation2 + $0x7bc] ss:$24 sps:$4 sm:$0xff]  }
 0x23a   :  { %7759 = vmatpush1.bf16.msra.mxu0 %v11774_v8  ;;  %v11833_v8 = vld [vmem:[#allocation2 + $0xabc] ss:$24 sps:$4 sm:$0xff]  }
 0x23b   :  { %7800 = vmatpush1.bf16.msra.mxu1 %v11777_v11  ;;  %7760 = vmatprep.subr.bf16.mxu0 %v11782_v12  ;;  %v11828_v11 = vld [vmem:[#allocation2 + $0x7b8] ss:$24 sps:$4 sm:$0xff]  }
 0x23c   :  { %7801 = vmatprep.subr.bf16.mxu1 %v11785_v3  ;;  %v11831_v12 = vld [vmem:[#allocation2 + $0xab8] ss:$24 sps:$4 sm:$0xff]   ;;  %v11836_v3 = vld [vmem:[#allocation2 + $0x78c] ss:$24 sps:$4 sm:$0xff]  }
 0x23e   :  { %7761 = vmatpush1.bf16.msra.mxu0 %v11780_v18  ;;  %v11839_v18 = vld [vmem:[#allocation2 + $0xa8c] ss:$24 sps:$4 sm:$0xff]  }
 0x23f   :  { %7802 = vmatpush1.bf16.msra.mxu1 %v11783_v19  ;;  %7762 = vmatprep.subr.bf16.mxu0 %v11788_v20  ;;  %v11834_v19 = vld [vmem:[#allocation2 + $0x788] ss:$24 sps:$4 sm:$0xff]  }
 0x240   :  { %7803 = vmatprep.subr.bf16.mxu1 %v11791_v21  ;;  %v11837_v20 = vld [vmem:[#allocation2 + $0xa88] ss:$24 sps:$4 sm:$0xff]   ;;  %v11842_v21 = vld [vmem:[#allocation2 + $0xd5c] ss:$24 sps:$4 sm:$0xff]  }
 0x242   :  { %7763 = vmatpush1.bf16.msra.mxu0 %v11786_v28  ;;  %v11845_v28 = vld [vmem:[#allocation2 + $0x105c] ss:$24 sps:$4 sm:$0xff]  }
 0x243   :  { %7804 = vmatpush1.bf16.msra.mxu1 %v11789_v60  ;;  %7764 = vmatprep.subr.bf16.mxu0 %v11794_v61  ;;  %v11840_v60 = vld [vmem:[#allocation2 + $0xd58] ss:$24 sps:$4 sm:$0xff]  }
 0x244   :  { %7805 = vmatprep.subr.bf16.mxu1 %v11797_v29  ;;  %v11843_v61 = vld [vmem:[#allocation2 + $0x1058] ss:$24 sps:$4 sm:$0xff]   ;;  %v11848_v29 = vld [vmem:[#allocation2 + $0xd2c] ss:$24 sps:$4 sm:$0xff]  }
 0x246   :  { %7765 = vmatpush2.bf16.msra.mxu0 %v11792_v30  ;;  %v11851_v30 = vld [vmem:[#allocation2 + $0x102c] ss:$24 sps:$4 sm:$0xff]  }
 0x247   :  { %7806 = vmatpush2.bf16.msra.mxu1 %v11795_v32  ;;  %7766 = vmatprep.subr.bf16.mxu0 %v11800_v34  ;;  %v11846_v32 = vld [vmem:[#allocation2 + $0xd28] ss:$24 sps:$4 sm:$0xff]  }
 0x248   :  { %7807 = vmatprep.subr.bf16.mxu1 %v11803_v41  ;;  %v11849_v34 = vld [vmem:[#allocation2 + $0x1028] ss:$24 sps:$4 sm:$0xff]  }
 0x24a   :  { %7767 = vmatpush2.bf16.msra.mxu0 %v11798_v42 }
 0x24b   :  { %7808 = vmatpush2.bf16.msra.mxu1 %v11801_v43  ;;  %7768 = vmatprep.subr.bf16.mxu0 %v11806_v44 }
 0x24c   :  { %7809 = vmatprep.subr.bf16.mxu1 %v11809_v45 }
 0x24e   :  { %7769 = vmatpush2.bf16.msra.mxu0 %v11804_v46  ;;  %v11854_v46 = vld [vmem:[#allocation2 + $0xcfc] ss:$24 sps:$4 sm:$0xff]  }
 0x24f   :  { %7810 = vmatpush2.bf16.msra.mxu1 %v11807_v48  ;;  %7770 = vmatprep.subr.bf16.mxu0 %v11812_v26  ;;  %v11857_v48 = vld [vmem:[#allocation2 + $0xffc] ss:$24 sps:$4 sm:$0xff]  }
 0x250   :  { %7811 = vmatprep.subr.bf16.mxu1 %v11815_v49 }
 0x252   :  { %7771 = vmatpush2.bf16.msra.mxu0 %v11810_v50  ;;  %v11852_v50 = vld [vmem:[#allocation2 + $0xcf8] ss:$24 sps:$4 sm:$0xff]  }
 0x253   :  { %7812 = vmatpush2.bf16.msra.mxu1 %v11813_v52  ;;  %7772 = vmatprep.subr.bf16.mxu0 %v11818_v53  ;;  %v11855_v52 = vld [vmem:[#allocation2 + $0xff8] ss:$24 sps:$4 sm:$0xff]  }
 0x254   :  { %7813 = vmatprep.subr.bf16.mxu1 %v11821_v31 }
 0x256   :  { %7773 = vmatpush2.bf16.msra.mxu0 %v11816_v55 }
 0x257   :  { %7814 = vmatpush2.bf16.msra.mxu1 %v11819_v56  ;;  %7774 = vmatprep.subr.bf16.mxu0 %v11824_v57  ;;  %v11860_v57 = vld [vmem:[#allocation2 + $0xccc] ss:$24 sps:$4 sm:$0xff]  }
 0x258   :  { %7815 = vmatprep.subr.bf16.mxu1 %v11827_v58  ;;  %v11863_v58 = vld [vmem:[#allocation2 + $0xfcc] ss:$24 sps:$4 sm:$0xff]  }
 0x25a   :  { %7775 = vmatpush2.bf16.msra.mxu0 %v11822_v62  ;;  %v11861_v62 = vld [vmem:[#allocation2 + $0xfc8] ss:$24 sps:$4 sm:$0xff]  }
 0x25b   :  { %7816 = vmatpush2.bf16.msra.mxu1 %v11825_v35  ;;  %7776 = vmatprep.subr.bf16.mxu0 %v11830_v40  ;;  %v11866_v35 = vld [vmem:[#allocation2 + $0xc9c] ss:$24 sps:$4 sm:$0xff]  }
 0x25c   :  { %7817 = vmatprep.subr.bf16.mxu1 %v11833_v8  ;;  %v11869_v40 = vld [vmem:[#allocation2 + $0xf9c] ss:$24 sps:$4 sm:$0xff]   ;;  %v11864_v8 = vld [vmem:[#allocation2 + $0xc98] ss:$24 sps:$4 sm:$0xff]  }
 0x25e   :  { %7777 = vmatpush2.bf16.msra.mxu0 %v11828_v11  ;;  %v11867_v11 = vld [vmem:[#allocation2 + $0xf98] ss:$24 sps:$4 sm:$0xff]  }
 0x25f   :  { %7818 = vmatpush2.bf16.msra.mxu1 %v11831_v12  ;;  %7778 = vmatprep.subr.bf16.mxu0 %v11836_v3  ;;  %v11872_v12 = vld [vmem:[#allocation2 + $0xc6c] ss:$24 sps:$4 sm:$0xff]  }
 0x260   :  { %7819 = vmatprep.subr.bf16.mxu1 %v11839_v18  ;;  %v11875_v3 = vld [vmem:[#allocation2 + $0xf6c] ss:$24 sps:$4 sm:$0xff]   ;;  %v11870_v18 = vld [vmem:[#allocation2 + $0xc68] ss:$24 sps:$4 sm:$0xff]  }
 0x262   :  { %7779 = vmatpush2.bf16.msra.mxu0 %v11834_v19  ;;  %v11873_v19 = vld [vmem:[#allocation2 + $0xf68] ss:$24 sps:$4 sm:$0xff]  }
 0x263   :  { %7820 = vmatpush2.bf16.msra.mxu1 %v11837_v20  ;;  %7830 = vmatprep.subr.bf16.mxu0 %v11842_v21  ;;  %v11878_v20 = vld [vmem:[#allocation2 + $0xc3c] ss:$24 sps:$4 sm:$0xff]  }
 0x264   :  { %7871 = vmatprep.subr.bf16.mxu1 %v11845_v28  ;;  %v11881_v21 = vld [vmem:[#allocation2 + $0xf3c] ss:$24 sps:$4 sm:$0xff]   ;;  %v11876_v28 = vld [vmem:[#allocation2 + $0xc38] ss:$24 sps:$4 sm:$0xff]  }
 0x265   :  { %v7536_v41 = vpop.f32.mrf.mxu0  ;;  %7781 = vmatmul.mubr.bf16.vlgmr.msra.gmra.mxu0 %v13272_v16 }
 0x266   :  { %v7577_v42 = vpop.f32.mrf.mxu1  ;;  %7822 = vmatmul.mubr.bf16.vlgmr.msra.gmra.mxu1 %v13276_v17  ;;  %v7537_v43 = vadd.f32 %v7536_v41, %v13429_v27  ;;  %7831 = vmatpush1.bf16.msra.mxu0 %v11840_v60  ;;  %v11879_v60 = vld [vmem:[#allocation2 + $0xf38] ss:$24 sps:$4 sm:$0xff]   ;;  %v11893_v41 = vld [vmem:[#allocation2 + $0x11dc] ss:$24 sps:$4 sm:$0xff]  }
 0x267   :  { %7872 = vmatpush1.bf16.msra.mxu1 %v11843_v61  ;;  %v7538_v44 = vpop.f32.mrf.mxu0  ;;  %7832 = vmatprep.subr.bf16.mxu0 %v11848_v29  ;;  %v11884_v61 = vld [vmem:[#allocation2 + $0xc0c] ss:$24 sps:$4 sm:$0xff]  }
 0x268   :  { %v7579_v45 = vpop.f32.mrf.mxu1  ;;  %7873 = vmatprep.subr.bf16.mxu1 %v11851_v30  ;;  %v13439_v26 = vadd.f32 %v7577_v42, %v7537_v43  ;;  %v7539_v49 = vadd.f32 %v7538_v44, %v13434_v33  ;;  %7862 = vmatprep.mubr.bf16.mxu0 %v13290_v24  ;;  %v11858_v33 = vld [vmem:[#allocation2 + $0xcc8] ss:$24 sps:$4 sm:$0xff]   ;;  %v11887_v29 = vld [vmem:[#allocation2 + $0xf0c] ss:$24 sps:$4 sm:$0xff]   ;;  %v11888_v42 = vld [vmem:[#allocation2 + $0xed8] ss:$24 sps:$4 sm:$0xff]  }
 0x269   :  { %7903 = vmatprep.mubr.bf16.mxu1 %v13294_v25  ;;  %v7540_v53 = vpop.f32.mrf.mxu0  ;;  %v11882_v30 = vld [vmem:[#allocation2 + $0xc08] ss:$24 sps:$4 sm:$0xff]   ;;  %v11891_v43 = vld [vmem:[#allocation2 + $0x11d8] ss:$24 sps:$4 sm:$0xff]   ;;  %v11896_v44 = vld [vmem:[#allocation2 + $0xeac] ss:$24 sps:$4 sm:$0xff]  }
 0x26a   :  { %v7581_v27 = vpop.f32.mrf.mxu1  ;;  %v13444_v31 = vadd.f32 %v7579_v45, %v7539_v49  ;;  %7833 = vmatpush1.bf16.msra.mxu0 %v11846_v32  ;;  %v11885_v32 = vld [vmem:[#allocation2 + $0xf08] ss:$24 sps:$4 sm:$0xff]   ;;  %v11899_v45 = vld [vmem:[#allocation2 + $0x11ac] ss:$24 sps:$4 sm:$0xff]   ;;  %v11902_v49 = vld [vmem:[#allocation2 + $0xe7c] ss:$24 sps:$4 sm:$0xff]  }
 0x26b   :  { %7874 = vmatpush1.bf16.msra.mxu1 %v11849_v34  ;;  %v7541_v55 = vpop.f32.mrf.mxu0  ;;  %7834 = vmatprep.subr.bf16.mxu0 %v11854_v46  ;;  %v11890_v34 = vld [vmem:[#allocation2 + $0xedc] ss:$24 sps:$4 sm:$0xff]   ;;  %v11894_v46 = vld [vmem:[#allocation2 + $0xea8] ss:$24 sps:$4 sm:$0xff]   ;;  %v11903_v53 = vld [vmem:[#allocation2 + $0x1178] ss:$24 sps:$4 sm:$0xff]  }
 0x26c   :  { %v7582_v56 = vpop.f32.mrf.mxu1  ;;  %7875 = vmatprep.subr.bf16.mxu1 %v11857_v48  ;;  %v11897_v48 = vld [vmem:[#allocation2 + $0x11a8] ss:$24 sps:$4 sm:$0xff]   ;;  %v11908_v27 = vld [vmem:[#allocation2 + $0xe4c] ss:$24 sps:$4 sm:$0xff]  }
 0x26d   :  { %v11911_v55 = vld [vmem:[#allocation2 + $0x114c] ss:$24 sps:$4 sm:$0xff]   ;;  %v11906_v56 = vld [vmem:[#allocation2 + $0xe48] ss:$24 sps:$4 sm:$0xff]  }
 0x26e   :  { %7835 = vmatpush1.bf16.msra.mxu0 %v11852_v50  ;;  %v11905_v50 = vld [vmem:[#allocation2 + $0x117c] ss:$24 sps:$4 sm:$0xff]  }
 0x26f   :  { %7876 = vmatpush1.bf16.msra.mxu1 %v11855_v52  ;;  %7836 = vmatprep.subr.bf16.mxu0 %v11860_v57  ;;  %v11900_v52 = vld [vmem:[#allocation2 + $0xe78] ss:$24 sps:$4 sm:$0xff]   ;;  %v11909_v57 = vld [vmem:[#allocation2 + $0x1148] ss:$24 sps:$4 sm:$0xff]  }
 0x270   :  { %7877 = vmatprep.subr.bf16.mxu1 %v11863_v58  ;;  %v11914_v58 = vld [vmem:[#allocation2 + $0xe1c] ss:$24 sps:$4 sm:$0xff]  }
 0x272   :  { %7837 = vmatpush1.bf16.msra.mxu0 %v11858_v33  ;;  %v11917_v33 = vld [vmem:[#allocation2 + $0x111c] ss:$24 sps:$4 sm:$0xff]  }
 0x273   :  { %7878 = vmatpush1.bf16.msra.mxu1 %v11861_v62  ;;  %7838 = vmatprep.subr.bf16.mxu0 %v11866_v35  ;;  %v11912_v62 = vld [vmem:[#allocation2 + $0xe18] ss:$24 sps:$4 sm:$0xff]  }
 0x274   :  { %7879 = vmatprep.subr.bf16.mxu1 %v11869_v40  ;;  %v11915_v35 = vld [vmem:[#allocation2 + $0x1118] ss:$24 sps:$4 sm:$0xff]   ;;  %v11920_v40 = vld [vmem:[#allocation2 + $0xdec] ss:$24 sps:$4 sm:$0xff]  }
 0x276   :  { %7839 = vmatpush1.bf16.msra.mxu0 %v11864_v8  ;;  %v11923_v8 = vld [vmem:[#allocation2 + $0x10ec] ss:$24 sps:$4 sm:$0xff]  }
 0x277   :  { %7880 = vmatpush1.bf16.msra.mxu1 %v11867_v11  ;;  %7840 = vmatprep.subr.bf16.mxu0 %v11872_v12  ;;  %v11918_v11 = vld [vmem:[#allocation2 + $0xde8] ss:$24 sps:$4 sm:$0xff]  }
 0x278   :  { %7881 = vmatprep.subr.bf16.mxu1 %v11875_v3  ;;  %v11921_v12 = vld [vmem:[#allocation2 + $0x10e8] ss:$24 sps:$4 sm:$0xff]   ;;  %v11926_v3 = vld [vmem:[#allocation2 + $0xdbc] ss:$24 sps:$4 sm:$0xff]  }
 0x27a   :  { %7841 = vmatpush1.bf16.msra.mxu0 %v11870_v18  ;;  %v11929_v18 = vld [vmem:[#allocation2 + $0x10bc] ss:$24 sps:$4 sm:$0xff]  }
 0x27b   :  { %7882 = vmatpush1.bf16.msra.mxu1 %v11873_v19  ;;  %7842 = vmatprep.subr.bf16.mxu0 %v11878_v20  ;;  %v11924_v19 = vld [vmem:[#allocation2 + $0xdb8] ss:$24 sps:$4 sm:$0xff]  }
 0x27c   :  { %7883 = vmatprep.subr.bf16.mxu1 %v11881_v21  ;;  %v11927_v20 = vld [vmem:[#allocation2 + $0x10b8] ss:$24 sps:$4 sm:$0xff]   ;;  %v11932_v21 = vld [vmem:[#allocation2 + $0xd8c] ss:$24 sps:$4 sm:$0xff]  }
 0x27e   :  { %7843 = vmatpush1.bf16.msra.mxu0 %v11876_v28  ;;  %v11935_v28 = vld [vmem:[#allocation2 + $0x108c] ss:$24 sps:$4 sm:$0xff]  }
 0x27f   :  { %7884 = vmatpush1.bf16.msra.mxu1 %v11879_v60  ;;  %7844 = vmatprep.subr.bf16.mxu0 %v11884_v61  ;;  %v11930_v60 = vld [vmem:[#allocation2 + $0xd88] ss:$24 sps:$4 sm:$0xff]  }
 0x280   :  { %7885 = vmatprep.subr.bf16.mxu1 %v11887_v29  ;;  %v11933_v61 = vld [vmem:[#allocation2 + $0x1088] ss:$24 sps:$4 sm:$0xff]   ;;  %v11938_v29 = vld [vmem:[#allocation2 + $0x135c] ss:$24 sps:$4 sm:$0xff]  }
 0x282   :  { %7845 = vmatpush1.bf16.msra.mxu0 %v11882_v30  ;;  %v11941_v30 = vld [vmem:[#allocation2 + $0x165c] ss:$24 sps:$4 sm:$0xff]  }
 0x283   :  { %7886 = vmatpush1.bf16.msra.mxu1 %v11885_v32  ;;  %7846 = vmatprep.subr.bf16.mxu0 %v11890_v34  ;;  %v11936_v32 = vld [vmem:[#allocation2 + $0x1358] ss:$24 sps:$4 sm:$0xff]  }
 0x284   :  { %7887 = vmatprep.subr.bf16.mxu1 %v11893_v41  ;;  %v11939_v34 = vld [vmem:[#allocation2 + $0x1658] ss:$24 sps:$4 sm:$0xff]   ;;  %v11944_v41 = vld [vmem:[#allocation2 + $0x132c] ss:$24 sps:$4 sm:$0xff]  }
 0x286   :  { %7847 = vmatpush2.bf16.msra.mxu0 %v11888_v42  ;;  %v11947_v42 = vld [vmem:[#allocation2 + $0x162c] ss:$24 sps:$4 sm:$0xff]  }
 0x287   :  { %7888 = vmatpush2.bf16.msra.mxu1 %v11891_v43  ;;  %7848 = vmatprep.subr.bf16.mxu0 %v11896_v44  ;;  %v11942_v43 = vld [vmem:[#allocation2 + $0x1328] ss:$24 sps:$4 sm:$0xff]  }
 0x288   :  { %7889 = vmatprep.subr.bf16.mxu1 %v11899_v45  ;;  %v11945_v44 = vld [vmem:[#allocation2 + $0x1628] ss:$24 sps:$4 sm:$0xff]  }
 0x28a   :  { %7849 = vmatpush2.bf16.msra.mxu0 %v11894_v46 }
 0x28b   :  { %7890 = vmatpush2.bf16.msra.mxu1 %v11897_v48  ;;  %7850 = vmatprep.subr.bf16.mxu0 %v11902_v49 }
 0x28c   :  { %7891 = vmatprep.subr.bf16.mxu1 %v11905_v50 }
 0x28e   :  { %7851 = vmatpush2.bf16.msra.mxu0 %v11900_v52  ;;  %v11950_v52 = vld [vmem:[#allocation2 + $0x12fc] ss:$24 sps:$4 sm:$0xff]  }
 0x28f   :  { %7892 = vmatpush2.bf16.msra.mxu1 %v11903_v53  ;;  %7852 = vmatprep.subr.bf16.mxu0 %v11908_v27  ;;  %v11953_v53 = vld [vmem:[#allocation2 + $0x15fc] ss:$24 sps:$4 sm:$0xff]  }
 0x290   :  { %7893 = vmatprep.subr.bf16.mxu1 %v11911_v55 }
 0x292   :  { %7853 = vmatpush2.bf16.msra.mxu0 %v11906_v56  ;;  %v11948_v56 = vld [vmem:[#allocation2 + $0x12f8] ss:$24 sps:$4 sm:$0xff]  }
 0x293   :  { %7894 = vmatpush2.bf16.msra.mxu1 %v11909_v57  ;;  %7854 = vmatprep.subr.bf16.mxu0 %v11914_v58  ;;  %v11951_v57 = vld [vmem:[#allocation2 + $0x15f8] ss:$24 sps:$4 sm:$0xff]  }
 0x294   :  { %7895 = vmatprep.subr.bf16.mxu1 %v11917_v33 }
 0x296   :  { %7855 = vmatpush2.bf16.msra.mxu0 %v11912_v62 }
 0x297   :  { %7896 = vmatpush2.bf16.msra.mxu1 %v11915_v35  ;;  %7856 = vmatprep.subr.bf16.mxu0 %v11920_v40  ;;  %v11956_v40 = vld [vmem:[#allocation2 + $0x12cc] ss:$24 sps:$4 sm:$0xff]  }
 0x298   :  { %7897 = vmatprep.subr.bf16.mxu1 %v11923_v8  ;;  %v11959_v8 = vld [vmem:[#allocation2 + $0x15cc] ss:$24 sps:$4 sm:$0xff]  }
 0x29a   :  { %7857 = vmatpush2.bf16.msra.mxu0 %v11918_v11  ;;  %v11957_v11 = vld [vmem:[#allocation2 + $0x15c8] ss:$24 sps:$4 sm:$0xff]  }
 0x29b   :  { %7898 = vmatpush2.bf16.msra.mxu1 %v11921_v12  ;;  %7858 = vmatprep.subr.bf16.mxu0 %v11926_v3  ;;  %v11962_v12 = vld [vmem:[#allocation2 + $0x129c] ss:$24 sps:$4 sm:$0xff]  }
 0x29c   :  { %7899 = vmatprep.subr.bf16.mxu1 %v11929_v18  ;;  %v11965_v3 = vld [vmem:[#allocation2 + $0x159c] ss:$24 sps:$4 sm:$0xff]   ;;  %v11960_v18 = vld [vmem:[#allocation2 + $0x1298] ss:$24 sps:$4 sm:$0xff]  }
 0x29e   :  { %7859 = vmatpush2.bf16.msra.mxu0 %v11924_v19  ;;  %v11963_v19 = vld [vmem:[#allocation2 + $0x1598] ss:$24 sps:$4 sm:$0xff]  }
 0x29f   :  { %7900 = vmatpush2.bf16.msra.mxu1 %v11927_v20  ;;  %7860 = vmatprep.subr.bf16.mxu0 %v11932_v21  ;;  %v11968_v20 = vld [vmem:[#allocation2 + $0x126c] ss:$24 sps:$4 sm:$0xff]  }
 0x2a0   :  { %7901 = vmatprep.subr.bf16.mxu1 %v11935_v28  ;;  %v11971_v21 = vld [vmem:[#allocation2 + $0x156c] ss:$24 sps:$4 sm:$0xff]   ;;  %v11966_v28 = vld [vmem:[#allocation2 + $0x1268] ss:$24 sps:$4 sm:$0xff]  }
 0x2a2   :  { %7861 = vmatpush2.bf16.msra.mxu0 %v11930_v60  ;;  %v11969_v60 = vld [vmem:[#allocation2 + $0x1568] ss:$24 sps:$4 sm:$0xff]  }
 0x2a3   :  { %7902 = vmatpush2.bf16.msra.mxu1 %v11933_v61  ;;  %7912 = vmatprep.subr.bf16.mxu0 %v11938_v29  ;;  %v11974_v61 = vld [vmem:[#allocation2 + $0x123c] ss:$24 sps:$4 sm:$0xff]  }
 0x2a4   :  { %7953 = vmatprep.subr.bf16.mxu1 %v11941_v30  ;;  %v11977_v29 = vld [vmem:[#allocation2 + $0x153c] ss:$24 sps:$4 sm:$0xff]   ;;  %v11972_v30 = vld [vmem:[#allocation2 + $0x1238] ss:$24 sps:$4 sm:$0xff]  }
 0x2a5   :  { %v7618_v45 = vpop.f32.mrf.mxu0  ;;  %7863 = vmatmul.mubr.bf16.vlgmr.msra.gmra.mxu0 %v13307_v38 }
 0x2a6   :  { %v7659_v46 = vpop.f32.mrf.mxu1  ;;  %7904 = vmatmul.mubr.bf16.vlgmr.msra.gmra.mxu1 %v13311_v39  ;;  %v7619_v48 = vadd.f32 %v7618_v45, %v13439_v26  ;;  %7913 = vmatpush1.bf16.msra.mxu0 %v11936_v32  ;;  %v11975_v32 = vld [vmem:[#allocation2 + $0x1538] ss:$24 sps:$4 sm:$0xff]   ;;  %v11989_v45 = vld [vmem:[#allocation2 + $0x17dc] ss:$24 sps:$4 sm:$0xff]  }
 0x2a7   :  { %7954 = vmatpush1.bf16.msra.mxu1 %v11939_v34  ;;  %v7620_v49 = vpop.f32.mrf.mxu0  ;;  %7914 = vmatprep.subr.bf16.mxu0 %v11944_v41  ;;  %v11980_v34 = vld [vmem:[#allocation2 + $0x120c] ss:$24 sps:$4 sm:$0xff]  }
 0x2a8   :  { %v7661_v50 = vpop.f32.mrf.mxu1  ;;  %7955 = vmatprep.subr.bf16.mxu1 %v11947_v42  ;;  %v13449_v27 = vadd.f32 %v7659_v46, %v7619_v48  ;;  %v7621_v55 = vadd.f32 %v7620_v49, %v13444_v31  ;;  %7944 = vmatprep.mubr.bf16.mxu0 %v13320_v22  ;;  %v11954_v31 = vld [vmem:[#allocation2 + $0x12c8] ss:$24 sps:$4 sm:$0xff]   ;;  %v11983_v41 = vld [vmem:[#allocation2 + $0x150c] ss:$24 sps:$4 sm:$0xff]   ;;  %v11984_v46 = vld [vmem:[#allocation2 + $0x14d8] ss:$24 sps:$4 sm:$0xff]  }
 0x2a9   :  { %7985 = vmatprep.mubr.bf16.mxu1 %v13324_v23  ;;  %v7622_v58 = vpop.f32.mrf.mxu0  ;;  %v11978_v42 = vld [vmem:[#allocation2 + $0x1208] ss:$24 sps:$4 sm:$0xff]   ;;  %v11987_v48 = vld [vmem:[#allocation2 + $0x17d8] ss:$24 sps:$4 sm:$0xff]   ;;  %v11992_v49 = vld [vmem:[#allocation2 + $0x14ac] ss:$24 sps:$4 sm:$0xff]  }
 0x2aa   :  { %v7663_v26 = vpop.f32.mrf.mxu1  ;;  %v13454_v33 = vadd.f32 %v7661_v50, %v7621_v55  ;;  %7915 = vmatpush1.bf16.msra.mxu0 %v11942_v43  ;;  %v11981_v43 = vld [vmem:[#allocation2 + $0x1508] ss:$24 sps:$4 sm:$0xff]   ;;  %v11995_v50 = vld [vmem:[#allocation2 + $0x17ac] ss:$24 sps:$4 sm:$0xff]   ;;  %v11998_v55 = vld [vmem:[#allocation2 + $0x147c] ss:$24 sps:$4 sm:$0xff]  }
 0x2ab   :  { %7956 = vmatpush1.bf16.msra.mxu1 %v11945_v44  ;;  %v7623_v62 = vpop.f32.mrf.mxu0  ;;  %7916 = vmatprep.subr.bf16.mxu0 %v11950_v52  ;;  %v11986_v44 = vld [vmem:[#allocation2 + $0x14dc] ss:$24 sps:$4 sm:$0xff]   ;;  %v11990_v52 = vld [vmem:[#allocation2 + $0x14a8] ss:$24 sps:$4 sm:$0xff]   ;;  %v11999_v58 = vld [vmem:[#allocation2 + $0x1778] ss:$24 sps:$4 sm:$0xff]  }
 0x2ac   :  { %v7664_v35 = vpop.f32.mrf.mxu1  ;;  %7957 = vmatprep.subr.bf16.mxu1 %v11953_v53  ;;  %v11993_v53 = vld [vmem:[#allocation2 + $0x17a8] ss:$24 sps:$4 sm:$0xff]   ;;  %v12004_v26 = vld [vmem:[#allocation2 + $0x144c] ss:$24 sps:$4 sm:$0xff]  }
 0x2ad   :  { %v12007_v62 = vld [vmem:[#allocation2 + $0x174c] ss:$24 sps:$4 sm:$0xff]   ;;  %v12002_v35 = vld [vmem:[#allocation2 + $0x1448] ss:$24 sps:$4 sm:$0xff]  }
 0x2ae   :  { %7917 = vmatpush1.bf16.msra.mxu0 %v11948_v56  ;;  %v12001_v56 = vld [vmem:[#allocation2 + $0x177c] ss:$24 sps:$4 sm:$0xff]  }
 0x2af   :  { %7958 = vmatpush1.bf16.msra.mxu1 %v11951_v57  ;;  %7918 = vmatprep.subr.bf16.mxu0 %v11956_v40  ;;  %v11996_v57 = vld [vmem:[#allocation2 + $0x1478] ss:$24 sps:$4 sm:$0xff]   ;;  %v12005_v40 = vld [vmem:[#allocation2 + $0x1748] ss:$24 sps:$4 sm:$0xff]  }
 0x2b0   :  { %7959 = vmatprep.subr.bf16.mxu1 %v11959_v8  ;;  %v12010_v8 = vld [vmem:[#allocation2 + $0x141c] ss:$24 sps:$4 sm:$0xff]  }
 0x2b2   :  { %7919 = vmatpush1.bf16.msra.mxu0 %v11954_v31  ;;  %v12013_v31 = vld [vmem:[#allocation2 + $0x171c] ss:$24 sps:$4 sm:$0xff]  }
 0x2b3   :  { %7960 = vmatpush1.bf16.msra.mxu1 %v11957_v11  ;;  %7920 = vmatprep.subr.bf16.mxu0 %v11962_v12  ;;  %v12008_v11 = vld [vmem:[#allocation2 + $0x1418] ss:$24 sps:$4 sm:$0xff]  }
 0x2b4   :  { %7961 = vmatprep.subr.bf16.mxu1 %v11965_v3  ;;  %v12011_v12 = vld [vmem:[#allocation2 + $0x1718] ss:$24 sps:$4 sm:$0xff]   ;;  %v12016_v3 = vld [vmem:[#allocation2 + $0x13ec] ss:$24 sps:$4 sm:$0xff]  }
 0x2b6   :  { %7921 = vmatpush1.bf16.msra.mxu0 %v11960_v18  ;;  %v12019_v18 = vld [vmem:[#allocation2 + $0x16ec] ss:$24 sps:$4 sm:$0xff]  }
 0x2b7   :  { %7962 = vmatpush1.bf16.msra.mxu1 %v11963_v19  ;;  %7922 = vmatprep.subr.bf16.mxu0 %v11968_v20  ;;  %v12014_v19 = vld [vmem:[#allocation2 + $0x13e8] ss:$24 sps:$4 sm:$0xff]  }
 0x2b8   :  { %7963 = vmatprep.subr.bf16.mxu1 %v11971_v21  ;;  %v12017_v20 = vld [vmem:[#allocation2 + $0x16e8] ss:$24 sps:$4 sm:$0xff]   ;;  %v12022_v21 = vld [vmem:[#allocation2 + $0x13bc] ss:$24 sps:$4 sm:$0xff]  }
 0x2ba   :  { %7923 = vmatpush1.bf16.msra.mxu0 %v11966_v28  ;;  %v12025_v28 = vld [vmem:[#allocation2 + $0x16bc] ss:$24 sps:$4 sm:$0xff]  }
 0x2bb   :  { %7964 = vmatpush1.bf16.msra.mxu1 %v11969_v60  ;;  %7924 = vmatprep.subr.bf16.mxu0 %v11974_v61  ;;  %v12020_v60 = vld [vmem:[#allocation2 + $0x13b8] ss:$24 sps:$4 sm:$0xff]  }
 0x2bc   :  { %7965 = vmatprep.subr.bf16.mxu1 %v11977_v29  ;;  %v12023_v61 = vld [vmem:[#allocation2 + $0x16b8] ss:$24 sps:$4 sm:$0xff]   ;;  %v12028_v29 = vld [vmem:[#allocation2 + $0x138c] ss:$24 sps:$4 sm:$0xff]  }
 0x2be   :  { %7925 = vmatpush1.bf16.msra.mxu0 %v11972_v30  ;;  %v12031_v30 = vld [vmem:[#allocation2 + $0x168c] ss:$24 sps:$4 sm:$0xff]  }
 0x2bf   :  { %7966 = vmatpush1.bf16.msra.mxu1 %v11975_v32  ;;  %7926 = vmatprep.subr.bf16.mxu0 %v11980_v34  ;;  %v12026_v32 = vld [vmem:[#allocation2 + $0x1388] ss:$24 sps:$4 sm:$0xff]  }
 0x2c0   :  { %7967 = vmatprep.subr.bf16.mxu1 %v11983_v41  ;;  %v12029_v34 = vld [vmem:[#allocation2 + $0x1688] ss:$24 sps:$4 sm:$0xff]   ;;  %v1310_v41 = vsub.s32 2, %v13330_v54 }
 0x2c2   :  { %7927 = vmatpush1.bf16.msra.mxu0 %v11978_v42  ;;  %v12034_v42 = vld [vmem:[#allocation2 + $0x195c] ss:$24 sps:$4 sm:$0xff]  }
 0x2c3   :  { %7968 = vmatpush1.bf16.msra.mxu1 %v11981_v43  ;;  %7928 = vmatprep.subr.bf16.mxu0 %v11986_v44  ;;  %v12037_v43 = vld [vmem:[#allocation2 + $0x1c5c] ss:$24 sps:$4 sm:$0xff]   ;;  %v12032_v44 = vld [vmem:[#allocation2 + $0x1958] ss:$24 sps:$4 sm:$0xff]  }
 0x2c4   :  { %7969 = vmatprep.subr.bf16.mxu1 %v11989_v45  ;;  %v12035_v45 = vld [vmem:[#allocation2 + $0x1c58] ss:$24 sps:$4 sm:$0xff]  }
 0x2c6   :  { %7929 = vmatpush2.bf16.msra.mxu0 %v11984_v46  ;;  %v1314_v46 = vsub.s32 3, %v13330_v54 }
 0x2c7   :  { %7970 = vmatpush2.bf16.msra.mxu1 %v11987_v48  ;;  %7930 = vmatprep.subr.bf16.mxu0 %v11992_v49  ;;  %v12970_v48 = vld [vmem:[#allocation4] sm:$0x3f] }
 0x2c8   :  { %7971 = vmatprep.subr.bf16.mxu1 %v11995_v50  ;;  %v1311_v49 = vrot.slane %v12970_v48, %v1310_v41  ;;  %v12040_v50 = vld [vmem:[#allocation2 + $0x192c] ss:$24 sps:$4 sm:$0xff]   ;;  %v12056_v41 = vld [vmem:[#allocation2 + $0x1898] ss:$24 sps:$4 sm:$0xff]  }
 0x2ca   :  { %7931 = vmatpush2.bf16.msra.mxu0 %v11990_v52  ;;  %v12043_v52 = vld [vmem:[#allocation2 + $0x1c2c] ss:$24 sps:$4 sm:$0xff]  }
 0x2cb   :  { %7972 = vmatpush2.bf16.msra.mxu1 %v11993_v53  ;;  %7932 = vmatprep.subr.bf16.mxu0 %v11998_v55  ;;  %v1315_v53 = vrot.slane %v12970_v48, %v1314_v46  ;;  %v12038_v55 = vld [vmem:[#allocation2 + $0x1928] ss:$24 sps:$4 sm:$0xff]   ;;  %v12070_v48 = vld [vmem:[#allocation2 + $0x183c] ss:$24 sps:$4 sm:$0xff]  }
 0x2cc   :  { %7973 = vmatprep.subr.bf16.mxu1 %v12001_v56  ;;  %v12041_v56 = vld [vmem:[#allocation2 + $0x1c28] ss:$24 sps:$4 sm:$0xff]  }
 0x2cd   :  { %v12065_v46 = vld [vmem:[#allocation2 + $0x1b68] ss:$24 sps:$4 sm:$0xff]  }
 0x2ce   :  { %7933 = vmatpush2.bf16.msra.mxu0 %v11996_v57 }
 0x2cf   :  { %7974 = vmatpush2.bf16.msra.mxu1 %v11999_v58  ;;  %7934 = vmatprep.subr.bf16.mxu0 %v12004_v26 }
 0x2d0   :  { %7975 = vmatprep.subr.bf16.mxu1 %v12007_v62 }
 0x2d2   :  { %7935 = vmatpush2.bf16.msra.mxu0 %v12002_v35 }
 0x2d3   :  { %7976 = vmatpush2.bf16.msra.mxu1 %v12005_v40  ;;  %7936 = vmatprep.subr.bf16.mxu0 %v12010_v8  ;;  %v12046_v40 = vld [vmem:[#allocation2 + $0x18fc] ss:$24 sps:$4 sm:$0xff]  }
 0x2d4   :  { %7977 = vmatprep.subr.bf16.mxu1 %v12013_v31  ;;  %v12049_v8 = vld [vmem:[#allocation2 + $0x1bfc] ss:$24 sps:$4 sm:$0xff]  }
 0x2d6   :  { %7937 = vmatpush2.bf16.msra.mxu0 %v12008_v11 }
 0x2d7   :  { %7978 = vmatpush2.bf16.msra.mxu1 %v12011_v12  ;;  %7938 = vmatprep.subr.bf16.mxu0 %v12016_v3  ;;  %v12044_v12 = vld [vmem:[#allocation2 + $0x18f8] ss:$24 sps:$4 sm:$0xff]  }
 0x2d8   :  { %7979 = vmatprep.subr.bf16.mxu1 %v12019_v18  ;;  %v12047_v3 = vld [vmem:[#allocation2 + $0x1bf8] ss:$24 sps:$4 sm:$0xff]  }
 0x2da   :  { %7939 = vmatpush2.bf16.msra.mxu0 %v12014_v19 }
 0x2db   :  { %7980 = vmatpush2.bf16.msra.mxu1 %v12017_v20  ;;  %7940 = vmatprep.subr.bf16.mxu0 %v12022_v21 }
 0x2dc   :  { %7981 = vmatprep.subr.bf16.mxu1 %v12025_v28 }
 0x2de   :  { %7941 = vmatpush2.bf16.msra.mxu0 %v12020_v60  ;;  %v12052_v60 = vld [vmem:[#allocation2 + $0x18cc] ss:$24 sps:$4 sm:$0xff]  }
 0x2df   :  { %7982 = vmatpush2.bf16.msra.mxu1 %v12023_v61  ;;  %7942 = vmatprep.subr.bf16.mxu0 %v12028_v29  ;;  %v12055_v61 = vld [vmem:[#allocation2 + $0x1bcc] ss:$24 sps:$4 sm:$0xff]   ;;  %v12050_v29 = vld [vmem:[#allocation2 + $0x18c8] ss:$24 sps:$4 sm:$0xff]  }
 0x2e0   :  { %7983 = vmatprep.subr.bf16.mxu1 %v12031_v30  ;;  %v12053_v30 = vld [vmem:[#allocation2 + $0x1bc8] ss:$24 sps:$4 sm:$0xff]  }
 0x2e2   :  { %7943 = vmatpush2.bf16.msra.mxu0 %v12026_v32  ;;  %v12058_v32 = vld [vmem:[#allocation2 + $0x189c] ss:$24 sps:$4 sm:$0xff]  }
 0x2e3   :  { %7984 = vmatpush2.bf16.msra.mxu1 %v12029_v34  ;;  %7994 = vmatprep.subr.bf16.mxu0 %v12034_v42  ;;  %v12061_v34 = vld [vmem:[#allocation2 + $0x1b9c] ss:$24 sps:$4 sm:$0xff]   ;;  %v12059_v42 = vld [vmem:[#allocation2 + $0x1b98] ss:$24 sps:$4 sm:$0xff]  }
 0x2e4   :  { %8035 = vmatprep.subr.bf16.mxu1 %v12037_v43  ;;  %v12064_v43 = vld [vmem:[#allocation2 + $0x186c] ss:$24 sps:$4 sm:$0xff]  }
 0x2e5   :  { %v7700_v57 = vpop.f32.mrf.mxu0  ;;  %7945 = vmatmul.mubr.bf16.vlgmr.msra.gmra.mxu0 %v13336_v0 }
 0x2e6   :  { %v7741_v58 = vpop.f32.mrf.mxu1  ;;  %7986 = vmatmul.mubr.bf16.vlgmr.msra.gmra.mxu1 %v13340_v1  ;;  %v7701_v26 = vadd.f32 %v7700_v57, %v1311_v49  ;;  %7995 = vmatpush1.bf16.msra.mxu0 %v12032_v44  ;;  %v12067_v44 = vld [vmem:[#allocation2 + $0x1b6c] ss:$24 sps:$4 sm:$0xff]   ;;  %v12073_v49 = vld [vmem:[#allocation2 + $0x1b3c] ss:$24 sps:$4 sm:$0xff]   ;;  %v12077_v57 = vld [vmem:[#allocation2 + $0x1b08] ss:$24 sps:$4 sm:$0xff]  }
 0x2e7   :  { %8036 = vmatpush1.bf16.msra.mxu1 %v12035_v45  ;;  %v7702_v62 = vpop.f32.mrf.mxu0  ;;  %7996 = vmatprep.subr.bf16.mxu0 %v12040_v50  ;;  %v12062_v45 = vld [vmem:[#allocation2 + $0x1868] ss:$24 sps:$4 sm:$0xff]   ;;  %v12068_v50 = vld [vmem:[#allocation2 + $0x1838] ss:$24 sps:$4 sm:$0xff]  }
 0x2e8   :  { %v7743_v35 = vpop.f32.mrf.mxu1  ;;  %8037 = vmatprep.subr.bf16.mxu1 %v12043_v52  ;;  %v13460_v31 = vadd.f32 %v7741_v58, %v7701_v26  ;;  %v7703_v11 = vadd.f32 %v7702_v62, %v1315_v53  ;;  %8026 = vmatprep.mubr.bf16.mxu0 %v13358_v9  ;;  %v12071_v52 = vld [vmem:[#allocation2 + $0x1b38] ss:$24 sps:$4 sm:$0xff]   ;;  %v12076_v53 = vld [vmem:[#allocation2 + $0x180c] ss:$24 sps:$4 sm:$0xff]   ;;  %v12082_v58 = vld [vmem:[#allocation2 + $0x1adc] ss:$24 sps:$4 sm:$0xff]  }
 0x2e9   :  { %8067 = vmatprep.mubr.bf16.mxu1 %v13362_v10  ;;  %v7704_v18 = vpop.f32.mrf.mxu0  ;;  %v12085_v26 = vld [vmem:[#allocation2 + $0x1ddc] ss:$24 sps:$4 sm:$0xff]   ;;  %v12080_v62 = vld [vmem:[#allocation2 + $0x1ad8] ss:$24 sps:$4 sm:$0xff]  }
 0x2ea   :  { %v7745_v19 = vpop.f32.mrf.mxu1  ;;  %v13464_v20 = vadd.f32 %v7743_v35, %v7703_v11  ;;  %7997 = vmatpush1.bf16.msra.mxu0 %v12038_v55  ;;  %v12079_v55 = vld [vmem:[#allocation2 + $0x1b0c] ss:$24 sps:$4 sm:$0xff]   ;;  %v12083_v35 = vld [vmem:[#allocation2 + $0x1dd8] ss:$24 sps:$4 sm:$0xff]   ;;  %v12086_v11 = vld [vmem:[#allocation2 + $0x1aa8] ss:$24 sps:$4 sm:$0xff]  }
 0x2eb   :  { %8038 = vmatpush1.bf16.msra.mxu1 %v12041_v56  ;;  %v7705_v21 = vpop.f32.mrf.mxu0  ;;  %7998 = vmatprep.subr.bf16.mxu0 %v12046_v40  ;;  %v12074_v56 = vld [vmem:[#allocation2 + $0x1808] ss:$24 sps:$4 sm:$0xff]   ;;  %v12088_v40 = vld [vmem:[#allocation2 + $0x1aac] ss:$24 sps:$4 sm:$0xff]   ;;  %v12097_v18 = vld [vmem:[#allocation2 + $0x1d7c] ss:$24 sps:$4 sm:$0xff]  }
 0x2ec   :  { %v7746_v28 = vpop.f32.mrf.mxu1  ;;  %8039 = vmatprep.subr.bf16.mxu1 %v12049_v8  ;;  %v12091_v8 = vld [vmem:[#allocation2 + $0x1dac] ss:$24 sps:$4 sm:$0xff]   ;;  %v12092_v19 = vld [vmem:[#allocation2 + $0x1a78] ss:$24 sps:$4 sm:$0xff]  }
 0x2ed   :  { %v12095_v21 = vld [vmem:[#allocation2 + $0x1d78] ss:$24 sps:$4 sm:$0xff]   ;;  %v12100_v28 = vld [vmem:[#allocation2 + $0x1a4c] ss:$24 sps:$4 sm:$0xff]  }
 0x2ee   :  { %7999 = vmatpush1.bf16.msra.mxu0 %v12044_v12  ;;  %v12089_v12 = vld [vmem:[#allocation2 + $0x1da8] ss:$24 sps:$4 sm:$0xff]  }
 0x2ef   :  { %8040 = vmatpush1.bf16.msra.mxu1 %v12047_v3  ;;  %8000 = vmatprep.subr.bf16.mxu0 %v12052_v60  ;;  %v12094_v3 = vld [vmem:[#allocation2 + $0x1a7c] ss:$24 sps:$4 sm:$0xff]   ;;  %v12103_v60 = vld [vmem:[#allocation2 + $0x1d4c] ss:$24 sps:$4 sm:$0xff]  }
 0x2f0   :  { %8041 = vmatprep.subr.bf16.mxu1 %v12055_v61  ;;  %v12098_v61 = vld [vmem:[#allocation2 + $0x1a48] ss:$24 sps:$4 sm:$0xff]  }
 0x2f2   :  { %8001 = vmatpush1.bf16.msra.mxu0 %v12050_v29  ;;  %v12101_v29 = vld [vmem:[#allocation2 + $0x1d48] ss:$24 sps:$4 sm:$0xff]  }
 0x2f3   :  { %8042 = vmatpush1.bf16.msra.mxu1 %v12053_v30  ;;  %8002 = vmatprep.subr.bf16.mxu0 %v12058_v32  ;;  %v12106_v30 = vld [vmem:[#allocation2 + $0x1a1c] ss:$24 sps:$4 sm:$0xff]  }
 0x2f4   :  { %8043 = vmatprep.subr.bf16.mxu1 %v12061_v34  ;;  %v12109_v32 = vld [vmem:[#allocation2 + $0x1d1c] ss:$24 sps:$4 sm:$0xff]   ;;  %v12104_v34 = vld [vmem:[#allocation2 + $0x1a18] ss:$24 sps:$4 sm:$0xff]  }
 0x2f6   :  { %8003 = vmatpush1.bf16.msra.mxu0 %v12056_v41  ;;  %v12107_v41 = vld [vmem:[#allocation2 + $0x1d18] ss:$24 sps:$4 sm:$0xff]  }
 0x2f7   :  { %8044 = vmatpush1.bf16.msra.mxu1 %v12059_v42  ;;  %8004 = vmatprep.subr.bf16.mxu0 %v12064_v43  ;;  %v12112_v42 = vld [vmem:[#allocation2 + $0x19ec] ss:$24 sps:$4 sm:$0xff]  }
 0x2f8   :  { %8045 = vmatprep.subr.bf16.mxu1 %v12067_v44  ;;  %v12115_v43 = vld [vmem:[#allocation2 + $0x1cec] ss:$24 sps:$4 sm:$0xff]   ;;  %v12110_v44 = vld [vmem:[#allocation2 + $0x19e8] ss:$24 sps:$4 sm:$0xff]  }
 0x2fa   :  { %8005 = vmatpush1.bf16.msra.mxu0 %v12062_v45  ;;  %v12113_v45 = vld [vmem:[#allocation2 + $0x1ce8] ss:$24 sps:$4 sm:$0xff]  }
 0x2fb   :  { %8046 = vmatpush1.bf16.msra.mxu1 %v12065_v46  ;;  %8006 = vmatprep.subr.bf16.mxu0 %v12070_v48  ;;  %v12118_v46 = vld [vmem:[#allocation2 + $0x19bc] ss:$24 sps:$4 sm:$0xff]  }
 0x2fc   :  { %8047 = vmatprep.subr.bf16.mxu1 %v12073_v49  ;;  %v12121_v48 = vld [vmem:[#allocation2 + $0x1cbc] ss:$24 sps:$4 sm:$0xff]   ;;  %v12116_v49 = vld [vmem:[#allocation2 + $0x19b8] ss:$24 sps:$4 sm:$0xff]  }
 0x2fe   :  { %8007 = vmatpush1.bf16.msra.mxu0 %v12068_v50  ;;  %v12119_v50 = vld [vmem:[#allocation2 + $0x1cb8] ss:$24 sps:$4 sm:$0xff]  }
 0x2ff   :  { %8048 = vmatpush1.bf16.msra.mxu1 %v12071_v52  ;;  %8008 = vmatprep.subr.bf16.mxu0 %v12076_v53  ;;  %v12124_v52 = vld [vmem:[#allocation2 + $0x198c] ss:$24 sps:$4 sm:$0xff]  }
 0x300   :  { %8049 = vmatprep.subr.bf16.mxu1 %v12079_v55  ;;  %v12127_v53 = vld [vmem:[#allocation2 + $0x1c8c] ss:$24 sps:$4 sm:$0xff]   ;;  %v12122_v55 = vld [vmem:[#allocation2 + $0x1988] ss:$24 sps:$4 sm:$0xff]  }
 0x302   :  { %8009 = vmatpush1.bf16.msra.mxu0 %v12074_v56  ;;  %v12125_v56 = vld [vmem:[#allocation2 + $0x1c88] ss:$24 sps:$4 sm:$0xff]  }
 0x303   :  { %8050 = vmatpush1.bf16.msra.mxu1 %v12077_v57  ;;  %8010 = vmatprep.subr.bf16.mxu0 %v12082_v58  ;;  %v12130_v57 = vld [vmem:[#allocation2 + $0x1f5c] ss:$24 sps:$4 sm:$0xff]  }
 0x304   :  { %8051 = vmatprep.subr.bf16.mxu1 %v12085_v26  ;;  %v12133_v58 = vld [vmem:[#allocation2 + $0x225c] ss:$24 sps:$4 sm:$0xff]   ;;  %v12128_v26 = vld [vmem:[#allocation2 + $0x1f58] ss:$24 sps:$4 sm:$0xff]  }
 0x306   :  { %8011 = vmatpush2.bf16.msra.mxu0 %v12080_v62  ;;  %v12131_v62 = vld [vmem:[#allocation2 + $0x2258] ss:$24 sps:$4 sm:$0xff]  }
 0x307   :  { %8052 = vmatpush2.bf16.msra.mxu1 %v12083_v35  ;;  %8012 = vmatprep.subr.bf16.mxu0 %v12088_v40  ;;  %v12136_v35 = vld [vmem:[#allocation2 + $0x1f2c] ss:$24 sps:$4 sm:$0xff]  }
 0x308   :  { %8053 = vmatprep.subr.bf16.mxu1 %v12091_v8  ;;  %v12139_v40 = vld [vmem:[#allocation2 + $0x222c] ss:$24 sps:$4 sm:$0xff]   ;;  %v12134_v8 = vld [vmem:[#allocation2 + $0x1f28] ss:$24 sps:$4 sm:$0xff]  }
 0x30a   :  { %8013 = vmatpush2.bf16.msra.mxu0 %v12086_v11  ;;  %v12137_v11 = vld [vmem:[#allocation2 + $0x2228] ss:$24 sps:$4 sm:$0xff]  }
 0x30b   :  { %8054 = vmatpush2.bf16.msra.mxu1 %v12089_v12  ;;  %8014 = vmatprep.subr.bf16.mxu0 %v12094_v3 }
 0x30c   :  { %8055 = vmatprep.subr.bf16.mxu1 %v12097_v18 }
 0x30e   :  { %8015 = vmatpush2.bf16.msra.mxu0 %v12092_v19 }
 0x30f   :  { %8056 = vmatpush2.bf16.msra.mxu1 %v12095_v21  ;;  %8016 = vmatprep.subr.bf16.mxu0 %v12100_v28  ;;  %v12142_v28 = vld [vmem:[#allocation2 + $0x1efc] ss:$24 sps:$4 sm:$0xff]  }
 0x310   :  { %8057 = vmatprep.subr.bf16.mxu1 %v12103_v60  ;;  %v12145_v60 = vld [vmem:[#allocation2 + $0x21fc] ss:$24 sps:$4 sm:$0xff]  }
 0x312   :  { %8017 = vmatpush2.bf16.msra.mxu0 %v12098_v61 }
 0x313   :  { %8058 = vmatpush2.bf16.msra.mxu1 %v12101_v29  ;;  %8018 = vmatprep.subr.bf16.mxu0 %v12106_v30  ;;  %v12140_v30 = vld [vmem:[#allocation2 + $0x1ef8] ss:$24 sps:$4 sm:$0xff]  }
 0x314   :  { %8059 = vmatprep.subr.bf16.mxu1 %v12109_v32  ;;  %v12143_v32 = vld [vmem:[#allocation2 + $0x21f8] ss:$24 sps:$4 sm:$0xff]  }
 0x316   :  { %8019 = vmatpush2.bf16.msra.mxu0 %v12104_v34 }
 0x317   :  { %8060 = vmatpush2.bf16.msra.mxu1 %v12107_v41  ;;  %8020 = vmatprep.subr.bf16.mxu0 %v12112_v42 }
 0x318   :  { %8061 = vmatprep.subr.bf16.mxu1 %v12115_v43 }
 0x31a   :  { %8021 = vmatpush2.bf16.msra.mxu0 %v12110_v44  ;;  %v12148_v44 = vld [vmem:[#allocation2 + $0x1ecc] ss:$24 sps:$4 sm:$0xff]  }
 0x31b   :  { %8062 = vmatpush2.bf16.msra.mxu1 %v12113_v45  ;;  %8022 = vmatprep.subr.bf16.mxu0 %v12118_v46  ;;  %v12151_v45 = vld [vmem:[#allocation2 + $0x21cc] ss:$24 sps:$4 sm:$0xff]   ;;  %v12149_v46 = vld [vmem:[#allocation2 + $0x21c8] ss:$24 sps:$4 sm:$0xff]  }
 0x31c   :  { %8063 = vmatprep.subr.bf16.mxu1 %v12121_v48  ;;  %v12154_v48 = vld [vmem:[#allocation2 + $0x1e9c] ss:$24 sps:$4 sm:$0xff]  }
 0x31e   :  { %8023 = vmatpush2.bf16.msra.mxu0 %v12116_v49  ;;  %v12157_v49 = vld [vmem:[#allocation2 + $0x219c] ss:$24 sps:$4 sm:$0xff]  }
 0x31f   :  { %8064 = vmatpush2.bf16.msra.mxu1 %v12119_v50  ;;  %8024 = vmatprep.subr.bf16.mxu0 %v12124_v52  ;;  %v12152_v50 = vld [vmem:[#allocation2 + $0x1e98] ss:$24 sps:$4 sm:$0xff]  }
 0x320   :  { %8065 = vmatprep.subr.bf16.mxu1 %v12127_v53  ;;  %v12155_v52 = vld [vmem:[#allocation2 + $0x2198] ss:$24 sps:$4 sm:$0xff]   ;;  %v12160_v53 = vld [vmem:[#allocation2 + $0x1e6c] ss:$24 sps:$4 sm:$0xff]  }
 0x322   :  { %8025 = vmatpush2.bf16.msra.mxu0 %v12122_v55  ;;  %v12163_v55 = vld [vmem:[#allocation2 + $0x216c] ss:$24 sps:$4 sm:$0xff]  }
 0x323   :  { %8066 = vmatpush2.bf16.msra.mxu1 %v12125_v56  ;;  %8076 = vmatprep.subr.bf16.mxu0 %v12130_v57  ;;  %v12158_v56 = vld [vmem:[#allocation2 + $0x1e68] ss:$24 sps:$4 sm:$0xff]  }
 0x324   :  { %8117 = vmatprep.subr.bf16.mxu1 %v12133_v58  ;;  %v12161_v57 = vld [vmem:[#allocation2 + $0x2168] ss:$24 sps:$4 sm:$0xff]   ;;  %v12166_v58 = vld [vmem:[#allocation2 + $0x1e3c] ss:$24 sps:$4 sm:$0xff]  }
 0x325   :  { %v7782_v12 = vpop.f32.mrf.mxu0  ;;  %8027 = vmatmul.mubr.bf16.vlgmr.msra.gmra.mxu0 %v13384_v4 }
 0x326   :  { %v7823_v3 = vpop.f32.mrf.mxu1  ;;  %8068 = vmatmul.mubr.bf16.vlgmr.msra.gmra.mxu1 %v13388_v5  ;;  %v7783_v18 = vadd.f32 %v7782_v12, %v13460_v31  ;;  %8077 = vmatpush1.bf16.msra.mxu0 %v12128_v26  ;;  %v12169_v26 = vld [vmem:[#allocation2 + $0x213c] ss:$24 sps:$4 sm:$0xff]   ;;  %v12173_v12 = vld [vmem:[#allocation2 + $0x2108] ss:$24 sps:$4 sm:$0xff]  }
 0x327   :  { %8118 = vmatpush1.bf16.msra.mxu1 %v12131_v62  ;;  %v7784_v19 = vpop.f32.mrf.mxu0  ;;  %8078 = vmatprep.subr.bf16.mxu0 %v12136_v35  ;;  %v12164_v62 = vld [vmem:[#allocation2 + $0x1e38] ss:$24 sps:$4 sm:$0xff]  }
 0x328   :  { %v7825_v21 = vpop.f32.mrf.mxu1  ;;  %8119 = vmatprep.subr.bf16.mxu1 %v12139_v40  ;;  %v13469_v61 = vadd.f32 %v7823_v3, %v7783_v18  ;;  %v7785_v29 = vadd.f32 %v7784_v19, %v13464_v20  ;;  %8108 = vmatprep.mubr.bf16.mxu0 %v13392_v13  ;;  %v12146_v20 = vld [vmem:[#allocation2 + $0x1ec8] ss:$24 sps:$4 sm:$0xff]   ;;  %v12167_v35 = vld [vmem:[#allocation2 + $0x2138] ss:$24 sps:$4 sm:$0xff]   ;;  %v12172_v40 = vld [vmem:[#allocation2 + $0x1e0c] ss:$24 sps:$4 sm:$0xff]  }
 0x329   :  { %8149 = vmatprep.mubr.bf16.mxu1 %v13396_v2  ;;  %v7786_v34 = vpop.f32.mrf.mxu0  ;;  %v12178_v3 = vld [vmem:[#allocation2 + $0x20dc] ss:$24 sps:$4 sm:$0xff]   ;;  %v12176_v19 = vld [vmem:[#allocation2 + $0x20d8] ss:$24 sps:$4 sm:$0xff]  }
 0x32a   :  { %v7827_v31 = vpop.f32.mrf.mxu1  ;;  %v13474_v41 = vadd.f32 %v7825_v21, %v7785_v29  ;;  %8079 = vmatpush1.bf16.msra.mxu0 %v12134_v8  ;;  %v12175_v8 = vld [vmem:[#allocation2 + $0x210c] ss:$24 sps:$4 sm:$0xff]   ;;  %v12181_v18 = vld [vmem:[#allocation2 + $0x23dc] ss:$24 sps:$4 sm:$0xff]   ;;  %v12179_v21 = vld [vmem:[#allocation2 + $0x23d8] ss:$24 sps:$4 sm:$0xff]  }
 0x32b   :  { %8120 = vmatpush1.bf16.msra.mxu1 %v12137_v11  ;;  %v7787_v42 = vpop.f32.mrf.mxu0  ;;  %8080 = vmatprep.subr.bf16.mxu0 %v12142_v28  ;;  %v12170_v11 = vld [vmem:[#allocation2 + $0x1e08] ss:$24 sps:$4 sm:$0xff]   ;;  %v12184_v28 = vld [vmem:[#allocation2 + $0x20ac] ss:$24 sps:$4 sm:$0xff]   ;;  %v12193_v34 = vld [vmem:[#allocation2 + $0x237c] ss:$24 sps:$4 sm:$0xff]  }
 0x32c   :  { %v7828_v43 = vpop.f32.mrf.mxu1  ;;  %8121 = vmatprep.subr.bf16.mxu1 %v12145_v60  ;;  %v12187_v60 = vld [vmem:[#allocation2 + $0x23ac] ss:$24 sps:$4 sm:$0xff]   ;;  %v12182_v29 = vld [vmem:[#allocation2 + $0x20a8] ss:$24 sps:$4 sm:$0xff]   ;;  %v12188_v31 = vld [vmem:[#allocation2 + $0x2078] ss:$24 sps:$4 sm:$0xff]  }
 0x32d   :  { %v12191_v42 = vld [vmem:[#allocation2 + $0x2378] ss:$24 sps:$4 sm:$0xff]   ;;  %v12196_v43 = vld [vmem:[#allocation2 + $0x204c] ss:$24 sps:$4 sm:$0xff]  }
 0x32e   :  { %8081 = vmatpush1.bf16.msra.mxu0 %v12140_v30  ;;  %v12185_v30 = vld [vmem:[#allocation2 + $0x23a8] ss:$24 sps:$4 sm:$0xff]  }
 0x32f   :  { %8122 = vmatpush1.bf16.msra.mxu1 %v12143_v32  ;;  %8082 = vmatprep.subr.bf16.mxu0 %v12148_v44  ;;  %v12190_v32 = vld [vmem:[#allocation2 + $0x207c] ss:$24 sps:$4 sm:$0xff]   ;;  %v12199_v44 = vld [vmem:[#allocation2 + $0x234c] ss:$24 sps:$4 sm:$0xff]  }
 0x330   :  { %8123 = vmatprep.subr.bf16.mxu1 %v12151_v45  ;;  %v12194_v45 = vld [vmem:[#allocation2 + $0x2048] ss:$24 sps:$4 sm:$0xff]  }
 0x332   :  { %8083 = vmatpush1.bf16.msra.mxu0 %v12146_v20  ;;  %v12197_v20 = vld [vmem:[#allocation2 + $0x2348] ss:$24 sps:$4 sm:$0xff]  }
 0x333   :  { %8124 = vmatpush1.bf16.msra.mxu1 %v12149_v46  ;;  %8084 = vmatprep.subr.bf16.mxu0 %v12154_v48  ;;  %v12202_v46 = vld [vmem:[#allocation2 + $0x201c] ss:$24 sps:$4 sm:$0xff]  }
 0x334   :  { %8125 = vmatprep.subr.bf16.mxu1 %v12157_v49  ;;  %v12205_v48 = vld [vmem:[#allocation2 + $0x231c] ss:$24 sps:$4 sm:$0xff]   ;;  %v12200_v49 = vld [vmem:[#allocation2 + $0x2018] ss:$24 sps:$4 sm:$0xff]  }
 0x336   :  { %8085 = vmatpush1.bf16.msra.mxu0 %v12152_v50  ;;  %v12203_v50 = vld [vmem:[#allocation2 + $0x2318] ss:$24 sps:$4 sm:$0xff]  }
 0x337   :  { %8126 = vmatpush1.bf16.msra.mxu1 %v12155_v52  ;;  %8086 = vmatprep.subr.bf16.mxu0 %v12160_v53  ;;  %v12208_v52 = vld [vmem:[#allocation2 + $0x1fec] ss:$24 sps:$4 sm:$0xff]  }
 0x338   :  { %8127 = vmatprep.subr.bf16.mxu1 %v12163_v55  ;;  %v12211_v53 = vld [vmem:[#allocation2 + $0x22ec] ss:$24 sps:$4 sm:$0xff]   ;;  %v12206_v55 = vld [vmem:[#allocation2 + $0x1fe8] ss:$24 sps:$4 sm:$0xff]  }
 0x33a   :  { %8087 = vmatpush1.bf16.msra.mxu0 %v12158_v56  ;;  %v12209_v56 = vld [vmem:[#allocation2 + $0x22e8] ss:$24 sps:$4 sm:$0xff]  }
 0x33b   :  { %8128 = vmatpush1.bf16.msra.mxu1 %v12161_v57  ;;  %8088 = vmatprep.subr.bf16.mxu0 %v12166_v58  ;;  %v12214_v57 = vld [vmem:[#allocation2 + $0x1fbc] ss:$24 sps:$4 sm:$0xff]  }
 0x33c   :  { %8129 = vmatprep.subr.bf16.mxu1 %v12169_v26  ;;  %v12217_v58 = vld [vmem:[#allocation2 + $0x22bc] ss:$24 sps:$4 sm:$0xff]   ;;  %v12212_v26 = vld [vmem:[#allocation2 + $0x1fb8] ss:$24 sps:$4 sm:$0xff]  }
 0x33e   :  { %8089 = vmatpush1.bf16.msra.mxu0 %v12164_v62  ;;  %v12215_v62 = vld [vmem:[#allocation2 + $0x22b8] ss:$24 sps:$4 sm:$0xff]  }
 0x33f   :  { %8130 = vmatpush1.bf16.msra.mxu1 %v12167_v35  ;;  %8090 = vmatprep.subr.bf16.mxu0 %v12172_v40  ;;  %v12220_v35 = vld [vmem:[#allocation2 + $0x1f8c] ss:$24 sps:$4 sm:$0xff]  }
 0x340   :  { %8131 = vmatprep.subr.bf16.mxu1 %v12175_v8  ;;  %v12223_v40 = vld [vmem:[#allocation2 + $0x228c] ss:$24 sps:$4 sm:$0xff]   ;;  %v12218_v8 = vld [vmem:[#allocation2 + $0x1f88] ss:$24 sps:$4 sm:$0xff]  }
 0x342   :  { %8091 = vmatpush1.bf16.msra.mxu0 %v12170_v11  ;;  %v12221_v11 = vld [vmem:[#allocation2 + $0x2288] ss:$24 sps:$4 sm:$0xff]  }
 0x343   :  { %8132 = vmatpush1.bf16.msra.mxu1 %v12173_v12  ;;  %8092 = vmatprep.subr.bf16.mxu0 %v12178_v3  ;;  %v12226_v12 = vld [vmem:[#allocation2 + $0x164] ss:$24 sps:$4 sm:$0xff]  }
 0x344   :  { %8133 = vmatprep.subr.bf16.mxu1 %v12181_v18  ;;  %v12229_v3 = vld [vmem:[#allocation2 + $0x464] ss:$24 sps:$4 sm:$0xff]   ;;  %v12224_v18 = vld [vmem:[#allocation2 + $0x160] ss:$24 sps:$4 sm:$0xff]  }
 0x346   :  { %8093 = vmatpush2.bf16.msra.mxu0 %v12176_v19  ;;  %v12227_v19 = vld [vmem:[#allocation2 + $0x460] ss:$24 sps:$4 sm:$0xff]  }
 0x347   :  { %8134 = vmatpush2.bf16.msra.mxu1 %v12179_v21  ;;  %8094 = vmatprep.subr.bf16.mxu0 %v12184_v28  ;;  %v12232_v21 = vld [vmem:[#allocation2 + $0x134] ss:$24 sps:$4 sm:$0xff]  }
 0x348   :  { %8135 = vmatprep.subr.bf16.mxu1 %v12187_v60  ;;  %v12235_v28 = vld [vmem:[#allocation2 + $0x434] ss:$24 sps:$4 sm:$0xff]  }
 0x34a   :  { %8095 = vmatpush2.bf16.msra.mxu0 %v12182_v29 }
 0x34b   :  { %8136 = vmatpush2.bf16.msra.mxu1 %v12185_v30  ;;  %8096 = vmatprep.subr.bf16.mxu0 %v12190_v32  ;;  %v12230_v32 = vld [vmem:[#allocation2 + $0x130] ss:$24 sps:$4 sm:$0xff]  }
 0x34c   :  { %8137 = vmatprep.subr.bf16.mxu1 %v12193_v34  ;;  %v12233_v34 = vld [vmem:[#allocation2 + $0x430] ss:$24 sps:$4 sm:$0xff]  }
 0x34e   :  { %8097 = vmatpush2.bf16.msra.mxu0 %v12188_v31 }
 0x34f   :  { %8138 = vmatpush2.bf16.msra.mxu1 %v12191_v42  ;;  %8098 = vmatprep.subr.bf16.mxu0 %v12196_v43  ;;  %v12238_v43 = vld [vmem:[#allocation2 + $0x104] ss:$24 sps:$4 sm:$0xff]  }
 0x350   :  { %8139 = vmatprep.subr.bf16.mxu1 %v12199_v44  ;;  %v12241_v44 = vld [vmem:[#allocation2 + $0x404] ss:$24 sps:$4 sm:$0xff]  }
 0x352   :  { %8099 = vmatpush2.bf16.msra.mxu0 %v12194_v45 }
 0x353   :  { %8140 = vmatpush2.bf16.msra.mxu1 %v12197_v20  ;;  %8100 = vmatprep.subr.bf16.mxu0 %v12202_v46 }
 0x354   :  { %8141 = vmatprep.subr.bf16.mxu1 %v12205_v48 }
 0x356   :  { %8101 = vmatpush2.bf16.msra.mxu0 %v12200_v49  ;;  %v12236_v49 = vld [vmem:[#allocation2 + $0x100] ss:$24 sps:$4 sm:$0xff]  }
 0x357   :  { %8142 = vmatpush2.bf16.msra.mxu1 %v12203_v50  ;;  %8102 = vmatprep.subr.bf16.mxu0 %v12208_v52  ;;  %v12239_v50 = vld [vmem:[#allocation2 + $0x400] ss:$24 sps:$4 sm:$0xff]  }
 0x358   :  { %8143 = vmatprep.subr.bf16.mxu1 %v12211_v53 }
 0x35a   :  { %8103 = vmatpush2.bf16.msra.mxu0 %v12206_v55  ;;  %v12244_v55 = vld [vmem:[#allocation2 + $0xd4] ss:$24 sps:$4 sm:$0xff]  }
 0x35b   :  { %8144 = vmatpush2.bf16.msra.mxu1 %v12209_v56  ;;  %8104 = vmatprep.subr.bf16.mxu0 %v12214_v57  ;;  %v12247_v56 = vld [vmem:[#allocation2 + $0x3d4] ss:$24 sps:$4 sm:$0xff]   ;;  %v12253_v57 = vld [vmem:[#allocation2 + $0x3a4] ss:$24 sps:$4 sm:$0xff]  }
 0x35c   :  { %8145 = vmatprep.subr.bf16.mxu1 %v12217_v58  ;;  %v12248_v58 = vld [vmem:[#allocation2 + $0xa0] ss:$24 sps:$4 sm:$0xff]  }
 0x35e   :  { %8105 = vmatpush2.bf16.msra.mxu0 %v12212_v26  ;;  %v12251_v26 = vld [vmem:[#allocation2 + $0x3a0] ss:$24 sps:$4 sm:$0xff]  }
 0x35f   :  { %8146 = vmatpush2.bf16.msra.mxu1 %v12215_v62  ;;  %8106 = vmatprep.subr.bf16.mxu0 %v12220_v35  ;;  %v12256_v62 = vld [vmem:[#allocation2 + $0x74] ss:$24 sps:$4 sm:$0xff]  }
 0x360   :  { %8147 = vmatprep.subr.bf16.mxu1 %v12223_v40  ;;  %v12259_v35 = vld [vmem:[#allocation2 + $0x374] ss:$24 sps:$4 sm:$0xff]   ;;  %v12254_v40 = vld [vmem:[#allocation2 + $0x70] ss:$24 sps:$4 sm:$0xff]  }
 0x362   :  { %8107 = vmatpush2.bf16.msra.mxu0 %v12218_v8  ;;  %v12257_v8 = vld [vmem:[#allocation2 + $0x370] ss:$24 sps:$4 sm:$0xff]  }
 0x363   :  { %8148 = vmatpush2.bf16.msra.mxu1 %v12221_v11  ;;  %8158 = vmatprep.subr.bf16.mxu0 %v12226_v12  ;;  %v12262_v11 = vld [vmem:[#allocation2 + $0x44] ss:$24 sps:$4 sm:$0xff]  }
 0x364   :  { %8199 = vmatprep.subr.bf16.mxu1 %v12229_v3  ;;  %v12265_v12 = vld [vmem:[#allocation2 + $0x344] ss:$24 sps:$4 sm:$0xff]   ;;  %v12260_v3 = vld [vmem:[#allocation2 + $0x40] ss:$24 sps:$4 sm:$0xff]  }
 0x365   :  { %v7864_v60 = vpop.f32.mrf.mxu0  ;;  %8109 = vmatmul.mubr.bf16.vlgmr.msra.gmra.mxu0 %v13410_v14 }
 0x366   :  { %v7905_v29 = vpop.f32.mrf.mxu1  ;;  %8150 = vmatmul.mubr.bf16.vlgmr.msra.gmra.mxu1 %v13414_v15  ;;  %v7865_v30 = vadd.f32 %v7864_v60, %v13469_v61  ;;  %8159 = vmatpush1.bf16.msra.mxu0 %v12224_v18  ;;  %v12263_v18 = vld [vmem:[#allocation2 + $0x340] ss:$24 sps:$4 sm:$0xff]   ;;  %v12269_v60 = vld [vmem:[#allocation2 + $0x310] ss:$24 sps:$4 sm:$0xff]  }
 0x367   :  { %8200 = vmatpush1.bf16.msra.mxu1 %v12227_v19  ;;  %v7866_v31 = vpop.f32.mrf.mxu0  ;;  %8160 = vmatprep.subr.bf16.mxu0 %v12232_v21  ;;  %v12268_v19 = vld [vmem:[#allocation2 + $0x14] ss:$24 sps:$4 sm:$0xff]  }
 0x368   :  { %v7907_v42 = vpop.f32.mrf.mxu1  ;;  %8201 = vmatprep.subr.bf16.mxu1 %v12235_v28  ;;  %v13479_v45 = vadd.f32 %v7905_v29, %v7865_v30  ;;  %v7867_v20 = vadd.f32 %v7866_v31, %v13474_v41  ;;  %8190 = vmatprep.mubr.bf16.mxu0 %v13235_v47  ;;  %v12242_v41 = vld [vmem:[#allocation2 + $0xd0] ss:$24 sps:$4 sm:$0xff]   ;;  %v12271_v21 = vld [vmem:[#allocation2 + $0x314] ss:$24 sps:$4 sm:$0xff]   ;;  %v12274_v29 = vld [vmem:[#allocation2 + $0x2e4] ss:$24 sps:$4 sm:$0xff]  }
 0x369   :  { %8231 = vmatprep.mubr.bf16.mxu1 %v13240_v51  ;;  %v7868_v46 = vpop.f32.mrf.mxu0  ;;  %v12245_v47 = vld [vmem:[#allocation2 + $0x3d0] ss:$24 sps:$4 sm:$0xff]   ;;  %v12250_v51 = vld [vmem:[#allocation2 + $0xa4] ss:$24 sps:$4 sm:$0xff]   ;;  %v12280_v31 = vld [vmem:[#allocation2 + $0x2b4] ss:$24 sps:$4 sm:$0xff]  }
 0x36a   :  { %v7909_v61 = vpop.f32.mrf.mxu1  ;;  %v13484_v48 = vadd.f32 %v7907_v42, %v7867_v20  ;;  %8161 = vmatpush1.bf16.msra.mxu0 %v12230_v32  ;;  %v12266_v28 = vld [vmem:[#allocation2 + $0x10] ss:$24 sps:$4 sm:$0xff]   ;;  %v12277_v30 = vld [vmem:[#allocation2 + $0x5e4] ss:$24 sps:$4 sm:$0xff]   ;;  %v12272_v32 = vld [vmem:[#allocation2 + $0x2e0] ss:$24 sps:$4 sm:$0xff]  }
 0x36b   :  { %8202 = vmatpush1.bf16.msra.mxu1 %v12233_v34  ;;  %v7869_v52 = vpop.f32.mrf.mxu0  ;;  %8162 = vmatprep.subr.bf16.mxu0 %v12238_v43  ;;  %v12275_v34 = vld [vmem:[#allocation2 + $0x5e0] ss:$24 sps:$4 sm:$0xff]   ;;  %v12283_v42 = vld [vmem:[#allocation2 + $0x5b4] ss:$24 sps:$4 sm:$0xff]   ;;  %v12278_v43 = vld [vmem:[#allocation2 + $0x2b0] ss:$24 sps:$4 sm:$0xff]  }
 0x36c   :  { %v7910_v53 = vpop.f32.mrf.mxu1  ;;  %8203 = vmatprep.subr.bf16.mxu1 %v12241_v44  ;;  %v12281_v44 = vld [vmem:[#allocation2 + $0x5b0] ss:$24 sps:$4 sm:$0xff]   ;;  %v12286_v20 = vld [vmem:[#allocation2 + $0x284] ss:$24 sps:$4 sm:$0xff]   ;;  %v12284_v61 = vld [vmem:[#allocation2 + $0x280] ss:$24 sps:$4 sm:$0xff]  }
 0x36d   :  { %v12289_v46 = vld [vmem:[#allocation2 + $0x584] ss:$24 sps:$4 sm:$0xff]   ;;  %v12295_v52 = vld [vmem:[#allocation2 + $0x554] ss:$24 sps:$4 sm:$0xff]   ;;  %v12290_v53 = vld [vmem:[#allocation2 + $0x250] ss:$24 sps:$4 sm:$0xff]  }
 0x36e   :  { %8163 = vmatpush1.bf16.msra.mxu0 %v12236_v49  ;;  %v12287_v49 = vld [vmem:[#allocation2 + $0x580] ss:$24 sps:$4 sm:$0xff]  }
 0x36f   :  { %8204 = vmatpush1.bf16.msra.mxu1 %v12239_v50  ;;  %8164 = vmatprep.subr.bf16.mxu0 %v12244_v55  ;;  %v12292_v50 = vld [vmem:[#allocation2 + $0x254] ss:$24 sps:$4 sm:$0xff]   ;;  %v12293_v55 = vld [vmem:[#allocation2 + $0x550] ss:$24 sps:$4 sm:$0xff]  }
 0x370   :  { %8205 = vmatprep.subr.bf16.mxu1 %v12247_v56  ;;  %v12298_v56 = vld [vmem:[#allocation2 + $0x224] ss:$24 sps:$4 sm:$0xff]  }
 0x372   :  { %8165 = vmatpush1.bf16.msra.mxu0 %v12242_v41  ;;  %v12301_v41 = vld [vmem:[#allocation2 + $0x524] ss:$24 sps:$4 sm:$0xff]  }
 0x373   :  { %8206 = vmatpush1.bf16.msra.mxu1 %v12245_v47  ;;  %8166 = vmatprep.subr.bf16.mxu0 %v12250_v51  ;;  %v12296_v47 = vld [vmem:[#allocation2 + $0x220] ss:$24 sps:$4 sm:$0xff]  }
 0x374   :  { %8207 = vmatprep.subr.bf16.mxu1 %v12253_v57  ;;  %v12299_v51 = vld [vmem:[#allocation2 + $0x520] ss:$24 sps:$4 sm:$0xff]   ;;  %v12304_v57 = vld [vmem:[#allocation2 + $0x1f4] ss:$24 sps:$4 sm:$0xff]  }
 0x376   :  { %8167 = vmatpush1.bf16.msra.mxu0 %v12248_v58  ;;  %v12307_v58 = vld [vmem:[#allocation2 + $0x4f4] ss:$24 sps:$4 sm:$0xff]  }
 0x377   :  { %8208 = vmatpush1.bf16.msra.mxu1 %v12251_v26  ;;  %8168 = vmatprep.subr.bf16.mxu0 %v12256_v62  ;;  %v12302_v26 = vld [vmem:[#allocation2 + $0x1f0] ss:$24 sps:$4 sm:$0xff]  }
 0x378   :  { %8209 = vmatprep.subr.bf16.mxu1 %v12259_v35  ;;  %v12305_v62 = vld [vmem:[#allocation2 + $0x4f0] ss:$24 sps:$4 sm:$0xff]   ;;  %v12310_v35 = vld [vmem:[#allocation2 + $0x1c4] ss:$24 sps:$4 sm:$0xff]  }
 0x37a   :  { %8169 = vmatpush1.bf16.msra.mxu0 %v12254_v40  ;;  %v12313_v40 = vld [vmem:[#allocation2 + $0x4c4] ss:$24 sps:$4 sm:$0xff]  }
 0x37b   :  { %8210 = vmatpush1.bf16.msra.mxu1 %v12257_v8  ;;  %8170 = vmatprep.subr.bf16.mxu0 %v12262_v11  ;;  %v12308_v8 = vld [vmem:[#allocation2 + $0x1c0] ss:$24 sps:$4 sm:$0xff]  }
 0x37c   :  { %8211 = vmatprep.subr.bf16.mxu1 %v12265_v12  ;;  %v12311_v11 = vld [vmem:[#allocation2 + $0x4c0] ss:$24 sps:$4 sm:$0xff]   ;;  %v12316_v12 = vld [vmem:[#allocation2 + $0x194] ss:$24 sps:$4 sm:$0xff]  }
 0x37e   :  { %8171 = vmatpush1.bf16.msra.mxu0 %v12260_v3  ;;  %v12319_v3 = vld [vmem:[#allocation2 + $0x494] ss:$24 sps:$4 sm:$0xff]  }
 0x37f   :  { %8212 = vmatpush1.bf16.msra.mxu1 %v12263_v18  ;;  %8172 = vmatprep.subr.bf16.mxu0 %v12268_v19  ;;  %v12314_v18 = vld [vmem:[#allocation2 + $0x190] ss:$24 sps:$4 sm:$0xff]  }
 0x380   :  { %8213 = vmatprep.subr.bf16.mxu1 %v12271_v21  ;;  %v12317_v19 = vld [vmem:[#allocation2 + $0x490] ss:$24 sps:$4 sm:$0xff]   ;;  %v12322_v21 = vld [vmem:[#allocation2 + $0x764] ss:$24 sps:$4 sm:$0xff]  }
 0x382   :  { %8173 = vmatpush1.bf16.msra.mxu0 %v12266_v28  ;;  %v12325_v28 = vld [vmem:[#allocation2 + $0xa64] ss:$24 sps:$4 sm:$0xff]  }
 0x383   :  { %8214 = vmatpush1.bf16.msra.mxu1 %v12269_v60  ;;  %8174 = vmatprep.subr.bf16.mxu0 %v12274_v29  ;;  %v12320_v60 = vld [vmem:[#allocation2 + $0x760] ss:$24 sps:$4 sm:$0xff]  }
 0x384   :  { %8215 = vmatprep.subr.bf16.mxu1 %v12277_v30  ;;  %v12323_v29 = vld [vmem:[#allocation2 + $0xa60] ss:$24 sps:$4 sm:$0xff]   ;;  %v12328_v30 = vld [vmem:[#allocation2 + $0x734] ss:$24 sps:$4 sm:$0xff]  }
 0x386   :  { %8175 = vmatpush2.bf16.msra.mxu0 %v12272_v32  ;;  %v12331_v32 = vld [vmem:[#allocation2 + $0xa34] ss:$24 sps:$4 sm:$0xff]  }
 0x387   :  { %8216 = vmatpush2.bf16.msra.mxu1 %v12275_v34  ;;  %8176 = vmatprep.subr.bf16.mxu0 %v12280_v31 }
 0x388   :  { %8217 = vmatprep.subr.bf16.mxu1 %v12283_v42 }
 0x38a   :  { %8177 = vmatpush2.bf16.msra.mxu0 %v12278_v43  ;;  %v12326_v43 = vld [vmem:[#allocation2 + $0x730] ss:$24 sps:$4 sm:$0xff]  }
 0x38b   :  { %8218 = vmatpush2.bf16.msra.mxu1 %v12281_v44  ;;  %8178 = vmatprep.subr.bf16.mxu0 %v12286_v20  ;;  %v12329_v44 = vld [vmem:[#allocation2 + $0xa30] ss:$24 sps:$4 sm:$0xff]  }
 0x38c   :  { %8219 = vmatprep.subr.bf16.mxu1 %v12289_v46 }
 0x38e   :  { %8179 = vmatpush2.bf16.msra.mxu0 %v12284_v61  ;;  %v12334_v61 = vld [vmem:[#allocation2 + $0x704] ss:$24 sps:$4 sm:$0xff]  }
 0x38f   :  { %8220 = vmatpush2.bf16.msra.mxu1 %v12287_v49  ;;  %8180 = vmatprep.subr.bf16.mxu0 %v12292_v50  ;;  %v12337_v49 = vld [vmem:[#allocation2 + $0xa04] ss:$24 sps:$4 sm:$0xff]  }
 0x390   :  { %8221 = vmatprep.subr.bf16.mxu1 %v12295_v52 }
 0x392   :  { %8181 = vmatpush2.bf16.msra.mxu0 %v12290_v53  ;;  %v12332_v53 = vld [vmem:[#allocation2 + $0x700] ss:$24 sps:$4 sm:$0xff]  }
 0x393   :  { %8222 = vmatpush2.bf16.msra.mxu1 %v12293_v55  ;;  %8182 = vmatprep.subr.bf16.mxu0 %v12298_v56  ;;  %v12335_v55 = vld [vmem:[#allocation2 + $0xa00] ss:$24 sps:$4 sm:$0xff]  }
 0x394   :  { %8223 = vmatprep.subr.bf16.mxu1 %v12301_v41 }
 0x396   :  { %8183 = vmatpush2.bf16.msra.mxu0 %v12296_v47  ;;  %v12340_v47 = vld [vmem:[#allocation2 + $0x6d4] ss:$24 sps:$4 sm:$0xff]  }
 0x397   :  { %8224 = vmatpush2.bf16.msra.mxu1 %v12299_v51  ;;  %8184 = vmatprep.subr.bf16.mxu0 %v12304_v57  ;;  %v12343_v51 = vld [vmem:[#allocation2 + $0x9d4] ss:$24 sps:$4 sm:$0xff]   ;;  %v12349_v57 = vld [vmem:[#allocation2 + $0x9a4] ss:$24 sps:$4 sm:$0xff]  }
 0x398   :  { %8225 = vmatprep.subr.bf16.mxu1 %v12307_v58  ;;  %v12344_v58 = vld [vmem:[#allocation2 + $0x6a0] ss:$24 sps:$4 sm:$0xff]  }
 0x39a   :  { %8185 = vmatpush2.bf16.msra.mxu0 %v12302_v26  ;;  %v12347_v26 = vld [vmem:[#allocation2 + $0x9a0] ss:$24 sps:$4 sm:$0xff]  }
 0x39b   :  { %8226 = vmatpush2.bf16.msra.mxu1 %v12305_v62  ;;  %8186 = vmatprep.subr.bf16.mxu0 %v12310_v35  ;;  %v12352_v62 = vld [vmem:[#allocation2 + $0x674] ss:$24 sps:$4 sm:$0xff]  }
 0x39c   :  { %8227 = vmatprep.subr.bf16.mxu1 %v12313_v40  ;;  %v12355_v35 = vld [vmem:[#allocation2 + $0x974] ss:$24 sps:$4 sm:$0xff]   ;;  %v12350_v40 = vld [vmem:[#allocation2 + $0x670] ss:$24 sps:$4 sm:$0xff]  }
 0x39e   :  { %8187 = vmatpush2.bf16.msra.mxu0 %v12308_v8  ;;  %v12353_v8 = vld [vmem:[#allocation2 + $0x970] ss:$24 sps:$4 sm:$0xff]  }
 0x39f   :  { %8228 = vmatpush2.bf16.msra.mxu1 %v12311_v11  ;;  %8188 = vmatprep.subr.bf16.mxu0 %v12316_v12  ;;  %v12358_v11 = vld [vmem:[#allocation2 + $0x644] ss:$24 sps:$4 sm:$0xff]  }
 0x3a0   :  { %8229 = vmatprep.subr.bf16.mxu1 %v12319_v3  ;;  %v12361_v12 = vld [vmem:[#allocation2 + $0x944] ss:$24 sps:$4 sm:$0xff]   ;;  %v12356_v3 = vld [vmem:[#allocation2 + $0x640] ss:$24 sps:$4 sm:$0xff]  }
 0x3a2   :  { %8189 = vmatpush2.bf16.msra.mxu0 %v12314_v18  ;;  %v12359_v18 = vld [vmem:[#allocation2 + $0x940] ss:$24 sps:$4 sm:$0xff]  }
 0x3a3   :  { %8230 = vmatpush2.bf16.msra.mxu1 %v12317_v19  ;;  %8240 = vmatprep.subr.bf16.mxu0 %v12322_v21  ;;  %v12364_v19 = vld [vmem:[#allocation2 + $0x614] ss:$24 sps:$4 sm:$0xff]  }
 0x3a4   :  { %8281 = vmatprep.subr.bf16.mxu1 %v12325_v28  ;;  %v12367_v21 = vld [vmem:[#allocation2 + $0x914] ss:$24 sps:$4 sm:$0xff]   ;;  %v12362_v28 = vld [vmem:[#allocation2 + $0x610] ss:$24 sps:$4 sm:$0xff]  }
 0x3a5   :  { %v7946_v34 = vpop.f32.mrf.mxu0  ;;  %8191 = vmatmul.mubr.bf16.vlgmr.msra.gmra.mxu0 %v13244_v6 }
 0x3a6   :  { %v7987_v31 = vpop.f32.mrf.mxu1  ;;  %8232 = vmatmul.mubr.bf16.vlgmr.msra.gmra.mxu1 %v13246_v7  ;;  %v7947_v42 = vadd.f32 %v7946_v34, %v13479_v45  ;;  %8241 = vmatpush1.bf16.msra.mxu0 %v12320_v60  ;;  %v12365_v60 = vld [vmem:[#allocation2 + $0x910] ss:$24 sps:$4 sm:$0xff]   ;;  %v12371_v34 = vld [vmem:[#allocation2 + $0xbe0] ss:$24 sps:$4 sm:$0xff]  }
 0x3a7   :  { %8282 = vmatpush1.bf16.msra.mxu1 %v12323_v29  ;;  %v7948_v20 = vpop.f32.mrf.mxu0  ;;  %8242 = vmatprep.subr.bf16.mxu0 %v12328_v30  ;;  %v12370_v29 = vld [vmem:[#allocation2 + $0x8e4] ss:$24 sps:$4 sm:$0xff]  }
 0x3a8   :  { %v7989_v46 = vpop.f32.mrf.mxu1  ;;  %8283 = vmatprep.subr.bf16.mxu1 %v12331_v32  ;;  %v13489_v50 = vadd.f32 %v7987_v31, %v7947_v42  ;;  %v7949_v52 = vadd.f32 %v7948_v20, %v13484_v48  ;;  %8272 = vmatprep.mubr.bf16.mxu0 %v13262_v36  ;;  %v12338_v48 = vld [vmem:[#allocation2 + $0x6d0] ss:$24 sps:$4 sm:$0xff]   ;;  %v12373_v30 = vld [vmem:[#allocation2 + $0xbe4] ss:$24 sps:$4 sm:$0xff]   ;;  %v12368_v32 = vld [vmem:[#allocation2 + $0x8e0] ss:$24 sps:$4 sm:$0xff]  }
 0x3a9   :  { %8313 = vmatprep.mubr.bf16.mxu1 %v13266_v37  ;;  %v7950_v6 = vpop.f32.mrf.mxu0  ;;  %v12341_v36 = vld [vmem:[#allocation2 + $0x9d0] ss:$24 sps:$4 sm:$0xff]   ;;  %v12346_v37 = vld [vmem:[#allocation2 + $0x6a4] ss:$24 sps:$4 sm:$0xff]   ;;  %v12376_v31 = vld [vmem:[#allocation2 + $0x8b4] ss:$24 sps:$4 sm:$0xff]  }
 0x3aa   :  { %v7991_v7 = vpop.f32.mrf.mxu1  ;;  %v13494_v45 = vadd.f32 %v7989_v46, %v7949_v52  ;;  %8243 = vmatpush1.bf16.msra.mxu0 %v12326_v43  ;;  %v12379_v42 = vld [vmem:[#allocation2 + $0xbb4] ss:$24 sps:$4 sm:$0xff]   ;;  %v12374_v43 = vld [vmem:[#allocation2 + $0x8b0] ss:$24 sps:$4 sm:$0xff]   ;;  %v12382_v20 = vld [vmem:[#allocation2 + $0x884] ss:$24 sps:$4 sm:$0xff]  }
 0x3ab   :  { %8284 = vmatpush1.bf16.msra.mxu1 %v12329_v44  ;;  %v7951_v56 = vpop.f32.mrf.mxu0  ;;  %8244 = vmatprep.subr.bf16.mxu0 %v12334_v61  ;;  %v12377_v44 = vld [vmem:[#allocation2 + $0xbb0] ss:$24 sps:$4 sm:$0xff]   ;;  %v12385_v46 = vld [vmem:[#allocation2 + $0xb84] ss:$24 sps:$4 sm:$0xff]   ;;  %v12380_v61 = vld [vmem:[#allocation2 + $0x880] ss:$24 sps:$4 sm:$0xff]  }
 0x3ac   :  { %v7992_v41 = vpop.f32.mrf.mxu1  ;;  %8285 = vmatprep.subr.bf16.mxu1 %v12337_v49  ;;  %v12383_v49 = vld [vmem:[#allocation2 + $0xb80] ss:$24 sps:$4 sm:$0xff]   ;;  %v12388_v52 = vld [vmem:[#allocation2 + $0x854] ss:$24 sps:$4 sm:$0xff]   ;;  %v12386_v7 = vld [vmem:[#allocation2 + $0x850] ss:$24 sps:$4 sm:$0xff]  }
 0x3ad   :  { %v12391_v6 = vld [vmem:[#allocation2 + $0xb54] ss:$24 sps:$4 sm:$0xff]   ;;  %v12397_v56 = vld [vmem:[#allocation2 + $0xb24] ss:$24 sps:$4 sm:$0xff]   ;;  %v12392_v41 = vld [vmem:[#allocation2 + $0x820] ss:$24 sps:$4 sm:$0xff]  }
 0x3ae   :  { %8245 = vmatpush1.bf16.msra.mxu0 %v12332_v53  ;;  %v12389_v53 = vld [vmem:[#allocation2 + $0xb50] ss:$24 sps:$4 sm:$0xff]  }
 0x3af   :  { %8286 = vmatpush1.bf16.msra.mxu1 %v12335_v55  ;;  %8246 = vmatprep.subr.bf16.mxu0 %v12340_v47  ;;  %v12394_v55 = vld [vmem:[#allocation2 + $0x824] ss:$24 sps:$4 sm:$0xff]   ;;  %v12395_v47 = vld [vmem:[#allocation2 + $0xb20] ss:$24 sps:$4 sm:$0xff]  }
 0x3b0   :  { %8287 = vmatprep.subr.bf16.mxu1 %v12343_v51  ;;  %v12400_v51 = vld [vmem:[#allocation2 + $0x7f4] ss:$24 sps:$4 sm:$0xff]  }
 0x3b2   :  { %8247 = vmatpush1.bf16.msra.mxu0 %v12338_v48  ;;  %v12403_v48 = vld [vmem:[#allocation2 + $0xaf4] ss:$24 sps:$4 sm:$0xff]  }
 0x3b3   :  { %8288 = vmatpush1.bf16.msra.mxu1 %v12341_v36  ;;  %8248 = vmatprep.subr.bf16.mxu0 %v12346_v37  ;;  %v12398_v36 = vld [vmem:[#allocation2 + $0x7f0] ss:$24 sps:$4 sm:$0xff]  }
 0x3b4   :  { %8289 = vmatprep.subr.bf16.mxu1 %v12349_v57  ;;  %v12401_v37 = vld [vmem:[#allocation2 + $0xaf0] ss:$24 sps:$4 sm:$0xff]   ;;  %v12406_v57 = vld [vmem:[#allocation2 + $0x7c4] ss:$24 sps:$4 sm:$0xff]  }
 0x3b6   :  { %8249 = vmatpush1.bf16.msra.mxu0 %v12344_v58  ;;  %v12409_v58 = vld [vmem:[#allocation2 + $0xac4] ss:$24 sps:$4 sm:$0xff]  }
 0x3b7   :  { %8290 = vmatpush1.bf16.msra.mxu1 %v12347_v26  ;;  %8250 = vmatprep.subr.bf16.mxu0 %v12352_v62  ;;  %v12404_v26 = vld [vmem:[#allocation2 + $0x7c0] ss:$24 sps:$4 sm:$0xff]  }
 0x3b8   :  { %8291 = vmatprep.subr.bf16.mxu1 %v12355_v35  ;;  %v12407_v62 = vld [vmem:[#allocation2 + $0xac0] ss:$24 sps:$4 sm:$0xff]   ;;  %v12412_v35 = vld [vmem:[#allocation2 + $0x794] ss:$24 sps:$4 sm:$0xff]  }
 0x3ba   :  { %8251 = vmatpush1.bf16.msra.mxu0 %v12350_v40  ;;  %v12415_v40 = vld [vmem:[#allocation2 + $0xa94] ss:$24 sps:$4 sm:$0xff]  }
 0x3bb   :  { %8292 = vmatpush1.bf16.msra.mxu1 %v12353_v8  ;;  %8252 = vmatprep.subr.bf16.mxu0 %v12358_v11  ;;  %v12410_v8 = vld [vmem:[#allocation2 + $0x790] ss:$24 sps:$4 sm:$0xff]  }
 0x3bc   :  { %8293 = vmatprep.subr.bf16.mxu1 %v12361_v12  ;;  %v12413_v11 = vld [vmem:[#allocation2 + $0xa90] ss:$24 sps:$4 sm:$0xff]   ;;  %v12418_v12 = vld [vmem:[#allocation2 + $0xd64] ss:$24 sps:$4 sm:$0xff]  }
 0x3be   :  { %8253 = vmatpush1.bf16.msra.mxu0 %v12356_v3  ;;  %v12421_v3 = vld [vmem:[#allocation2 + $0x1064] ss:$24 sps:$4 sm:$0xff]  }
 0x3bf   :  { %8294 = vmatpush1.bf16.msra.mxu1 %v12359_v18  ;;  %8254 = vmatprep.subr.bf16.mxu0 %v12364_v19  ;;  %v12416_v18 = vld [vmem:[#allocation2 + $0xd60] ss:$24 sps:$4 sm:$0xff]  }
 0x3c0   :  { %8295 = vmatprep.subr.bf16.mxu1 %v12367_v21  ;;  %v12419_v19 = vld [vmem:[#allocation2 + $0x1060] ss:$24 sps:$4 sm:$0xff]   ;;  %v12424_v21 = vld [vmem:[#allocation2 + $0xd34] ss:$24 sps:$4 sm:$0xff]  }
 0x3c2   :  { %8255 = vmatpush1.bf16.msra.mxu0 %v12362_v28  ;;  %v12427_v28 = vld [vmem:[#allocation2 + $0x1034] ss:$24 sps:$4 sm:$0xff]  }
 0x3c3   :  { %8296 = vmatpush1.bf16.msra.mxu1 %v12365_v60  ;;  %8256 = vmatprep.subr.bf16.mxu0 %v12370_v29 }
 0x3c4   :  { %8297 = vmatprep.subr.bf16.mxu1 %v12373_v30 }
 0x3c6   :  { %8257 = vmatpush2.bf16.msra.mxu0 %v12368_v32  ;;  %v12422_v32 = vld [vmem:[#allocation2 + $0xd30] ss:$24 sps:$4 sm:$0xff]  }
 0x3c7   :  { %8298 = vmatpush2.bf16.msra.mxu1 %v12371_v34  ;;  %8258 = vmatprep.subr.bf16.mxu0 %v12376_v31  ;;  %v12425_v34 = vld [vmem:[#allocation2 + $0x1030] ss:$24 sps:$4 sm:$0xff]  }
 0x3c8   :  { %8299 = vmatprep.subr.bf16.mxu1 %v12379_v42 }
 0x3ca   :  { %8259 = vmatpush2.bf16.msra.mxu0 %v12374_v43  ;;  %v12430_v43 = vld [vmem:[#allocation2 + $0xd04] ss:$24 sps:$4 sm:$0xff]  }
 0x3cb   :  { %8300 = vmatpush2.bf16.msra.mxu1 %v12377_v44  ;;  %8260 = vmatprep.subr.bf16.mxu0 %v12382_v20  ;;  %v12433_v44 = vld [vmem:[#allocation2 + $0x1004] ss:$24 sps:$4 sm:$0xff]  }
 0x3cc   :  { %8301 = vmatprep.subr.bf16.mxu1 %v12385_v46 }
 0x3ce   :  { %8261 = vmatpush2.bf16.msra.mxu0 %v12380_v61  ;;  %v12428_v61 = vld [vmem:[#allocation2 + $0xd00] ss:$24 sps:$4 sm:$0xff]  }
 0x3cf   :  { %8302 = vmatpush2.bf16.msra.mxu1 %v12383_v49  ;;  %8262 = vmatprep.subr.bf16.mxu0 %v12388_v52  ;;  %v12431_v49 = vld [vmem:[#allocation2 + $0x1000] ss:$24 sps:$4 sm:$0xff]  }
 0x3d0   :  { %8303 = vmatprep.subr.bf16.mxu1 %v12391_v6 }
 0x3d2   :  { %8263 = vmatpush2.bf16.msra.mxu0 %v12386_v7  ;;  %v12436_v7 = vld [vmem:[#allocation2 + $0xcd4] ss:$24 sps:$4 sm:$0xff]  }
 0x3d3   :  { %8304 = vmatpush2.bf16.msra.mxu1 %v12389_v53  ;;  %8264 = vmatprep.subr.bf16.mxu0 %v12394_v55  ;;  %v12439_v53 = vld [vmem:[#allocation2 + $0xfd4] ss:$24 sps:$4 sm:$0xff]   ;;  %v12445_v55 = vld [vmem:[#allocation2 + $0xfa4] ss:$24 sps:$4 sm:$0xff]  }
 0x3d4   :  { %8305 = vmatprep.subr.bf16.mxu1 %v12397_v56  ;;  %v12440_v56 = vld [vmem:[#allocation2 + $0xca0] ss:$24 sps:$4 sm:$0xff]  }
 0x3d6   :  { %8265 = vmatpush2.bf16.msra.mxu0 %v12392_v41  ;;  %v12443_v41 = vld [vmem:[#allocation2 + $0xfa0] ss:$24 sps:$4 sm:$0xff]  }
 0x3d7   :  { %8306 = vmatpush2.bf16.msra.mxu1 %v12395_v47  ;;  %8266 = vmatprep.subr.bf16.mxu0 %v12400_v51  ;;  %v12448_v47 = vld [vmem:[#allocation2 + $0xc74] ss:$24 sps:$4 sm:$0xff]  }
 0x3d8   :  { %8307 = vmatprep.subr.bf16.mxu1 %v12403_v48  ;;  %v12451_v51 = vld [vmem:[#allocation2 + $0xf74] ss:$24 sps:$4 sm:$0xff]   ;;  %v12446_v48 = vld [vmem:[#allocation2 + $0xc70] ss:$24 sps:$4 sm:$0xff]  }
 0x3da   :  { %8267 = vmatpush2.bf16.msra.mxu0 %v12398_v36  ;;  %v12449_v36 = vld [vmem:[#allocation2 + $0xf70] ss:$24 sps:$4 sm:$0xff]  }
 0x3db   :  { %8308 = vmatpush2.bf16.msra.mxu1 %v12401_v37  ;;  %8268 = vmatprep.subr.bf16.mxu0 %v12406_v57  ;;  %v12454_v37 = vld [vmem:[#allocation2 + $0xc44] ss:$24 sps:$4 sm:$0xff]  }
 0x3dc   :  { %8309 = vmatprep.subr.bf16.mxu1 %v12409_v58  ;;  %v12457_v57 = vld [vmem:[#allocation2 + $0xf44] ss:$24 sps:$4 sm:$0xff]   ;;  %v12452_v58 = vld [vmem:[#allocation2 + $0xc40] ss:$24 sps:$4 sm:$0xff]  }
 0x3de   :  { %8269 = vmatpush2.bf16.msra.mxu0 %v12404_v26  ;;  %v12455_v26 = vld [vmem:[#allocation2 + $0xf40] ss:$24 sps:$4 sm:$0xff]  }
 0x3df   :  { %8310 = vmatpush2.bf16.msra.mxu1 %v12407_v62  ;;  %8270 = vmatprep.subr.bf16.mxu0 %v12412_v35  ;;  %v12460_v62 = vld [vmem:[#allocation2 + $0xc14] ss:$24 sps:$4 sm:$0xff]  }
 0x3e0   :  { %8311 = vmatprep.subr.bf16.mxu1 %v12415_v40  ;;  %v12463_v35 = vld [vmem:[#allocation2 + $0xf14] ss:$24 sps:$4 sm:$0xff]   ;;  %v12458_v40 = vld [vmem:[#allocation2 + $0xc10] ss:$24 sps:$4 sm:$0xff]  }
 0x3e2   :  { %8271 = vmatpush2.bf16.msra.mxu0 %v12410_v8  ;;  %v12461_v8 = vld [vmem:[#allocation2 + $0xf10] ss:$24 sps:$4 sm:$0xff]  }
 0x3e3   :  { %8312 = vmatpush2.bf16.msra.mxu1 %v12413_v11  ;;  %8322 = vmatprep.subr.bf16.mxu0 %v12418_v12  ;;  %v12466_v11 = vld [vmem:[#allocation2 + $0xee4] ss:$24 sps:$4 sm:$0xff]  }
 0x3e4   :  { %8363 = vmatprep.subr.bf16.mxu1 %v12421_v3  ;;  %v12469_v12 = vld [vmem:[#allocation2 + $0x11e4] ss:$24 sps:$4 sm:$0xff]   ;;  %v12464_v3 = vld [vmem:[#allocation2 + $0xee0] ss:$24 sps:$4 sm:$0xff]  }
 0x3e5   :  { %v8028_v60 = vpop.f32.mrf.mxu0  ;;  %8273 = vmatmul.mubr.bf16.vlgmr.msra.gmra.mxu0 %v13272_v16 }
 0x3e6   :  { %v8069_v29 = vpop.f32.mrf.mxu1  ;;  %8314 = vmatmul.mubr.bf16.vlgmr.msra.gmra.mxu1 %v13276_v17  ;;  %v8029_v30 = vadd.f32 %v8028_v60, %v13489_v50  ;;  %8323 = vmatpush1.bf16.msra.mxu0 %v12416_v18  ;;  %v12467_v18 = vld [vmem:[#allocation2 + $0x11e0] ss:$24 sps:$4 sm:$0xff]   ;;  %v12473_v60 = vld [vmem:[#allocation2 + $0x11b0] ss:$24 sps:$4 sm:$0xff]  }
 0x3e7   :  { %8364 = vmatpush1.bf16.msra.mxu1 %v12419_v19  ;;  %v8030_v31 = vpop.f32.mrf.mxu0  ;;  %8324 = vmatprep.subr.bf16.mxu0 %v12424_v21  ;;  %v12472_v19 = vld [vmem:[#allocation2 + $0xeb4] ss:$24 sps:$4 sm:$0xff]  }
 0x3e8   :  { %v8071_v42 = vpop.f32.mrf.mxu1  ;;  %8365 = vmatprep.subr.bf16.mxu1 %v12427_v28  ;;  %v13499_v20 = vadd.f32 %v8069_v29, %v8029_v30  ;;  %v8031_v46 = vadd.f32 %v8030_v31, %v13494_v45  ;;  %8354 = vmatprep.mubr.bf16.mxu0 %v13290_v24  ;;  %v12434_v45 = vld [vmem:[#allocation2 + $0xcd0] ss:$24 sps:$4 sm:$0xff]   ;;  %v12475_v21 = vld [vmem:[#allocation2 + $0x11b4] ss:$24 sps:$4 sm:$0xff]   ;;  %v12478_v29 = vld [vmem:[#allocation2 + $0xe84] ss:$24 sps:$4 sm:$0xff]  }
 0x3e9   :  { %8395 = vmatprep.mubr.bf16.mxu1 %v13294_v25  ;;  %v8032_v16 = vpop.f32.mrf.mxu0  ;;  %v12437_v24 = vld [vmem:[#allocation2 + $0xfd0] ss:$24 sps:$4 sm:$0xff]   ;;  %v12442_v25 = vld [vmem:[#allocation2 + $0xca4] ss:$24 sps:$4 sm:$0xff]   ;;  %v12484_v31 = vld [vmem:[#allocation2 + $0xe54] ss:$24 sps:$4 sm:$0xff]  }
 0x3ea   :  { %v8073_v17 = vpop.f32.mrf.mxu1  ;;  %v13504_v50 = vadd.f32 %v8071_v42, %v8031_v46  ;;  %8325 = vmatpush1.bf16.msra.mxu0 %v12422_v32  ;;  %v12470_v28 = vld [vmem:[#allocation2 + $0xeb0] ss:$24 sps:$4 sm:$0xff]   ;;  %v12481_v30 = vld [vmem:[#allocation2 + $0x1184] ss:$24 sps:$4 sm:$0xff]   ;;  %v12476_v32 = vld [vmem:[#allocation2 + $0xe80] ss:$24 sps:$4 sm:$0xff]  }
 0x3eb   :  { %8366 = vmatpush1.bf16.msra.mxu1 %v12425_v34  ;;  %v8033_v52 = vpop.f32.mrf.mxu0  ;;  %8326 = vmatprep.subr.bf16.mxu0 %v12430_v43  ;;  %v12479_v34 = vld [vmem:[#allocation2 + $0x1180] ss:$24 sps:$4 sm:$0xff]   ;;  %v12487_v42 = vld [vmem:[#allocation2 + $0x1154] ss:$24 sps:$4 sm:$0xff]   ;;  %v12482_v43 = vld [vmem:[#allocation2 + $0xe50] ss:$24 sps:$4 sm:$0xff]  }
 0x3ec   :  { %v8074_v6 = vpop.f32.mrf.mxu1  ;;  %8367 = vmatprep.subr.bf16.mxu1 %v12433_v44  ;;  %v12485_v44 = vld [vmem:[#allocation2 + $0x1150] ss:$24 sps:$4 sm:$0xff]   ;;  %v12490_v46 = vld [vmem:[#allocation2 + $0xe24] ss:$24 sps:$4 sm:$0xff]   ;;  %v12488_v17 = vld [vmem:[#allocation2 + $0xe20] ss:$24 sps:$4 sm:$0xff]  }
 0x3ed   :  { %v12493_v16 = vld [vmem:[#allocation2 + $0x1124] ss:$24 sps:$4 sm:$0xff]   ;;  %v12499_v52 = vld [vmem:[#allocation2 + $0x10f4] ss:$24 sps:$4 sm:$0xff]   ;;  %v12494_v6 = vld [vmem:[#allocation2 + $0xdf0] ss:$24 sps:$4 sm:$0xff]  }
 0x3ee   :  { %8327 = vmatpush1.bf16.msra.mxu0 %v12428_v61  ;;  %v12491_v61 = vld [vmem:[#allocation2 + $0x1120] ss:$24 sps:$4 sm:$0xff]  }
 0x3ef   :  { %8368 = vmatpush1.bf16.msra.mxu1 %v12431_v49  ;;  %8328 = vmatprep.subr.bf16.mxu0 %v12436_v7  ;;  %v12496_v49 = vld [vmem:[#allocation2 + $0xdf4] ss:$24 sps:$4 sm:$0xff]   ;;  %v12497_v7 = vld [vmem:[#allocation2 + $0x10f0] ss:$24 sps:$4 sm:$0xff]  }
 0x3f0   :  { %8369 = vmatprep.subr.bf16.mxu1 %v12439_v53  ;;  %v12502_v53 = vld [vmem:[#allocation2 + $0xdc4] ss:$24 sps:$4 sm:$0xff]  }
 0x3f2   :  { %8329 = vmatpush1.bf16.msra.mxu0 %v12434_v45  ;;  %v12505_v45 = vld [vmem:[#allocation2 + $0x10c4] ss:$24 sps:$4 sm:$0xff]  }
 0x3f3   :  { %8370 = vmatpush1.bf16.msra.mxu1 %v12437_v24  ;;  %8330 = vmatprep.subr.bf16.mxu0 %v12442_v25  ;;  %v12500_v24 = vld [vmem:[#allocation2 + $0xdc0] ss:$24 sps:$4 sm:$0xff]  }
 0x3f4   :  { %8371 = vmatprep.subr.bf16.mxu1 %v12445_v55  ;;  %v12503_v25 = vld [vmem:[#allocation2 + $0x10c0] ss:$24 sps:$4 sm:$0xff]   ;;  %v12508_v55 = vld [vmem:[#allocation2 + $0xd94] ss:$24 sps:$4 sm:$0xff]  }
 0x3f6   :  { %8331 = vmatpush1.bf16.msra.mxu0 %v12440_v56  ;;  %v12511_v56 = vld [vmem:[#allocation2 + $0x1094] ss:$24 sps:$4 sm:$0xff]  }
 0x3f7   :  { %8372 = vmatpush1.bf16.msra.mxu1 %v12443_v41  ;;  %8332 = vmatprep.subr.bf16.mxu0 %v12448_v47  ;;  %v12506_v41 = vld [vmem:[#allocation2 + $0xd90] ss:$24 sps:$4 sm:$0xff]  }
 0x3f8   :  { %8373 = vmatprep.subr.bf16.mxu1 %v12451_v51  ;;  %v12509_v47 = vld [vmem:[#allocation2 + $0x1090] ss:$24 sps:$4 sm:$0xff]   ;;  %v12514_v51 = vld [vmem:[#allocation2 + $0x1364] ss:$24 sps:$4 sm:$0xff]  }
 0x3fa   :  { %8333 = vmatpush1.bf16.msra.mxu0 %v12446_v48  ;;  %v12517_v48 = vld [vmem:[#allocation2 + $0x1664] ss:$24 sps:$4 sm:$0xff]  }
 0x3fb   :  { %8374 = vmatpush1.bf16.msra.mxu1 %v12449_v36  ;;  %8334 = vmatprep.subr.bf16.mxu0 %v12454_v37  ;;  %v12512_v36 = vld [vmem:[#allocation2 + $0x1360] ss:$24 sps:$4 sm:$0xff]  }
 0x3fc   :  { %8375 = vmatprep.subr.bf16.mxu1 %v12457_v57  ;;  %v12515_v37 = vld [vmem:[#allocation2 + $0x1660] ss:$24 sps:$4 sm:$0xff]   ;;  %v12520_v57 = vld [vmem:[#allocation2 + $0x1334] ss:$24 sps:$4 sm:$0xff]  }
 0x3fe   :  { %8335 = vmatpush1.bf16.msra.mxu0 %v12452_v58  ;;  %v12523_v58 = vld [vmem:[#allocation2 + $0x1634] ss:$24 sps:$4 sm:$0xff]  }
 0x3ff   :  { %8376 = vmatpush1.bf16.msra.mxu1 %v12455_v26  ;;  %8336 = vmatprep.subr.bf16.mxu0 %v12460_v62 }
 0x400   :  { %8377 = vmatprep.subr.bf16.mxu1 %v12463_v35 }
 0x402   :  { %8337 = vmatpush1.bf16.msra.mxu0 %v12458_v40  ;;  %v12518_v40 = vld [vmem:[#allocation2 + $0x1330] ss:$24 sps:$4 sm:$0xff]  }
 0x403   :  { %8378 = vmatpush1.bf16.msra.mxu1 %v12461_v8  ;;  %8338 = vmatprep.subr.bf16.mxu0 %v12466_v11  ;;  %v12521_v8 = vld [vmem:[#allocation2 + $0x1630] ss:$24 sps:$4 sm:$0xff]  }
 0x404   :  { %8379 = vmatprep.subr.bf16.mxu1 %v12469_v12 }
 0x406   :  { %8339 = vmatpush2.bf16.msra.mxu0 %v12464_v3  ;;  %v12526_v3 = vld [vmem:[#allocation2 + $0x1304] ss:$24 sps:$4 sm:$0xff]  }
 0x407   :  { %8380 = vmatpush2.bf16.msra.mxu1 %v12467_v18  ;;  %8340 = vmatprep.subr.bf16.mxu0 %v12472_v19  ;;  %v12529_v18 = vld [vmem:[#allocation2 + $0x1604] ss:$24 sps:$4 sm:$0xff]  }
 0x408   :  { %8381 = vmatprep.subr.bf16.mxu1 %v12475_v21 }
 0x40a   :  { %8341 = vmatpush2.bf16.msra.mxu0 %v12470_v28  ;;  %v12524_v28 = vld [vmem:[#allocation2 + $0x1300] ss:$24 sps:$4 sm:$0xff]  }
 0x40b   :  { %8382 = vmatpush2.bf16.msra.mxu1 %v12473_v60  ;;  %8342 = vmatprep.subr.bf16.mxu0 %v12478_v29  ;;  %v12527_v60 = vld [vmem:[#allocation2 + $0x1600] ss:$24 sps:$4 sm:$0xff]  }
 0x40c   :  { %8383 = vmatprep.subr.bf16.mxu1 %v12481_v30 }
 0x40e   :  { %8343 = vmatpush2.bf16.msra.mxu0 %v12476_v32  ;;  %v12532_v32 = vld [vmem:[#allocation2 + $0x12d4] ss:$24 sps:$4 sm:$0xff]  }
 0x40f   :  { %8384 = vmatpush2.bf16.msra.mxu1 %v12479_v34  ;;  %8344 = vmatprep.subr.bf16.mxu0 %v12484_v31  ;;  %v12535_v34 = vld [vmem:[#allocation2 + $0x15d4] ss:$24 sps:$4 sm:$0xff]   ;;  %v12541_v31 = vld [vmem:[#allocation2 + $0x15a4] ss:$24 sps:$4 sm:$0xff]  }
 0x410   :  { %8385 = vmatprep.subr.bf16.mxu1 %v12487_v42  ;;  %v12536_v42 = vld [vmem:[#allocation2 + $0x12a0] ss:$24 sps:$4 sm:$0xff]  }
 0x412   :  { %8345 = vmatpush2.bf16.msra.mxu0 %v12482_v43  ;;  %v12539_v43 = vld [vmem:[#allocation2 + $0x15a0] ss:$24 sps:$4 sm:$0xff]  }
 0x413   :  { %8386 = vmatpush2.bf16.msra.mxu1 %v12485_v44  ;;  %8346 = vmatprep.subr.bf16.mxu0 %v12490_v46  ;;  %v12544_v44 = vld [vmem:[#allocation2 + $0x1274] ss:$24 sps:$4 sm:$0xff]  }
 0x414   :  { %8387 = vmatprep.subr.bf16.mxu1 %v12493_v16  ;;  %v12547_v46 = vld [vmem:[#allocation2 + $0x1574] ss:$24 sps:$4 sm:$0xff]   ;;  %v12542_v16 = vld [vmem:[#allocation2 + $0x1270] ss:$24 sps:$4 sm:$0xff]  }
 0x416   :  { %8347 = vmatpush2.bf16.msra.mxu0 %v12488_v17  ;;  %v12545_v17 = vld [vmem:[#allocation2 + $0x1570] ss:$24 sps:$4 sm:$0xff]  }
 0x417   :  { %8388 = vmatpush2.bf16.msra.mxu1 %v12491_v61  ;;  %8348 = vmatprep.subr.bf16.mxu0 %v12496_v49  ;;  %v12550_v61 = vld [vmem:[#allocation2 + $0x1244] ss:$24 sps:$4 sm:$0xff]  }
 0x418   :  { %8389 = vmatprep.subr.bf16.mxu1 %v12499_v52  ;;  %v12553_v49 = vld [vmem:[#allocation2 + $0x1544] ss:$24 sps:$4 sm:$0xff]   ;;  %v12548_v52 = vld [vmem:[#allocation2 + $0x1240] ss:$24 sps:$4 sm:$0xff]  }
 0x41a   :  { %8349 = vmatpush2.bf16.msra.mxu0 %v12494_v6  ;;  %v12551_v6 = vld [vmem:[#allocation2 + $0x1540] ss:$24 sps:$4 sm:$0xff]  }
 0x41b   :  { %8390 = vmatpush2.bf16.msra.mxu1 %v12497_v7  ;;  %8350 = vmatprep.subr.bf16.mxu0 %v12502_v53  ;;  %v12556_v7 = vld [vmem:[#allocation2 + $0x1214] ss:$24 sps:$4 sm:$0xff]  }
 0x41c   :  { %8391 = vmatprep.subr.bf16.mxu1 %v12505_v45  ;;  %v12559_v53 = vld [vmem:[#allocation2 + $0x1514] ss:$24 sps:$4 sm:$0xff]   ;;  %v12554_v45 = vld [vmem:[#allocation2 + $0x1210] ss:$24 sps:$4 sm:$0xff]  }
 0x41e   :  { %8351 = vmatpush2.bf16.msra.mxu0 %v12500_v24  ;;  %v12557_v24 = vld [vmem:[#allocation2 + $0x1510] ss:$24 sps:$4 sm:$0xff]  }
 0x41f   :  { %8392 = vmatpush2.bf16.msra.mxu1 %v12503_v25  ;;  %8352 = vmatprep.subr.bf16.mxu0 %v12508_v55  ;;  %v12562_v25 = vld [vmem:[#allocation2 + $0x14e4] ss:$24 sps:$4 sm:$0xff]  }
 0x420   :  { %8393 = vmatprep.subr.bf16.mxu1 %v12511_v56  ;;  %v12565_v55 = vld [vmem:[#allocation2 + $0x17e4] ss:$24 sps:$4 sm:$0xff]   ;;  %v12560_v56 = vld [vmem:[#allocation2 + $0x14e0] ss:$24 sps:$4 sm:$0xff]  }
 0x422   :  { %8353 = vmatpush2.bf16.msra.mxu0 %v12506_v41  ;;  %v12563_v41 = vld [vmem:[#allocation2 + $0x17e0] ss:$24 sps:$4 sm:$0xff]  }
 0x423   :  { %8394 = vmatpush2.bf16.msra.mxu1 %v12509_v47  ;;  %8404 = vmatprep.subr.bf16.mxu0 %v12514_v51  ;;  %v12568_v47 = vld [vmem:[#allocation2 + $0x14b4] ss:$24 sps:$4 sm:$0xff]  }
 0x424   :  { %8445 = vmatprep.subr.bf16.mxu1 %v12517_v48  ;;  %v12571_v51 = vld [vmem:[#allocation2 + $0x17b4] ss:$24 sps:$4 sm:$0xff]   ;;  %v12566_v48 = vld [vmem:[#allocation2 + $0x14b0] ss:$24 sps:$4 sm:$0xff]  }
 0x425   :  { %v8110_v26 = vpop.f32.mrf.mxu0  ;;  %8355 = vmatmul.mubr.bf16.vlgmr.msra.gmra.mxu0 %v13307_v38 }
 0x426   :  { %v8151_v62 = vpop.f32.mrf.mxu1  ;;  %8396 = vmatmul.mubr.bf16.vlgmr.msra.gmra.mxu1 %v13311_v39  ;;  %v8111_v35 = vadd.f32 %v8110_v26, %v13499_v20  ;;  %8405 = vmatpush1.bf16.msra.mxu0 %v12512_v36  ;;  %v12569_v36 = vld [vmem:[#allocation2 + $0x17b0] ss:$24 sps:$4 sm:$0xff]   ;;  %v12575_v26 = vld [vmem:[#allocation2 + $0x1780] ss:$24 sps:$4 sm:$0xff]  }
 0x427   :  { %8446 = vmatpush1.bf16.msra.mxu1 %v12515_v37  ;;  %v8112_v11 = vpop.f32.mrf.mxu0  ;;  %8406 = vmatprep.subr.bf16.mxu0 %v12520_v57  ;;  %v12574_v37 = vld [vmem:[#allocation2 + $0x1484] ss:$24 sps:$4 sm:$0xff]  }
 0x428   :  { %v8153_v12 = vpop.f32.mrf.mxu1  ;;  %8447 = vmatprep.subr.bf16.mxu1 %v12523_v58  ;;  %v13509_v19 = vadd.f32 %v8151_v62, %v8111_v35  ;;  %v8113_v21 = vadd.f32 %v8112_v11, %v13504_v50  ;;  %8436 = vmatprep.mubr.bf16.mxu0 %v13320_v22  ;;  %v12530_v50 = vld [vmem:[#allocation2 + $0x12d0] ss:$24 sps:$4 sm:$0xff]   ;;  %v12577_v57 = vld [vmem:[#allocation2 + $0x1784] ss:$24 sps:$4 sm:$0xff]   ;;  %v12572_v58 = vld [vmem:[#allocation2 + $0x1480] ss:$24 sps:$4 sm:$0xff]  }
 0x429   :  { %8477 = vmatprep.mubr.bf16.mxu1 %v13324_v23  ;;  %v8114_v38 = vpop.f32.mrf.mxu0  ;;  %v12533_v22 = vld [vmem:[#allocation2 + $0x15d0] ss:$24 sps:$4 sm:$0xff]   ;;  %v12538_v23 = vld [vmem:[#allocation2 + $0x12a4] ss:$24 sps:$4 sm:$0xff]   ;;  %v12580_v62 = vld [vmem:[#allocation2 + $0x1454] ss:$24 sps:$4 sm:$0xff]  }
 0x42a   :  { %v8155_v39 = vpop.f32.mrf.mxu1  ;;  %v13514_v20 = vadd.f32 %v8153_v12, %v8113_v21  ;;  %8407 = vmatpush1.bf16.msra.mxu0 %v12518_v40  ;;  %v12583_v35 = vld [vmem:[#allocation2 + $0x1754] ss:$24 sps:$4 sm:$0xff]   ;;  %v12578_v40 = vld [vmem:[#allocation2 + $0x1450] ss:$24 sps:$4 sm:$0xff]   ;;  %v12586_v11 = vld [vmem:[#allocation2 + $0x1424] ss:$24 sps:$4 sm:$0xff]  }
 0x42b   :  { %8448 = vmatpush1.bf16.msra.mxu1 %v12521_v8  ;;  %v8115_v29 = vpop.f32.mrf.mxu0  ;;  %8408 = vmatprep.subr.bf16.mxu0 %v12526_v3  ;;  %v12581_v8 = vld [vmem:[#allocation2 + $0x1750] ss:$24 sps:$4 sm:$0xff]   ;;  %v12589_v12 = vld [vmem:[#allocation2 + $0x1724] ss:$24 sps:$4 sm:$0xff]   ;;  %v12584_v3 = vld [vmem:[#allocation2 + $0x1420] ss:$24 sps:$4 sm:$0xff]  }
 0x42c   :  { %v8156_v30 = vpop.f32.mrf.mxu1  ;;  %8449 = vmatprep.subr.bf16.mxu1 %v12529_v18  ;;  %v12587_v18 = vld [vmem:[#allocation2 + $0x1720] ss:$24 sps:$4 sm:$0xff]   ;;  %v12592_v21 = vld [vmem:[#allocation2 + $0x13f4] ss:$24 sps:$4 sm:$0xff]   ;;  %v12590_v39 = vld [vmem:[#allocation2 + $0x13f0] ss:$24 sps:$4 sm:$0xff]  }
 0x42d   :  { %v12595_v38 = vld [vmem:[#allocation2 + $0x16f4] ss:$24 sps:$4 sm:$0xff]   ;;  %v12601_v29 = vld [vmem:[#allocation2 + $0x16c4] ss:$24 sps:$4 sm:$0xff]   ;;  %v12596_v30 = vld [vmem:[#allocation2 + $0x13c0] ss:$24 sps:$4 sm:$0xff]  }
 0x42e   :  { %8409 = vmatpush1.bf16.msra.mxu0 %v12524_v28  ;;  %v12593_v28 = vld [vmem:[#allocation2 + $0x16f0] ss:$24 sps:$4 sm:$0xff]  }
 0x42f   :  { %8450 = vmatpush1.bf16.msra.mxu1 %v12527_v60  ;;  %8410 = vmatprep.subr.bf16.mxu0 %v12532_v32  ;;  %v12598_v60 = vld [vmem:[#allocation2 + $0x13c4] ss:$24 sps:$4 sm:$0xff]   ;;  %v12599_v32 = vld [vmem:[#allocation2 + $0x16c0] ss:$24 sps:$4 sm:$0xff]  }
 0x430   :  { %8451 = vmatprep.subr.bf16.mxu1 %v12535_v34  ;;  %v12604_v34 = vld [vmem:[#allocation2 + $0x1394] ss:$24 sps:$4 sm:$0xff]  }
 0x432   :  { %8411 = vmatpush1.bf16.msra.mxu0 %v12530_v50  ;;  %v12607_v50 = vld [vmem:[#allocation2 + $0x1694] ss:$24 sps:$4 sm:$0xff]  }
 0x433   :  { %8452 = vmatpush1.bf16.msra.mxu1 %v12533_v22  ;;  %8412 = vmatprep.subr.bf16.mxu0 %v12538_v23  ;;  %v12602_v22 = vld [vmem:[#allocation2 + $0x1390] ss:$24 sps:$4 sm:$0xff]  }
 0x434   :  { %8453 = vmatprep.subr.bf16.mxu1 %v12541_v31  ;;  %v12605_v23 = vld [vmem:[#allocation2 + $0x1690] ss:$24 sps:$4 sm:$0xff]   ;;  %v1318_v31 = vsub.s32 4, %v13330_v54 }
 0x436   :  { %8413 = vmatpush1.bf16.msra.mxu0 %v12536_v42  ;;  %v12610_v42 = vld [vmem:[#allocation2 + $0x1964] ss:$24 sps:$4 sm:$0xff]  }
 0x437   :  { %8454 = vmatpush1.bf16.msra.mxu1 %v12539_v43  ;;  %8414 = vmatprep.subr.bf16.mxu0 %v12544_v44  ;;  %v12613_v43 = vld [vmem:[#allocation2 + $0x1c64] ss:$24 sps:$4 sm:$0xff]   ;;  %v1322_v44 = vsub.s32 5, %v13330_v54 }
 0x438   :  { %8455 = vmatprep.subr.bf16.mxu1 %v12547_v46  ;;  %v12971_v46 = vld [vmem:[#allocation4] sm:$0x3f] }
 0x43a   :  { %8415 = vmatpush1.bf16.msra.mxu0 %v12542_v16  ;;  %v1319_v16 = vrot.slane %v12971_v46, %v1318_v31  ;;  %v12656_v31 = vld [vmem:[#allocation2 + $0x1ae0] ss:$24 sps:$4 sm:$0xff]  }
 0x43b   :  { %8456 = vmatpush1.bf16.msra.mxu1 %v12545_v17  ;;  %8416 = vmatprep.subr.bf16.mxu0 %v12550_v61  ;;  %v12608_v17 = vld [vmem:[#allocation2 + $0x1960] ss:$24 sps:$4 sm:$0xff]  }
 0x43c   :  { %8457 = vmatprep.subr.bf16.mxu1 %v12553_v49  ;;  %v12611_v61 = vld [vmem:[#allocation2 + $0x1c60] ss:$24 sps:$4 sm:$0xff]   ;;  %v12616_v49 = vld [vmem:[#allocation2 + $0x1934] ss:$24 sps:$4 sm:$0xff]  }
 0x43e   :  { %8417 = vmatpush1.bf16.msra.mxu0 %v12548_v52  ;;  %v12619_v52 = vld [vmem:[#allocation2 + $0x1c34] ss:$24 sps:$4 sm:$0xff]  }
 0x43f   :  { %8458 = vmatpush1.bf16.msra.mxu1 %v12551_v6  ;;  %8418 = vmatprep.subr.bf16.mxu0 %v12556_v7  ;;  %v1323_v6 = vrot.slane %v12971_v46, %v1322_v44  ;;  %v12667_v44 = vld [vmem:[#allocation2 + $0x1db4] ss:$24 sps:$4 sm:$0xff]   ;;  %v12662_v46 = vld [vmem:[#allocation2 + $0x1ab0] ss:$24 sps:$4 sm:$0xff]  }
 0x440   :  { %8459 = vmatprep.subr.bf16.mxu1 %v12559_v53 }
 0x442   :  { %8419 = vmatpush1.bf16.msra.mxu0 %v12554_v45 }
 0x443   :  { %8460 = vmatpush1.bf16.msra.mxu1 %v12557_v24  ;;  %8420 = vmatprep.subr.bf16.mxu0 %v12562_v25  ;;  %v12614_v24 = vld [vmem:[#allocation2 + $0x1930] ss:$24 sps:$4 sm:$0xff]  }
 0x444   :  { %8461 = vmatprep.subr.bf16.mxu1 %v12565_v55  ;;  %v12617_v25 = vld [vmem:[#allocation2 + $0x1c30] ss:$24 sps:$4 sm:$0xff]  }
 0x446   :  { %8421 = vmatpush2.bf16.msra.mxu0 %v12560_v56 }
 0x447   :  { %8462 = vmatpush2.bf16.msra.mxu1 %v12563_v41  ;;  %8422 = vmatprep.subr.bf16.mxu0 %v12568_v47  ;;  %v12622_v41 = vld [vmem:[#allocation2 + $0x1904] ss:$24 sps:$4 sm:$0xff]  }
 0x448   :  { %8463 = vmatprep.subr.bf16.mxu1 %v12571_v51  ;;  %v12625_v47 = vld [vmem:[#allocation2 + $0x1c04] ss:$24 sps:$4 sm:$0xff]  }
 0x44a   :  { %8423 = vmatpush2.bf16.msra.mxu0 %v12566_v48 }
 0x44b   :  { %8464 = vmatpush2.bf16.msra.mxu1 %v12569_v36  ;;  %8424 = vmatprep.subr.bf16.mxu0 %v12574_v37  ;;  %v12620_v37 = vld [vmem:[#allocation2 + $0x1900] ss:$24 sps:$4 sm:$0xff]  }
 0x44c   :  { %8465 = vmatprep.subr.bf16.mxu1 %v12577_v57  ;;  %v12623_v57 = vld [vmem:[#allocation2 + $0x1c00] ss:$24 sps:$4 sm:$0xff]  }
 0x44e   :  { %8425 = vmatpush2.bf16.msra.mxu0 %v12572_v58 }
 0x44f   :  { %8466 = vmatpush2.bf16.msra.mxu1 %v12575_v26  ;;  %8426 = vmatprep.subr.bf16.mxu0 %v12580_v62  ;;  %v12628_v62 = vld [vmem:[#allocation2 + $0x18d4] ss:$24 sps:$4 sm:$0xff]  }
 0x450   :  { %8467 = vmatprep.subr.bf16.mxu1 %v12583_v35  ;;  %v12631_v35 = vld [vmem:[#allocation2 + $0x1bd4] ss:$24 sps:$4 sm:$0xff]  }
 0x452   :  { %8427 = vmatpush2.bf16.msra.mxu0 %v12578_v40  ;;  %v12626_v40 = vld [vmem:[#allocation2 + $0x18d0] ss:$24 sps:$4 sm:$0xff]  }
 0x453   :  { %8468 = vmatpush2.bf16.msra.mxu1 %v12581_v8  ;;  %8428 = vmatprep.subr.bf16.mxu0 %v12586_v11  ;;  %v12637_v8 = vld [vmem:[#allocation2 + $0x1ba4] ss:$24 sps:$4 sm:$0xff]   ;;  %v12632_v11 = vld [vmem:[#allocation2 + $0x18a0] ss:$24 sps:$4 sm:$0xff]  }
 0x454   :  { %8469 = vmatprep.subr.bf16.mxu1 %v12589_v12  ;;  %v12635_v12 = vld [vmem:[#allocation2 + $0x1ba0] ss:$24 sps:$4 sm:$0xff]  }
 0x456   :  { %8429 = vmatpush2.bf16.msra.mxu0 %v12584_v3  ;;  %v12640_v3 = vld [vmem:[#allocation2 + $0x1874] ss:$24 sps:$4 sm:$0xff]  }
 0x457   :  { %8470 = vmatpush2.bf16.msra.mxu1 %v12587_v18  ;;  %8430 = vmatprep.subr.bf16.mxu0 %v12592_v21  ;;  %v12643_v18 = vld [vmem:[#allocation2 + $0x1b74] ss:$24 sps:$4 sm:$0xff]   ;;  %v12638_v21 = vld [vmem:[#allocation2 + $0x1870] ss:$24 sps:$4 sm:$0xff]  }
 0x458   :  { %8471 = vmatprep.subr.bf16.mxu1 %v12595_v38  ;;  %v12641_v38 = vld [vmem:[#allocation2 + $0x1b70] ss:$24 sps:$4 sm:$0xff]  }
 0x45a   :  { %8431 = vmatpush2.bf16.msra.mxu0 %v12590_v39  ;;  %v12646_v39 = vld [vmem:[#allocation2 + $0x1844] ss:$24 sps:$4 sm:$0xff]  }
 0x45b   :  { %8472 = vmatpush2.bf16.msra.mxu1 %v12593_v28  ;;  %8432 = vmatprep.subr.bf16.mxu0 %v12598_v60  ;;  %v12649_v28 = vld [vmem:[#allocation2 + $0x1b44] ss:$24 sps:$4 sm:$0xff]   ;;  %v12644_v60 = vld [vmem:[#allocation2 + $0x1840] ss:$24 sps:$4 sm:$0xff]  }
 0x45c   :  { %8473 = vmatprep.subr.bf16.mxu1 %v12601_v29  ;;  %v12647_v29 = vld [vmem:[#allocation2 + $0x1b40] ss:$24 sps:$4 sm:$0xff]  }
 0x45e   :  { %8433 = vmatpush2.bf16.msra.mxu0 %v12596_v30  ;;  %v12652_v30 = vld [vmem:[#allocation2 + $0x1814] ss:$24 sps:$4 sm:$0xff]  }
 0x45f   :  { %8474 = vmatpush2.bf16.msra.mxu1 %v12599_v32  ;;  %8434 = vmatprep.subr.bf16.mxu0 %v12604_v34  ;;  %v12655_v32 = vld [vmem:[#allocation2 + $0x1b14] ss:$24 sps:$4 sm:$0xff]   ;;  %v12650_v34 = vld [vmem:[#allocation2 + $0x1810] ss:$24 sps:$4 sm:$0xff]  }
 0x460   :  { %8475 = vmatprep.subr.bf16.mxu1 %v12607_v50  ;;  %v12653_v50 = vld [vmem:[#allocation2 + $0x1b10] ss:$24 sps:$4 sm:$0xff]  }
 0x462   :  { %8435 = vmatpush2.bf16.msra.mxu0 %v12602_v22  ;;  %v12658_v22 = vld [vmem:[#allocation2 + $0x1ae4] ss:$24 sps:$4 sm:$0xff]  }
 0x463   :  { %8476 = vmatpush2.bf16.msra.mxu1 %v12605_v23  ;;  %8486 = vmatprep.subr.bf16.mxu0 %v12610_v42  ;;  %v12661_v23 = vld [vmem:[#allocation2 + $0x1de4] ss:$24 sps:$4 sm:$0xff]   ;;  %v12659_v42 = vld [vmem:[#allocation2 + $0x1de0] ss:$24 sps:$4 sm:$0xff]  }
 0x464   :  { %8527 = vmatprep.subr.bf16.mxu1 %v12613_v43  ;;  %v12664_v43 = vld [vmem:[#allocation2 + $0x1ab4] ss:$24 sps:$4 sm:$0xff]  }
 0x465   :  { %v8192_v7 = vpop.f32.mrf.mxu0  ;;  %8437 = vmatmul.mubr.bf16.vlgmr.msra.gmra.mxu0 %v13336_v0 }
 0x466   :  { %v8233_v53 = vpop.f32.mrf.mxu1  ;;  %8478 = vmatmul.mubr.bf16.vlgmr.msra.gmra.mxu1 %v13340_v1  ;;  %v8193_v45 = vadd.f32 %v8192_v7, %v1319_v16  ;;  %8487 = vmatpush1.bf16.msra.mxu0 %v12608_v17  ;;  %v12665_v16 = vld [vmem:[#allocation2 + $0x1db0] ss:$24 sps:$4 sm:$0xff]   ;;  %v12670_v17 = vld [vmem:[#allocation2 + $0x1a84] ss:$24 sps:$4 sm:$0xff]   ;;  %v12679_v7 = vld [vmem:[#allocation2 + $0x1d54] ss:$24 sps:$4 sm:$0xff]  }
 0x467   :  { %8528 = vmatpush1.bf16.msra.mxu1 %v12611_v61  ;;  %v8194_v55 = vpop.f32.mrf.mxu0  ;;  %8488 = vmatprep.subr.bf16.mxu0 %v12616_v49  ;;  %v12673_v61 = vld [vmem:[#allocation2 + $0x1d84] ss:$24 sps:$4 sm:$0xff]   ;;  %v12668_v49 = vld [vmem:[#allocation2 + $0x1a80] ss:$24 sps:$4 sm:$0xff]  }
 0x468   :  { %v8235_v56 = vpop.f32.mrf.mxu1  ;;  %8529 = vmatprep.subr.bf16.mxu1 %v12619_v52  ;;  %v13520_v51 = vadd.f32 %v8233_v53, %v8193_v45  ;;  %v8195_v48 = vadd.f32 %v8194_v55, %v1323_v6  ;;  %8518 = vmatprep.mubr.bf16.mxu0 %v13358_v9  ;;  %v12629_v9 = vld [vmem:[#allocation2 + $0x1bd0] ss:$24 sps:$4 sm:$0xff]   ;;  %v12671_v52 = vld [vmem:[#allocation2 + $0x1d80] ss:$24 sps:$4 sm:$0xff]   ;;  %v12676_v6 = vld [vmem:[#allocation2 + $0x1a54] ss:$24 sps:$4 sm:$0xff]  }
 0x469   :  { %8559 = vmatprep.mubr.bf16.mxu1 %v13362_v10  ;;  %v8196_v0 = vpop.f32.mrf.mxu0  ;;  %v12634_v10 = vld [vmem:[#allocation2 + $0x18a4] ss:$24 sps:$4 sm:$0xff]   ;;  %v12674_v53 = vld [vmem:[#allocation2 + $0x1a50] ss:$24 sps:$4 sm:$0xff]   ;;  %v12680_v55 = vld [vmem:[#allocation2 + $0x1a20] ss:$24 sps:$4 sm:$0xff]  }
 0x46a   :  { %v8237_v1 = vpop.f32.mrf.mxu1  ;;  %v13524_v36 = vadd.f32 %v8235_v56, %v8195_v48  ;;  %8489 = vmatpush1.bf16.msra.mxu0 %v12614_v24  ;;  %v12677_v45 = vld [vmem:[#allocation2 + $0x1d50] ss:$24 sps:$4 sm:$0xff]   ;;  %v12682_v24 = vld [vmem:[#allocation2 + $0x1a24] ss:$24 sps:$4 sm:$0xff]   ;;  %v12683_v56 = vld [vmem:[#allocation2 + $0x1d20] ss:$24 sps:$4 sm:$0xff]  }
 0x46b   :  { %8530 = vmatpush1.bf16.msra.mxu1 %v12617_v25  ;;  %v8197_v58 = vpop.f32.mrf.mxu0  ;;  %8490 = vmatprep.subr.bf16.mxu0 %v12622_v41  ;;  %v12685_v25 = vld [vmem:[#allocation2 + $0x1d24] ss:$24 sps:$4 sm:$0xff]   ;;  %v12688_v41 = vld [vmem:[#allocation2 + $0x19f4] ss:$24 sps:$4 sm:$0xff]   ;;  %v12686_v48 = vld [vmem:[#allocation2 + $0x19f0] ss:$24 sps:$4 sm:$0xff]  }
 0x46c   :  { %v8238_v26 = vpop.f32.mrf.mxu1  ;;  %8531 = vmatprep.subr.bf16.mxu1 %v12625_v47  ;;  %v12691_v47 = vld [vmem:[#allocation2 + $0x1cf4] ss:$24 sps:$4 sm:$0xff]   ;;  %v12689_v0 = vld [vmem:[#allocation2 + $0x1cf0] ss:$24 sps:$4 sm:$0xff]   ;;  %v12694_v1 = vld [vmem:[#allocation2 + $0x19c4] ss:$24 sps:$4 sm:$0xff]  }
 0x46d   :  { %v12695_v58 = vld [vmem:[#allocation2 + $0x1cc0] ss:$24 sps:$4 sm:$0xff]   ;;  %v12700_v26 = vld [vmem:[#allocation2 + $0x1994] ss:$24 sps:$4 sm:$0xff]  }
 0x46e   :  { %8491 = vmatpush1.bf16.msra.mxu0 %v12620_v37  ;;  %v12697_v37 = vld [vmem:[#allocation2 + $0x1cc4] ss:$24 sps:$4 sm:$0xff]  }
 0x46f   :  { %8532 = vmatpush1.bf16.msra.mxu1 %v12623_v57  ;;  %8492 = vmatprep.subr.bf16.mxu0 %v12628_v62  ;;  %v12692_v57 = vld [vmem:[#allocation2 + $0x19c0] ss:$24 sps:$4 sm:$0xff]   ;;  %v12703_v62 = vld [vmem:[#allocation2 + $0x1c94] ss:$24 sps:$4 sm:$0xff]  }
 0x470   :  { %8533 = vmatprep.subr.bf16.mxu1 %v12631_v35  ;;  %v12698_v35 = vld [vmem:[#allocation2 + $0x1990] ss:$24 sps:$4 sm:$0xff]  }
 0x472   :  { %8493 = vmatpush1.bf16.msra.mxu0 %v12626_v40  ;;  %v12701_v40 = vld [vmem:[#allocation2 + $0x1c90] ss:$24 sps:$4 sm:$0xff]  }
 0x473   :  { %8534 = vmatpush1.bf16.msra.mxu1 %v12629_v9  ;;  %8494 = vmatprep.subr.bf16.mxu0 %v12634_v10  ;;  %v12706_v9 = vld [vmem:[#allocation2 + $0x1f64] ss:$24 sps:$4 sm:$0xff]  }
 0x474   :  { %8535 = vmatprep.subr.bf16.mxu1 %v12637_v8  ;;  %v12709_v10 = vld [vmem:[#allocation2 + $0x2264] ss:$24 sps:$4 sm:$0xff]   ;;  %v12704_v8 = vld [vmem:[#allocation2 + $0x1f60] ss:$24 sps:$4 sm:$0xff]  }
 0x476   :  { %8495 = vmatpush1.bf16.msra.mxu0 %v12632_v11  ;;  %v12707_v11 = vld [vmem:[#allocation2 + $0x2260] ss:$24 sps:$4 sm:$0xff]  }
 0x477   :  { %8536 = vmatpush1.bf16.msra.mxu1 %v12635_v12  ;;  %8496 = vmatprep.subr.bf16.mxu0 %v12640_v3  ;;  %v12712_v12 = vld [vmem:[#allocation2 + $0x1f34] ss:$24 sps:$4 sm:$0xff]  }
 0x478   :  { %8537 = vmatprep.subr.bf16.mxu1 %v12643_v18  ;;  %v12715_v3 = vld [vmem:[#allocation2 + $0x2234] ss:$24 sps:$4 sm:$0xff]  }
 0x47a   :  { %8497 = vmatpush1.bf16.msra.mxu0 %v12638_v21 }
 0x47b   :  { %8538 = vmatpush1.bf16.msra.mxu1 %v12641_v38  ;;  %8498 = vmatprep.subr.bf16.mxu0 %v12646_v39  ;;  %v12710_v39 = vld [vmem:[#allocation2 + $0x1f30] ss:$24 sps:$4 sm:$0xff]  }
 0x47c   :  { %8539 = vmatprep.subr.bf16.mxu1 %v12649_v28  ;;  %v12713_v28 = vld [vmem:[#allocation2 + $0x2230] ss:$24 sps:$4 sm:$0xff]  }
 0x47e   :  { %8499 = vmatpush1.bf16.msra.mxu0 %v12644_v60 }
 0x47f   :  { %8540 = vmatpush1.bf16.msra.mxu1 %v12647_v29  ;;  %8500 = vmatprep.subr.bf16.mxu0 %v12652_v30  ;;  %v12718_v30 = vld [vmem:[#allocation2 + $0x1f04] ss:$24 sps:$4 sm:$0xff]  }
 0x480   :  { %8541 = vmatprep.subr.bf16.mxu1 %v12655_v32  ;;  %v12721_v32 = vld [vmem:[#allocation2 + $0x2204] ss:$24 sps:$4 sm:$0xff]  }
 0x482   :  { %8501 = vmatpush1.bf16.msra.mxu0 %v12650_v34 }
 0x483   :  { %8542 = vmatpush1.bf16.msra.mxu1 %v12653_v50  ;;  %8502 = vmatprep.subr.bf16.mxu0 %v12658_v22  ;;  %v12716_v22 = vld [vmem:[#allocation2 + $0x1f00] ss:$24 sps:$4 sm:$0xff]  }
 0x484   :  { %8543 = vmatprep.subr.bf16.mxu1 %v12661_v23  ;;  %v12719_v23 = vld [vmem:[#allocation2 + $0x2200] ss:$24 sps:$4 sm:$0xff]  }
 0x486   :  { %8503 = vmatpush2.bf16.msra.mxu0 %v12656_v31 }
 0x487   :  { %8544 = vmatpush2.bf16.msra.mxu1 %v12659_v42  ;;  %8504 = vmatprep.subr.bf16.mxu0 %v12664_v43  ;;  %v12724_v43 = vld [vmem:[#allocation2 + $0x1ed4] ss:$24 sps:$4 sm:$0xff]  }
 0x488   :  { %8545 = vmatprep.subr.bf16.mxu1 %v12667_v44  ;;  %v12727_v44 = vld [vmem:[#allocation2 + $0x21d4] ss:$24 sps:$4 sm:$0xff]  }
 0x48a   :  { %8505 = vmatpush2.bf16.msra.mxu0 %v12662_v46  ;;  %v12733_v46 = vld [vmem:[#allocation2 + $0x21a4] ss:$24 sps:$4 sm:$0xff]  }
 0x48b   :  { %8546 = vmatpush2.bf16.msra.mxu1 %v12665_v16  ;;  %8506 = vmatprep.subr.bf16.mxu0 %v12670_v17  ;;  %v12728_v16 = vld [vmem:[#allocation2 + $0x1ea0] ss:$24 sps:$4 sm:$0xff]  }
 0x48c   :  { %8547 = vmatprep.subr.bf16.mxu1 %v12673_v61  ;;  %v12731_v17 = vld [vmem:[#allocation2 + $0x21a0] ss:$24 sps:$4 sm:$0xff]   ;;  %v12736_v61 = vld [vmem:[#allocation2 + $0x1e74] ss:$24 sps:$4 sm:$0xff]  }
 0x48e   :  { %8507 = vmatpush2.bf16.msra.mxu0 %v12668_v49  ;;  %v12739_v49 = vld [vmem:[#allocation2 + $0x2174] ss:$24 sps:$4 sm:$0xff]  }
 0x48f   :  { %8548 = vmatpush2.bf16.msra.mxu1 %v12671_v52  ;;  %8508 = vmatprep.subr.bf16.mxu0 %v12676_v6  ;;  %v12734_v52 = vld [vmem:[#allocation2 + $0x1e70] ss:$24 sps:$4 sm:$0xff]  }
 0x490   :  { %8549 = vmatprep.subr.bf16.mxu1 %v12679_v7  ;;  %v12737_v6 = vld [vmem:[#allocation2 + $0x2170] ss:$24 sps:$4 sm:$0xff]   ;;  %v12742_v7 = vld [vmem:[#allocation2 + $0x1e44] ss:$24 sps:$4 sm:$0xff]  }
 0x492   :  { %8509 = vmatpush2.bf16.msra.mxu0 %v12674_v53  ;;  %v12745_v53 = vld [vmem:[#allocation2 + $0x2144] ss:$24 sps:$4 sm:$0xff]  }
 0x493   :  { %8550 = vmatpush2.bf16.msra.mxu1 %v12677_v45  ;;  %8510 = vmatprep.subr.bf16.mxu0 %v12682_v24  ;;  %v12740_v45 = vld [vmem:[#allocation2 + $0x1e40] ss:$24 sps:$4 sm:$0xff]  }
 0x494   :  { %8551 = vmatprep.subr.bf16.mxu1 %v12685_v25  ;;  %v12743_v24 = vld [vmem:[#allocation2 + $0x2140] ss:$24 sps:$4 sm:$0xff]   ;;  %v12748_v25 = vld [vmem:[#allocation2 + $0x1e14] ss:$24 sps:$4 sm:$0xff]  }
 0x496   :  { %8511 = vmatpush2.bf16.msra.mxu0 %v12680_v55  ;;  %v12751_v55 = vld [vmem:[#allocation2 + $0x2114] ss:$24 sps:$4 sm:$0xff]  }
 0x497   :  { %8552 = vmatpush2.bf16.msra.mxu1 %v12683_v56  ;;  %8512 = vmatprep.subr.bf16.mxu0 %v12688_v41  ;;  %v12746_v56 = vld [vmem:[#allocation2 + $0x1e10] ss:$24 sps:$4 sm:$0xff]  }
 0x498   :  { %8553 = vmatprep.subr.bf16.mxu1 %v12691_v47  ;;  %v12749_v41 = vld [vmem:[#allocation2 + $0x2110] ss:$24 sps:$4 sm:$0xff]   ;;  %v12754_v47 = vld [vmem:[#allocation2 + $0x20e4] ss:$24 sps:$4 sm:$0xff]  }
 0x49a   :  { %8513 = vmatpush2.bf16.msra.mxu0 %v12686_v48  ;;  %v12757_v48 = vld [vmem:[#allocation2 + $0x23e4] ss:$24 sps:$4 sm:$0xff]  }
 0x49b   :  { %8554 = vmatpush2.bf16.msra.mxu1 %v12689_v0  ;;  %8514 = vmatprep.subr.bf16.mxu0 %v12694_v1  ;;  %v12752_v0 = vld [vmem:[#allocation2 + $0x20e0] ss:$24 sps:$4 sm:$0xff]  }
 0x49c   :  { %8555 = vmatprep.subr.bf16.mxu1 %v12697_v37  ;;  %v12755_v1 = vld [vmem:[#allocation2 + $0x23e0] ss:$24 sps:$4 sm:$0xff]   ;;  %v12760_v37 = vld [vmem:[#allocation2 + $0x20b4] ss:$24 sps:$4 sm:$0xff]  }
 0x49e   :  { %8515 = vmatpush2.bf16.msra.mxu0 %v12692_v57  ;;  %v12763_v57 = vld [vmem:[#allocation2 + $0x23b4] ss:$24 sps:$4 sm:$0xff]  }
 0x49f   :  { %8556 = vmatpush2.bf16.msra.mxu1 %v12695_v58  ;;  %8516 = vmatprep.subr.bf16.mxu0 %v12700_v26  ;;  %v12758_v58 = vld [vmem:[#allocation2 + $0x20b0] ss:$24 sps:$4 sm:$0xff]  }
 0x4a0   :  { %8557 = vmatprep.subr.bf16.mxu1 %v12703_v62  ;;  %v12761_v26 = vld [vmem:[#allocation2 + $0x23b0] ss:$24 sps:$4 sm:$0xff]   ;;  %v12766_v62 = vld [vmem:[#allocation2 + $0x2084] ss:$24 sps:$4 sm:$0xff]  }
 0x4a2   :  { %8517 = vmatpush2.bf16.msra.mxu0 %v12698_v35  ;;  %v12769_v35 = vld [vmem:[#allocation2 + $0x2384] ss:$24 sps:$4 sm:$0xff]  }
 0x4a3   :  { %8558 = vmatpush2.bf16.msra.mxu1 %v12701_v40  ;;  %8568 = vmatprep.subr.bf16.mxu0 %v12706_v9  ;;  %v12764_v40 = vld [vmem:[#allocation2 + $0x2080] ss:$24 sps:$4 sm:$0xff]  }
 0x4a4   :  { %8609 = vmatprep.subr.bf16.mxu1 %v12709_v10  ;;  %v12767_v9 = vld [vmem:[#allocation2 + $0x2380] ss:$24 sps:$4 sm:$0xff]   ;;  %v12772_v10 = vld [vmem:[#allocation2 + $0x2054] ss:$24 sps:$4 sm:$0xff]  }
 0x4a5   :  { %v8274_v18 = vpop.f32.mrf.mxu0  ;;  %8519 = vmatmul.mubr.bf16.vlgmr.msra.gmra.mxu0 %v13384_v4 }
 0x4a6   :  { %v8315_v21 = vpop.f32.mrf.mxu1  ;;  %8560 = vmatmul.mubr.bf16.vlgmr.msra.gmra.mxu1 %v13388_v5  ;;  %v8275_v38 = vadd.f32 %v8274_v18, %v13520_v51  ;;  %8569 = vmatpush1.bf16.msra.mxu0 %v12704_v8  ;;  %v12775_v8 = vld [vmem:[#allocation2 + $0x2354] ss:$24 sps:$4 sm:$0xff]   ;;  %v12781_v18 = vld [vmem:[#allocation2 + $0x2324] ss:$24 sps:$4 sm:$0xff]  }
 0x4a7   :  { %8610 = vmatpush1.bf16.msra.mxu1 %v12707_v11  ;;  %v8276_v60 = vpop.f32.mrf.mxu0  ;;  %8570 = vmatprep.subr.bf16.mxu0 %v12712_v12  ;;  %v12770_v11 = vld [vmem:[#allocation2 + $0x2050] ss:$24 sps:$4 sm:$0xff]  }
 0x4a8   :  { %v8317_v29 = vpop.f32.mrf.mxu1  ;;  %8611 = vmatprep.subr.bf16.mxu1 %v12715_v3  ;;  %v13529_v34 = vadd.f32 %v8315_v21, %v8275_v38  ;;  %v8277_v50 = vadd.f32 %v8276_v60, %v13524_v36  ;;  %8600 = vmatprep.mubr.bf16.mxu0 %v13392_v13  ;;  %v12722_v36 = vld [vmem:[#allocation2 + $0x1ed0] ss:$24 sps:$4 sm:$0xff]   ;;  %v12778_v3 = vld [vmem:[#allocation2 + $0x2024] ss:$24 sps:$4 sm:$0xff]   ;;  %v12776_v21 = vld [vmem:[#allocation2 + $0x2020] ss:$24 sps:$4 sm:$0xff]  }
 0x4a9   :  { %8641 = vmatprep.mubr.bf16.mxu1 %v13396_v2  ;;  %v8278_v4 = vpop.f32.mrf.mxu0  ;;  %v12725_v13 = vld [vmem:[#allocation2 + $0x21d0] ss:$24 sps:$4 sm:$0xff]   ;;  %v12730_v2 = vld [vmem:[#allocation2 + $0x1ea4] ss:$24 sps:$4 sm:$0xff]   ;;  %v12779_v38 = vld [vmem:[#allocation2 + $0x2320] ss:$24 sps:$4 sm:$0xff]  }
 0x4aa   :  { %v8319_v5 = vpop.f32.mrf.mxu1  ;;  %v13534_v51 = vadd.f32 %v8317_v29, %v8277_v50  ;;  %8571 = vmatpush1.bf16.msra.mxu0 %v12710_v39  ;;  %v12773_v12 = vld [vmem:[#allocation2 + $0x2350] ss:$24 sps:$4 sm:$0xff]   ;;  %v12784_v39 = vld [vmem:[#allocation2 + $0x1ff4] ss:$24 sps:$4 sm:$0xff]   ;;  %v12788_v50 = vld [vmem:[#allocation2 + $0x1fc0] ss:$24 sps:$4 sm:$0xff]  }
 0x4ab   :  { %8612 = vmatpush1.bf16.msra.mxu1 %v12713_v28  ;;  %v8279_v31 = vpop.f32.mrf.mxu0  ;;  %8572 = vmatprep.subr.bf16.mxu0 %v12718_v30  ;;  %v12787_v28 = vld [vmem:[#allocation2 + $0x22f4] ss:$24 sps:$4 sm:$0xff]   ;;  %v12782_v60 = vld [vmem:[#allocation2 + $0x1ff0] ss:$24 sps:$4 sm:$0xff]   ;;  %v12790_v30 = vld [vmem:[#allocation2 + $0x1fc4] ss:$24 sps:$4 sm:$0xff]  }
 0x4ac   :  { %v8320_v42 = vpop.f32.mrf.mxu1  ;;  %8613 = vmatprep.subr.bf16.mxu1 %v12721_v32  ;;  %v12785_v29 = vld [vmem:[#allocation2 + $0x22f0] ss:$24 sps:$4 sm:$0xff]   ;;  %v12793_v32 = vld [vmem:[#allocation2 + $0x22c4] ss:$24 sps:$4 sm:$0xff]   ;;  %v12791_v4 = vld [vmem:[#allocation2 + $0x22c0] ss:$24 sps:$4 sm:$0xff]  }
 0x4ad   :  { %v12796_v5 = vld [vmem:[#allocation2 + $0x1f94] ss:$24 sps:$4 sm:$0xff]   ;;  %v12797_v31 = vld [vmem:[#allocation2 + $0x2290] ss:$24 sps:$4 sm:$0xff]   ;;  %v12802_v42 = vld [vmem:[#allocation6 + $0x74] ss:$8 sps:$4 sm:$0xff]  }
 0x4ae   :  { %8573 = vmatpush1.bf16.msra.mxu0 %v12716_v22  ;;  %v12799_v22 = vld [vmem:[#allocation2 + $0x2294] ss:$24 sps:$4 sm:$0xff]  }
 0x4af   :  { %8614 = vmatpush1.bf16.msra.mxu1 %v12719_v23  ;;  %8574 = vmatprep.subr.bf16.mxu0 %v12724_v43  ;;  %v12794_v23 = vld [vmem:[#allocation2 + $0x1f90] ss:$24 sps:$4 sm:$0xff]   ;;  %v12805_v43 = vld [vmem:[#allocation6 + $0x174] ss:$8 sps:$4 sm:$0xff]  }
 0x4b0   :  { %8615 = vmatprep.subr.bf16.mxu1 %v12727_v44  ;;  %v8651_v44 = vmax.f32 %v13454_v33, 0.0 }
 0x4b2   :  { %8575 = vmatpush1.bf16.msra.mxu0 %v12722_v36  ;;  %v8653_v36 = vmax.f32 %v13514_v20, 0.0  ;;  %v12806_v20 = vld [vmem:[#allocation6 + $0x60] ss:$8 sps:$4 sm:$0xff]  }
 0x4b3   :  { %8616 = vmatpush1.bf16.msra.mxu1 %v12725_v13  ;;  %8576 = vmatprep.subr.bf16.mxu0 %v12730_v2  ;;  %v12800_v13 = vld [vmem:[#allocation6 + $0x70] ss:$8 sps:$4 sm:$0xff]  }
 0x4b4   :  { %8617 = vmatprep.subr.bf16.mxu1 %v12733_v46  ;;  %v12803_v2 = vld [vmem:[#allocation6 + $0x170] ss:$8 sps:$4 sm:$0xff]   ;;  %v8657_v46 = vpack.c.bf16 %v8651_v44, %v8651_v44  ;;  %v12871_v44 = vld [vmem:[#allocation6 + $0x1c4] ss:$8 sps:$4 sm:$0xff]  }
 0x4b6   :  { %8577 = vmatpush1.bf16.msra.mxu0 %v12728_v16  ;;  %v12808_v16 = vld [vmem:[#allocation6 + $0x64] ss:$8 sps:$4 sm:$0xff]  }
 0x4b7   :  { %8618 = vmatpush1.bf16.msra.mxu1 %v12731_v17  ;;  %8578 = vmatprep.subr.bf16.mxu0 %v12736_v61  ;;  %v12811_v17 = vld [vmem:[#allocation6 + $0x164] ss:$8 sps:$4 sm:$0xff]   ;;  %v8659_v61 = vpack.c.bf16 %v8653_v36, %v8653_v36  ;;  %v12866_v36 = vld [vmem:[#allocation6 + $0xc0] ss:$8 sps:$4 sm:$0xff]  }
 0x4b8   :  { %8619 = vmatprep.subr.bf16.mxu1 %v12739_v49 }
 0x4ba   :  { %8579 = vmatpush1.bf16.msra.mxu0 %v12734_v52 }
 0x4bb   :  { %8620 = vmatpush1.bf16.msra.mxu1 %v12737_v6  ;;  %8580 = vmatprep.subr.bf16.mxu0 %v12742_v7 }
 0x4bc   :  { %8621 = vmatprep.subr.bf16.mxu1 %v12745_v53  ;;  %v12809_v53 = vld [vmem:[#allocation6 + $0x160] ss:$8 sps:$4 sm:$0xff]  }
 0x4be   :  { %8581 = vmatpush1.bf16.msra.mxu0 %v12740_v45  ;;  %v12814_v45 = vld [vmem:[#allocation6 + $0x54] ss:$8 sps:$4 sm:$0xff]  }
 0x4bf   :  { %8622 = vmatpush1.bf16.msra.mxu1 %v12743_v24  ;;  %8582 = vmatprep.subr.bf16.mxu0 %v12748_v25 }
 0x4c0   :  { %8623 = vmatprep.subr.bf16.mxu1 %v12751_v55 }
 0x4c2   :  { %8583 = vmatpush1.bf16.msra.mxu0 %v12746_v56 }
 0x4c3   :  { %8624 = vmatpush1.bf16.msra.mxu1 %v12749_v41  ;;  %8584 = vmatprep.subr.bf16.mxu0 %v12754_v47 }
 0x4c4   :  { %8625 = vmatprep.subr.bf16.mxu1 %v12757_v48  ;;  %v12815_v48 = vld [vmem:[#allocation6 + $0x150] ss:$8 sps:$4 sm:$0xff]  }
 0x4c6   :  { %8585 = vmatpush2.bf16.msra.mxu0 %v12752_v0  ;;  %v12820_v0 = vld [vmem:[#allocation6 + $0x44] ss:$8 sps:$4 sm:$0xff]  }
 0x4c7   :  { %8626 = vmatpush2.bf16.msra.mxu1 %v12755_v1  ;;  %8586 = vmatprep.subr.bf16.mxu0 %v12760_v37  ;;  %v12823_v1 = vld [vmem:[#allocation6 + $0x144] ss:$8 sps:$4 sm:$0xff]   ;;  %v12818_v37 = vld [vmem:[#allocation6 + $0x40] ss:$8 sps:$4 sm:$0xff]  }
 0x4c8   :  { %8627 = vmatprep.subr.bf16.mxu1 %v12763_v57  ;;  %v12826_v57 = vld [vmem:[#allocation6 + $0x34] ss:$8 sps:$4 sm:$0xff]  }
 0x4ca   :  { %8587 = vmatpush2.bf16.msra.mxu0 %v12758_v58  ;;  %v12829_v58 = vld [vmem:[#allocation6 + $0x134] ss:$8 sps:$4 sm:$0xff]  }
 0x4cb   :  { %8628 = vmatpush2.bf16.msra.mxu1 %v12761_v26  ;;  %8588 = vmatprep.subr.bf16.mxu0 %v12766_v62  ;;  %v12824_v26 = vld [vmem:[#allocation6 + $0x30] ss:$8 sps:$4 sm:$0xff]  }
 0x4cc   :  { %8629 = vmatprep.subr.bf16.mxu1 %v12769_v35  ;;  %v12827_v62 = vld [vmem:[#allocation6 + $0x130] ss:$8 sps:$4 sm:$0xff]   ;;  %v12832_v35 = vld [vmem:[#allocation6 + $0x24] ss:$8 sps:$4 sm:$0xff]  }
 0x4ce   :  { %8589 = vmatpush2.bf16.msra.mxu0 %v12764_v40  ;;  %v12835_v40 = vld [vmem:[#allocation6 + $0x124] ss:$8 sps:$4 sm:$0xff]  }
 0x4cf   :  { %8630 = vmatpush2.bf16.msra.mxu1 %v12767_v9  ;;  %8590 = vmatprep.subr.bf16.mxu0 %v12772_v10  ;;  %v12830_v9 = vld [vmem:[#allocation6 + $0x20] ss:$8 sps:$4 sm:$0xff]  }
 0x4d0   :  { %8631 = vmatprep.subr.bf16.mxu1 %v12775_v8  ;;  %v12833_v10 = vld [vmem:[#allocation6 + $0x120] ss:$8 sps:$4 sm:$0xff]   ;;  %v12838_v8 = vld [vmem:[#allocation6 + $0x14] ss:$8 sps:$4 sm:$0xff]  }
 0x4d2   :  { %8591 = vmatpush2.bf16.msra.mxu0 %v12770_v11  ;;  %v12841_v11 = vld [vmem:[#allocation6 + $0x114] ss:$8 sps:$4 sm:$0xff]  }
 0x4d3   :  { %8632 = vmatpush2.bf16.msra.mxu1 %v12773_v12  ;;  %8592 = vmatprep.subr.bf16.mxu0 %v12778_v3  ;;  %v12836_v12 = vld [vmem:[#allocation6 + $0x10] ss:$8 sps:$4 sm:$0xff]  }
 0x4d4   :  { %8633 = vmatprep.subr.bf16.mxu1 %v12781_v18  ;;  %v12839_v3 = vld [vmem:[#allocation6 + $0x110] ss:$8 sps:$4 sm:$0xff]   ;;  %v12844_v18 = vld [vmem:[#allocation6 + $0x4] ss:$8 sps:$4 sm:$0xff]  }
 0x4d6   :  { %8593 = vmatpush2.bf16.msra.mxu0 %v12776_v21  ;;  %v12847_v21 = vld [vmem:[#allocation6 + $0x104] ss:$8 sps:$4 sm:$0xff]  }
 0x4d7   :  { %8634 = vmatpush2.bf16.msra.mxu1 %v12779_v38  ;;  %8594 = vmatprep.subr.bf16.mxu0 %v12784_v39  ;;  %v12842_v38 = vld [vmem:[#allocation6] ss:$8 sps:$4 sm:$0xff]  }
 0x4d8   :  { %8635 = vmatprep.subr.bf16.mxu1 %v12787_v28  ;;  %v12845_v39 = vld [vmem:[#allocation6 + $0x100] ss:$8 sps:$4 sm:$0xff]   ;;  %v12850_v28 = vld [vmem:[#allocation6 + $0xf4] ss:$8 sps:$4 sm:$0xff]  }
 0x4da   :  { %8595 = vmatpush2.bf16.msra.mxu0 %v12782_v60  ;;  %v12853_v60 = vld [vmem:[#allocation6 + $0x1f4] ss:$8 sps:$4 sm:$0xff]  }
 0x4db   :  { %8636 = vmatpush2.bf16.msra.mxu1 %v12785_v29  ;;  %8596 = vmatprep.subr.bf16.mxu0 %v12790_v30  ;;  %v12848_v29 = vld [vmem:[#allocation6 + $0xf0] ss:$8 sps:$4 sm:$0xff]  }
 0x4dc   :  { %8637 = vmatprep.subr.bf16.mxu1 %v12793_v32  ;;  %v12851_v30 = vld [vmem:[#allocation6 + $0x1f0] ss:$8 sps:$4 sm:$0xff]   ;;  %v12856_v32 = vld [vmem:[#allocation6 + $0xe4] ss:$8 sps:$4 sm:$0xff]  }
 0x4de   :  { %8597 = vmatpush2.bf16.msra.mxu0 %v12788_v50  ;;  %v12859_v50 = vld [vmem:[#allocation6 + $0x1e4] ss:$8 sps:$4 sm:$0xff]  }
 0x4df   :  { %8638 = vmatpush2.bf16.msra.mxu1 %v12791_v4  ;;  %8598 = vmatprep.subr.bf16.mxu0 %v12796_v5  ;;  %v12854_v4 = vld [vmem:[#allocation6 + $0xe0] ss:$8 sps:$4 sm:$0xff]  }
 0x4e0   :  { %8639 = vmatprep.subr.bf16.mxu1 %v12799_v22  ;;  %v12857_v5 = vld [vmem:[#allocation6 + $0x1e0] ss:$8 sps:$4 sm:$0xff]   ;;  %v12862_v22 = vld [vmem:[#allocation6 + $0xd4] ss:$8 sps:$4 sm:$0xff]  }
 0x4e2   :  { %8599 = vmatpush2.bf16.msra.mxu0 %v12794_v23  ;;  %v12865_v23 = vld [vmem:[#allocation6 + $0x1d4] ss:$8 sps:$4 sm:$0xff]  }
 0x4e3   :  { %8640 = vmatpush2.bf16.msra.mxu1 %v12797_v31  ;;  %9250 = vmatprep.subr.bf16.mxu0 %v12802_v42  ;;  %v12860_v31 = vld [vmem:[#allocation6 + $0xd0] ss:$8 sps:$4 sm:$0xff]  }
 0x4e4   :  { %9291 = vmatprep.subr.bf16.mxu1 %v12805_v43  ;;  %v12863_v42 = vld [vmem:[#allocation6 + $0x1d0] ss:$8 sps:$4 sm:$0xff]   ;;  %v12868_v43 = vld [vmem:[#allocation6 + $0xc4] ss:$8 sps:$4 sm:$0xff]  }
 0x4e5   :  { %v8356_v49 = vpop.f32.mrf.mxu0  ;;  %8601 = vmatmul.mubr.bf16.vlgmr.msra.gmra.mxu0 %v13410_v14  ;;  %v12817_v14 = vld [vmem:[#allocation6 + $0x154] ss:$8 sps:$4 sm:$0xff]  }
 0x4e6   :  { %v8397_v52 = vpop.f32.mrf.mxu1  ;;  %8642 = vmatmul.mubr.bf16.vlgmr.msra.gmra.mxu1 %v13414_v15  ;;  %v8357_v33 = vadd.f32 %v8356_v49, %v13529_v34  ;;  %9251 = vmatpush1.bf16.msra.mxu0 %v12800_v13  ;;  %v12812_v34 = vld [vmem:[#allocation6 + $0x50] ss:$8 sps:$4 sm:$0xff]   ;;  %v12869_v13 = vld [vmem:[#allocation6 + $0x1c0] ss:$8 sps:$4 sm:$0xff]   ;;  %v12883_v49 = vld [vmem:[#allocation6 + $0x1a4] ss:$8 sps:$4 sm:$0xff]  }
 0x4e7   :  { %9282 = vmatprep.mubr.bf16.mxu0 %v8657_v46  ;;  %9292 = vmatpush1.bf16.msra.mxu1 %v12803_v2  ;;  %v8358_v6 = vpop.f32.mrf.mxu0  ;;  %v12874_v2 = vld [vmem:[#allocation6 + $0xb4] ss:$8 sps:$4 sm:$0xff]  }
 0x4e8   :  { %9323 = vmatprep.mubr.bf16.mxu1 %v8659_v61  ;;  %v8399_v7 = vpop.f32.mrf.mxu1  ;;  %v13541_v24 = vadd.f32 %v8397_v52, %v8357_v33  ;;  %v8359_v25 = vadd.f32 %v8358_v6, %v13534_v51  ;;  %9252 = vmatprep.subr.bf16.mxu0 %v12808_v16  ;;  %v12821_v51 = vld [vmem:[#allocation6 + $0x140] ss:$8 sps:$4 sm:$0xff]   ;;  %v12877_v46 = vld [vmem:[#allocation6 + $0x1b4] ss:$8 sps:$4 sm:$0xff]   ;;  %v12872_v16 = vld [vmem:[#allocation6 + $0xb0] ss:$8 sps:$4 sm:$0xff]  }
 0x4e9   :  { %9293 = vmatprep.subr.bf16.mxu1 %v12811_v17  ;;  %v8360_v55 = vpop.f32.mrf.mxu0  ;;  %v12875_v17 = vld [vmem:[#allocation6 + $0x1b0] ss:$8 sps:$4 sm:$0xff]   ;;  %v12880_v61 = vld [vmem:[#allocation6 + $0xa4] ss:$8 sps:$4 sm:$0xff]   ;;  %v12878_v52 = vld [vmem:[#allocation6 + $0xa0] ss:$8 sps:$4 sm:$0xff]  }
 0x4ea   :  { %v8401_v15 = vpop.f32.mrf.mxu1  ;;  %v13544_v56 = vadd.f32 %v8399_v7, %v8359_v25  ;;  %9253 = vmatpush1.bf16.msra.mxu0 %v12806_v20  ;;  %v12881_v33 = vld [vmem:[#allocation6 + $0x1a0] ss:$8 sps:$4 sm:$0xff]   ;;  %v12886_v20 = vld [vmem:[#allocation6 + $0x94] ss:$8 sps:$4 sm:$0xff]   ;;  %v12884_v7 = vld [vmem:[#allocation6 + $0x90] ss:$8 sps:$4 sm:$0xff]  }
 0x4eb   :  { %9294 = vmatpush1.bf16.msra.mxu1 %v12809_v53  ;;  %v8361_v41 = vpop.f32.mrf.mxu0  ;;  %9254 = vmatprep.subr.bf16.mxu0 %v12814_v45  ;;  %v12889_v6 = vld [vmem:[#allocation6 + $0x194] ss:$8 sps:$4 sm:$0xff]   ;;  %v12887_v53 = vld [vmem:[#allocation6 + $0x190] ss:$8 sps:$4 sm:$0xff]   ;;  %v12892_v45 = vld [vmem:[#allocation6 + $0x84] ss:$8 sps:$4 sm:$0xff]  }
 0x4ec   :  { %v8402_v47 = vpop.f32.mrf.mxu1  ;;  %9295 = vmatprep.subr.bf16.mxu1 %v12817_v14  ;;  %v12895_v25 = vld [vmem:[#allocation6 + $0x184] ss:$8 sps:$4 sm:$0xff]   ;;  %v12890_v14 = vld [vmem:[#allocation6 + $0x80] ss:$8 sps:$4 sm:$0xff]   ;;  %v8650_v55 = vmax.f32 %v13449_v27, 0.0  ;;  %v8652_v41 = vmax.f32 %v13509_v19, 0.0 }
 0x4ed   :  { %v12893_v15 = vld [vmem:[#allocation6 + $0x180] ss:$8 sps:$4 sm:$0xff]   ;;  %v12896_v47 = vld [vmem:[#allocation6 + $0x270] ss:$8 sps:$4 sm:$0xff]   ;;  %v12904_v19 = vld [vmem:[#allocation6 + $0x254] ss:$8 sps:$4 sm:$0xff]  }
 0x4ee   :  { %9255 = vmatpush1.bf16.msra.mxu0 %v12812_v34  ;;  %v12898_v34 = vld [vmem:[#allocation6 + $0x274] ss:$8 sps:$4 sm:$0xff]   ;;  %v12899_v27 = vld [vmem:[#allocation6 + $0x260] ss:$8 sps:$4 sm:$0xff]  }
 0x4ef   :  { %9296 = vmatpush1.bf16.msra.mxu1 %v12815_v48  ;;  %9256 = vmatprep.subr.bf16.mxu0 %v12820_v0  ;;  %v8656_v48 = vpack.c.bf16 %v8650_v55, %v8650_v55  ;;  %v12901_v0 = vld [vmem:[#allocation6 + $0x264] ss:$8 sps:$4 sm:$0xff]   ;;  %v12946_v55 = vld [vmem:[#allocation9 + $0x70] sm:$0xff]  }
 0x4f0   :  { %9297 = vmatprep.subr.bf16.mxu1 %v12823_v1  ;;  %v8658_v1 = vpack.c.bf16 %v8652_v41, %v8652_v41  ;;  %v12949_v41 = vld [vmem:[#allocation9 + $0x28] sm:$0xff]  }
 0x4f2   :  { %9257 = vmatpush1.bf16.msra.mxu0 %v12818_v37 }
 0x4f3   :  { %9298 = vmatpush1.bf16.msra.mxu1 %v12821_v51  ;;  %9258 = vmatprep.subr.bf16.mxu0 %v12826_v57 }
 0x4f4   :  { %9299 = vmatprep.subr.bf16.mxu1 %v12829_v58 }
 0x4f6   :  { %9259 = vmatpush1.bf16.msra.mxu0 %v12824_v26 }
 0x4f7   :  { %9300 = vmatpush1.bf16.msra.mxu1 %v12827_v62  ;;  %9260 = vmatprep.subr.bf16.mxu0 %v12832_v35 }
 0x4f8   :  { %9301 = vmatprep.subr.bf16.mxu1 %v12835_v40 }
 0x4fa   :  { %9261 = vmatpush1.bf16.msra.mxu0 %v12830_v9 }
 0x4fb   :  { %9302 = vmatpush1.bf16.msra.mxu1 %v12833_v10  ;;  %9262 = vmatprep.subr.bf16.mxu0 %v12838_v8  ;;  %v12902_v8 = vld [vmem:[#allocation6 + $0x250] ss:$8 sps:$4 sm:$0xff]  }
 0x4fc   :  { %9303 = vmatprep.subr.bf16.mxu1 %v12841_v11 }
 0x4fe   :  { %9263 = vmatpush1.bf16.msra.mxu0 %v12836_v12 }
 0x4ff   :  { %9304 = vmatpush1.bf16.msra.mxu1 %v12839_v3  ;;  %9264 = vmatprep.subr.bf16.mxu0 %v12844_v18  ;;  %v12905_v3 = vld [vmem:[#allocation6 + $0x240] ss:$8 sps:$4 sm:$0xff]   ;;  %v12910_v18 = vld [vmem:[#allocation6 + $0x234] ss:$8 sps:$4 sm:$0xff]  }
 0x500   :  { %9305 = vmatprep.subr.bf16.mxu1 %v12847_v21  ;;  %v12908_v21 = vld [vmem:[#allocation6 + $0x230] ss:$8 sps:$4 sm:$0xff]  }
 0x502   :  { %9265 = vmatpush1.bf16.msra.mxu0 %v12842_v38  ;;  %v12913_v38 = vld [vmem:[#allocation6 + $0x224] ss:$8 sps:$4 sm:$0xff]  }
 0x503   :  { %9306 = vmatpush1.bf16.msra.mxu1 %v12845_v39  ;;  %9266 = vmatprep.subr.bf16.mxu0 %v12850_v28  ;;  %v12916_v39 = vld [vmem:[#allocation6 + $0x214] ss:$8 sps:$4 sm:$0xff]   ;;  %v12914_v28 = vld [vmem:[#allocation6 + $0x210] ss:$8 sps:$4 sm:$0xff]  }
 0x504   :  { %9307 = vmatprep.subr.bf16.mxu1 %v12853_v60  ;;  %v12919_v60 = vld [vmem:[#allocation6 + $0x204] ss:$8 sps:$4 sm:$0xff]  }
 0x506   :  { %9267 = vmatpush2.bf16.msra.mxu0 %v12848_v29  ;;  %v12917_v29 = vld [vmem:[#allocation6 + $0x200] ss:$8 sps:$4 sm:$0xff]  }
 0x507   :  { %9308 = vmatpush2.bf16.msra.mxu1 %v12851_v30  ;;  %9268 = vmatprep.subr.bf16.mxu0 %v12856_v32  ;;  %v12922_v30 = vld [vmem:[#allocation6 + $0x2f4] ss:$8 sps:$4 sm:$0xff]   ;;  %v12920_v32 = vld [vmem:[#allocation6 + $0x2f0] ss:$8 sps:$4 sm:$0xff]  }
 0x508   :  { %9309 = vmatprep.subr.bf16.mxu1 %v12859_v50  ;;  %v12925_v50 = vld [vmem:[#allocation6 + $0x2e4] ss:$8 sps:$4 sm:$0xff]  }
 0x50a   :  { %9269 = vmatpush2.bf16.msra.mxu0 %v12854_v4  ;;  %v12923_v4 = vld [vmem:[#allocation6 + $0x2e0] ss:$8 sps:$4 sm:$0xff]  }
 0x50b   :  { %9310 = vmatpush2.bf16.msra.mxu1 %v12857_v5  ;;  %9270 = vmatprep.subr.bf16.mxu0 %v12862_v22  ;;  %v12928_v5 = vld [vmem:[#allocation6 + $0x2d4] ss:$8 sps:$4 sm:$0xff]   ;;  %v12926_v22 = vld [vmem:[#allocation6 + $0x2d0] ss:$8 sps:$4 sm:$0xff]  }
 0x50c   :  { %9311 = vmatprep.subr.bf16.mxu1 %v12865_v23  ;;  %v12931_v23 = vld [vmem:[#allocation6 + $0x2c4] ss:$8 sps:$4 sm:$0xff]  }
 0x50e   :  { %9271 = vmatpush2.bf16.msra.mxu0 %v12860_v31  ;;  %v12929_v31 = vld [vmem:[#allocation6 + $0x2c0] ss:$8 sps:$4 sm:$0xff]  }
 0x50f   :  { %9312 = vmatpush2.bf16.msra.mxu1 %v12863_v42  ;;  %9272 = vmatprep.subr.bf16.mxu0 %v12868_v43  ;;  %v12934_v42 = vld [vmem:[#allocation6 + $0x2b4] ss:$8 sps:$4 sm:$0xff]   ;;  %v12932_v43 = vld [vmem:[#allocation6 + $0x2b0] ss:$8 sps:$4 sm:$0xff]  }
 0x510   :  { %9313 = vmatprep.subr.bf16.mxu1 %v12871_v44  ;;  %v12937_v44 = vld [vmem:[#allocation6 + $0x2a4] ss:$8 sps:$4 sm:$0xff]  }
 0x512   :  { %9273 = vmatpush2.bf16.msra.mxu0 %v12866_v36  ;;  %v12935_v36 = vld [vmem:[#allocation6 + $0x2a0] ss:$8 sps:$4 sm:$0xff]  }
 0x513   :  { %9314 = vmatpush2.bf16.msra.mxu1 %v12869_v13  ;;  %9274 = vmatprep.subr.bf16.mxu0 %v12874_v2  ;;  %v12940_v13 = vld [vmem:[#allocation6 + $0x294] ss:$8 sps:$4 sm:$0xff]   ;;  %v12938_v2 = vld [vmem:[#allocation6 + $0x290] ss:$8 sps:$4 sm:$0xff]  }
 0x514   :  { %9315 = vmatprep.subr.bf16.mxu1 %v12877_v46  ;;  %v12943_v46 = vld [vmem:[#allocation6 + $0x284] ss:$8 sps:$4 sm:$0xff]  }
 0x516   :  { %9275 = vmatpush2.bf16.msra.mxu0 %v12872_v16  ;;  %v12941_v16 = vld [vmem:[#allocation6 + $0x280] ss:$8 sps:$4 sm:$0xff]  }
 0x517   :  { %9316 = vmatpush2.bf16.msra.mxu1 %v12875_v17  ;;  %9276 = vmatprep.subr.bf16.mxu0 %v12880_v61 }
 0x518   :  { %9317 = vmatprep.subr.bf16.mxu1 %v12883_v49 }
 0x51a   :  { %9277 = vmatpush2.bf16.msra.mxu0 %v12878_v52 }
 0x51b   :  { %9318 = vmatpush2.bf16.msra.mxu1 %v12881_v33  ;;  %9278 = vmatprep.subr.bf16.mxu0 %v12886_v20 }
 0x51c   :  { %9319 = vmatprep.subr.bf16.mxu1 %v12889_v6 }
 0x51e   :  { %9279 = vmatpush2.bf16.msra.mxu0 %v12884_v7 }
 0x51f   :  { %9320 = vmatpush2.bf16.msra.mxu1 %v12887_v53  ;;  %9280 = vmatprep.subr.bf16.mxu0 %v12892_v45 }
 0x520   :  { %9321 = vmatprep.subr.bf16.mxu1 %v12895_v25  ;;  %v12944_v25 = vld [vmem:[#allocation9 + $0x78] sm:$0xff]  }
 0x522   :  { %9281 = vmatpush2.bf16.msra.mxu0 %v12890_v14  ;;  %v12945_v14 = vld [vmem:[#allocation9 + $0x38] sm:$0xff]  }
 0x523   :  { %9322 = vmatpush2.bf16.msra.mxu1 %v12893_v15  ;;  %9332 = vmatprep.subr.bf16.mxu0 %v12898_v34  ;;  %v12947_v15 = vld [vmem:[#allocation9 + $0x30] sm:$0xff]   ;;  %v12948_v34 = vld [vmem:[#allocation9 + $0x68] sm:$0xff]  }
 0x524   :  { %10981 = vmatprep.subr.bf16.mxu1 %v12944_v25  ;;  %v12964_v25 = vld [vmem:[#allocation12 + $0x18] sm:$0xff]  }
 0x525   :  { %v8438_v37 = vpop.f32.mrf.mxu0  ;;  %9283 = vmatmul.mubr.bf16.vlgmr.msra.gmra.mxu0 %v8656_v48  ;;  %v12951_v48 = vld [vmem:[#allocation9 + $0x20] sm:$0xff]  }
 0x526   :  { %v8479_v51 = vpop.f32.mrf.mxu1  ;;  %v8439_v57 = vadd.f32 %v8438_v37, %v13541_v24  ;;  %9324 = vmatmul.mubr.bf16.vlgmr.msra.gmra.mxu1 %v8658_v1  ;;  %9333 = vmatpush1.bf16.msra.mxu0 %v12896_v47  ;;  %v12907_v24 = vld [vmem:[#allocation6 + $0x244] ss:$8 sps:$4 sm:$0xff]   ;;  %v12953_v1 = vld [vmem:[#allocation9 + $0x18] sm:$0xff]   ;;  %v12954_v37 = vld [vmem:[#allocation9 + $0x50] sm:$0xff]  }
 0x527   :  { %v8440_v58 = vpop.f32.mrf.mxu0  ;;  %9334 = vmatprep.subr.bf16.mxu0 %v12901_v0  ;;  %10982 = vmatpush3.bf16.msra.mxu1 %v12945_v14  ;;  %v12950_v47 = vld [vmem:[#allocation9 + $0x60] sm:$0xff]   ;;  %v12952_v0 = vld [vmem:[#allocation9 + $0x58] sm:$0xff]  }
 0x528   :  { %v8481_v26 = vpop.f32.mrf.mxu1  ;;  %v13549_v62 = vadd.f32 %v8479_v51, %v8439_v57  ;;  %v8441_v35 = vadd.f32 %v8440_v58, %v13544_v56  ;;  %v12911_v56 = vld [vmem:[#allocation6 + $0x220] ss:$8 sps:$4 sm:$0xff]   ;;  %10983 = vmatprep.subr.bf16.mxu1 %v12946_v55  ;;  %v12955_v51 = vld [vmem:[#allocation9 + $0x10] sm:$0xff]  }
 0x529   :  { %v8442_v40 = vpop.f32.mrf.mxu0  ;;  %v12965_v14 = vld [vmem:[#allocation12 + $0x10] sm:$0xff]   ;;  %v12966_v55 = vld [vmem:[#allocation12 + $0x8] sm:$0xff]  }
 0x52a   :  { %v8483_v9 = vpop.f32.mrf.mxu1  ;;  %v13552_v10 = vadd.f32 %v8481_v26, %v8441_v35  ;;  %9335 = vmatpush1.bf16.msra.mxu0 %v12899_v27 }
 0x52b   :  { %v8443_v11 = vpop.f32.mrf.mxu0  ;;  %9336 = vmatprep.subr.bf16.mxu0 %v12904_v19  ;;  %10984 = vmatpush3.bf16.msra.mxu1 %v12947_v15  ;;  %v12967_v15 = vld [vmem:[#allocation12] sm:$0xff]  }
 0x52c   :  { %v8484_v12 = vpop.f32.mrf.mxu1  ;;  %10985 = vmatprep.subr.bf16.mxu1 %v12948_v34 }
 0x52e   :  { %9337 = vmatpush1.bf16.msra.mxu0 %v12902_v8 }
 0x52f   :  { %9338 = vmatprep.subr.bf16.mxu0 %v12907_v24  ;;  %10986 = vmatpush3.bf16.msra.mxu1 %v12949_v41  ;;  %v10954_v41 = vld [vmem:[#allocation10] ss:$0 sm:$0xff] }
 0x530   :  { %10987 = vmatprep.subr.bf16.mxu1 %v12950_v47 }
 0x532   :  { %9339 = vmatpush1.bf16.msra.mxu0 %v12905_v3 }
 0x533   :  { %9340 = vmatprep.subr.bf16.mxu0 %v12910_v18  ;;  %10988 = vmatpush3.bf16.msra.mxu1 %v12951_v48 }
 0x534   :  { %10989 = vmatprep.subr.bf16.mxu1 %v12952_v0 }
 0x536   :  { %9341 = vmatpush1.bf16.msra.mxu0 %v12908_v21 }
 0x537   :  { %9342 = vmatprep.subr.bf16.mxu0 %v12913_v38  ;;  %10990 = vmatpush3.bf16.msra.mxu1 %v12953_v1 }
 0x538   :  { %10991 = vmatprep.subr.bf16.mxu1 %v12954_v37 }
 0x53a   :  { %9343 = vmatpush1.bf16.msra.mxu0 %v12911_v56 }
 0x53b   :  { %9344 = vmatprep.subr.bf16.mxu0 %v12916_v39  ;;  %10992 = vmatpush3.bf16.msra.mxu1 %v12955_v51 }
 0x53e   :  { %9345 = vmatpush1.bf16.msra.mxu0 %v12914_v28 }
 0x53f   :  { %9346 = vmatprep.subr.bf16.mxu0 %v12919_v60 }
 0x542   :  { %9347 = vmatpush1.bf16.msra.mxu0 %v12917_v29 }
 0x543   :  { %9348 = vmatprep.subr.bf16.mxu0 %v12922_v30 }
 0x546   :  { %9349 = vmatpush2.bf16.msra.mxu0 %v12920_v32 }
 0x547   :  { %9350 = vmatprep.subr.bf16.mxu0 %v12925_v50 }
 0x54a   :  { %9351 = vmatpush2.bf16.msra.mxu0 %v12923_v4 }
 0x54b   :  { %9352 = vmatprep.subr.bf16.mxu0 %v12928_v5 }
 0x54e   :  { %9353 = vmatpush2.bf16.msra.mxu0 %v12926_v22 }
 0x54f   :  { %9354 = vmatprep.subr.bf16.mxu0 %v12931_v23 }
 0x552   :  { %9355 = vmatpush2.bf16.msra.mxu0 %v12929_v31 }
 0x553   :  { %9356 = vmatprep.subr.bf16.mxu0 %v12934_v42 }
 0x556   :  { %9357 = vmatpush2.bf16.msra.mxu0 %v12932_v43 }
 0x557   :  { %9358 = vmatprep.subr.bf16.mxu0 %v12937_v44  ;;  %v12956_v44 = vld [vmem:[#allocation9 + $0x48] sm:$0xff]  }
 0x558   :  { %10993 = vmatprep.subr.bf16.mxu1 %v12956_v44 }
 0x55a   :  { %9359 = vmatpush2.bf16.msra.mxu0 %v12935_v36  ;;  %v12957_v36 = vld [vmem:[#allocation9 + $0x8] sm:$0xff]  }
 0x55b   :  { %9360 = vmatprep.subr.bf16.mxu0 %v12940_v13  ;;  %10994 = vmatpush3.bf16.msra.mxu1 %v12957_v36  ;;  %v12959_v13 = vld [vmem:[#allocation9] sm:$0xff]  }
 0x55e   :  { %9361 = vmatpush2.bf16.msra.mxu0 %v12938_v2 }
 0x55f   :  { %9362 = vmatprep.subr.bf16.mxu0 %v12943_v46 }
 0x562   :  { %9363 = vmatpush2.bf16.msra.mxu0 %v12941_v16 }
 0x565   :  { %v8520_v17 = vpop.f32.mrf.mxu0 }
 0x566   :  { %v8561_v61 = vpop.f32.mrf.mxu1  ;;  %v8521_v49 = vadd.f32 %v8520_v17, %v13549_v62 }
 0x567   :  { %v8522_v52 = vpop.f32.mrf.mxu0 }
 0x568   :  { %v8563_v33 = vpop.f32.mrf.mxu1  ;;  %v8562_v20 = vadd.f32 %v8561_v61, %v8521_v49  ;;  %v8523_v57 = vadd.f32 %v8522_v52, %v13552_v10  ;;  %v8758_v10 = vld [vmem:[#allocation7] sm:$0x3] }
 0x569   :  { %v8524_v6 = vpop.f32.mrf.mxu0  ;;  %v8763_v39 = vrot.slane %v8758_v10, %v1302_v59  ;;  %v8767_v28 = vrot.slane %v8758_v10, %v1306_v63  ;;  %v12958_v59 = vld [vmem:[#allocation9 + $0x40] sm:$0xff]  }
 0x56a   :  { %v8565_v7 = vpop.f32.mrf.mxu1  ;;  %v8564_v26 = vadd.f32 %v8563_v33, %v8523_v57  ;;  %10995 = vmatprep.subr.bf16.mxu1 %v12958_v59  ;;  %v13156_v6 = vmov 0.0  }
 0x56b   :  { %v8525_v53 = vpop.f32.mrf.mxu0  ;;  %10996 = vmatpush3.bf16.msra.mxu1 %v12959_v13  ;;  %v12961_v7 = vld [vmem:[#allocation12 + $0x30] sm:$0xff]  }
 0x56c   :  { %v8566_v45 = vpop.f32.mrf.mxu1  ;;  %11012 = vmatprep.subr.bf16.mxu1 %v13156_v6  ;;  %v12962_v53 = vld [vmem:[#allocation12 + $0x28] sm:$0xff]  }
 0x56d   :  { %v12963_v45 = vld [vmem:[#allocation12 + $0x20] sm:$0xff]  }
 0x5a5   :  { %v8602_v27 = vpop.f32.mrf.mxu0 }
 0x5a6   :  { %v8643_v58 = vpop.f32.mrf.mxu1  ;;  %v8603_v19 = vadd.f32 %v8602_v27, %v8562_v20  ;;  %v12960_v20 = vld [vmem:[#allocation12 + $0x38] sm:$0xff]  }
 0x5a7   :  { %v8604_v62 = vpop.f32.mrf.mxu0 }
 0x5a8   :  { %v8645_v35 = vpop.f32.mrf.mxu1  ;;  %v8644_v40 = vadd.f32 %v8643_v58, %v8603_v19  ;;  %v8605_v9 = vadd.f32 %v8604_v62, %v8564_v26 }
 0x5a9   :  { %v8606_v8 = vpop.f32.mrf.mxu0 }
 0x5aa   :  { %v8647_v11 = vpop.f32.mrf.mxu1  ;;  %v8646_v12 = vadd.f32 %v8645_v35, %v8605_v9  ;;  %v8654_v24 = vmax.f32 %v8644_v40, 0.0  ;;  %v10972_v40 = vld [vmem:[#allocation13] ss:$0 sm:$0xff] }
 0x5ab   :  { %v8607_v3 = vpop.f32.mrf.mxu0 }
 0x5ac   :  { %v8648_v18 = vpop.f32.mrf.mxu1  ;;  %v8655_v21 = vmax.f32 %v8646_v12, 0.0  ;;  %v8660_v56 = vpack.c.bf16 %v8654_v24, %v8654_v24 }
 0x5ae   :  { %v8661_v38 = vpack.c.bf16 %v8655_v21, %v8655_v21 }
 0x5b0   :  { %9364 = vmatprep.mubr.bf16.mxu0 %v8661_v38 }
 0x5b1   :  { %9365 = vmatmul.mubr.bf16.vlgmr.msra.gmra.mxu0 %v8660_v56 }
 0x5e5   :  { %v9284_v60 = vpop.f32.mrf.mxu0 }
 0x5e6   :  { %v9285_v29 = vadd.f32 %v9284_v60, %v8763_v39  ;;  %v9325_v30 = vpop.f32.mrf.mxu1 }
 0x5e7   :  { %v9286_v32 = vpop.f32.mrf.mxu0 }
 0x5e8   :  { %v9326_v50 = vadd.f32 %v9325_v30, %v9285_v29  ;;  %v9287_v4 = vadd.f32 %v9286_v32, %v8767_v28  ;;  %v9327_v5 = vpop.f32.mrf.mxu1 }
 0x5e9   :  { %v9288_v22 = vpop.f32.mrf.mxu0 }
 0x5ea   :  { %v9328_v23 = vadd.f32 %v9327_v5, %v9287_v4  ;;  %v9329_v31 = vpop.f32.mrf.mxu1 }
 0x5eb   :  { %v9289_v42 = vpop.f32.mrf.mxu0 }
 0x5ec   :  { %v9330_v43 = vpop.f32.mrf.mxu1 }
 0x671   :  { %v9366_v54 = vpop.f32.mrf.mxu0 }
 0x672   :  { %v9367_v63 = vadd.f32 %v9366_v54, %v9326_v50 }
 0x673   :  { %v9368_v2 = vpop.f32.mrf.mxu0 }
 0x674   :  { %v9369_v46 = vadd.f32 %v9368_v2, %v9328_v23  ;;  %v9373_v16 = vmax.f32 %v9367_v63, 0.0 }
 0x675   :  { %v9370_v17 = vpop.f32.mrf.mxu0 }
 0x676   :  { %v9374_v61 = vmax.f32 %v9369_v46, 0.0  ;;  %v9375_v33 = vpack.c.bf16 %v9373_v16, %v9373_v16 }
 0x677   :  { %v9371_v49 = vpop.f32.mrf.mxu0 }
 0x678   :  { %v9376_v52 = vpack.c.bf16 %v9374_v61, %v9374_v61 }
 0x67a   :  { %9544 = vmatprep.mubr.bf16.mxu1 %v9376_v52 }
 0x67b   :  { %9545 = vmatmul.mubr.bf16.vlgmr.msra.gmra.mxu1 %v9375_v33 }
 0x67c   :  { %11013 = vmatpush3.bf16.msra.mxu1 %v12960_v20  ;;  %11028 = vmatprep.mubr.msk.bf16.mxu1 %vm13157_vm0, %v13156_v6 }
 0x67d   :  { %11014 = vmatprep.subr.bf16.mxu1 %v13156_v6 }
 0x680   :  { %11015 = vmatpush3.bf16.msra.mxu1 %v12961_v7 }
 0x681   :  { %11016 = vmatprep.subr.bf16.mxu1 %v13156_v6 }
 0x684   :  { %11017 = vmatpush3.bf16.msra.mxu1 %v12962_v53 }
 0x685   :  { %11018 = vmatprep.subr.bf16.mxu1 %v13156_v6 }
 0x688   :  { %11019 = vmatpush3.bf16.msra.mxu1 %v12963_v45 }
 0x689   :  { %11020 = vmatprep.subr.bf16.mxu1 %v13156_v6 }
 0x68c   :  { %11021 = vmatpush3.bf16.msra.mxu1 %v12964_v25 }
 0x68d   :  { %11022 = vmatprep.subr.bf16.mxu1 %v13156_v6 }
 0x690   :  { %11023 = vmatpush3.bf16.msra.mxu1 %v12965_v14 }
 0x691   :  { %11024 = vmatprep.subr.bf16.mxu1 %v13156_v6 }
 0x694   :  { %11025 = vmatpush3.bf16.msra.mxu1 %v12966_v55 }
 0x695   :  { %11026 = vmatprep.subr.bf16.mxu1 %v13156_v6 }
 0x698   :  { %11027 = vmatpush3.bf16.msra.mxu1 %v12967_v15 }
 0x73b   :  { %v10997_v34 = vpop.f32.mrf.mxu1 }
 0x73d   :  { %v10998_v47 = vpop.f32.mrf.mxu1 }
 0x73e   :  { %v10999_v48 = vadd.f32 %v10998_v47, %v10997_v34 }
 0x73f   :  { %v11000_v0 = vpop.f32.mrf.mxu1 }
 0x740   :  { %v9547_v1 = vadd.f32 %v10999_v48, %v10954_v41 }
 0x741   :  { %v11001_v37 = vpop.f32.mrf.mxu1 }
 0x742   :  { %v9552_v51 = vmin.f32 %v9547_v1, 0.0  ;;  %vm9557_vm1 = vcmp.gt.f32.partialorder %v9547_v1, 0.0 }
 0x744   :  { %v9553_v57 = vmul.f32 1.442695, %v9552_v51 }
 0x746   :  { %12968 = vpow2.f32 %v9553_v57 }
 0x753   :  { %v12969_v27 = vpop.eup %12968 }
 0x754   :  { %v10971_v58 = vadd.f32 -1.0, %v12969_v27 }
 0x756   :  { %v9556_v26 = vmul.f32 1.6732632, %v10971_v58 }
 0x758   :  { %v9558_v19 = vsel %vm9557_vm1, %v9547_v1, %v9556_v26 }
 0x759   :  { %v9559_v62 = vmul.f32 1.050701, %v9558_v19 }
 0x75b   :  { %v9560_v35 = vpack.c.bf16 %v9559_v62, %v9559_v62 }
 0x75d   :  { %11029 = vmatmul.mubr.bf16.vlgmr.msra.gmra.mxu1 %v9560_v35 }
 0x81d   :  { %v9666_v9 = vpop.f32.mrf.mxu1 }
 0x81e   :  { %v9667_v8 = vadd.f32 %v10972_v40, %v9666_v9 }
 0x81f   :  { %v11030_v11 = vpop.f32.mrf.mxu1 }
 0x820   :  { %9672 = vst [vmem:[%s13572_s9] sm:$0xff] %v9667_v8 }
 0x821   :  { %v9669_v12 = vpop.f32.mrf.mxu1 }
 0x823   :  { %v11031_v24 = vpop.f32.mrf.mxu1 }
 0x824   :  { %9677 = vsyncpa [#allocation3], 1 }
 0x825   :  { %9678 = vsyncpa [#allocation5], 1 }
 0x826   :  { %9679 = vsyncpa [#allocation8], 1 }
 0x827   :  { %9680 = vsyncpa [#allocation11], 1 }
 0x828   :  { %9681 = vsyncpa [#allocation14], 1 }

</bundles_post_ra>
